<compile_context>
chip_gen: v5e
topology: v5e:2x2
jax: 0.10.0
libtpu: 0.0.40
codegen_flags: <defaults>
</compile_context>

<pallas_src>
import math

import jax
import jax.numpy as jnp
from jax.experimental import pallas as pl
from jax.experimental.pallas import tpu as pltpu


def _layernorm(x, w, b, eps=1e-5):
    mu = jnp.mean(x, axis=-1, keepdims=True)
    var = jnp.mean((x - mu) ** 2, axis=-1, keepdims=True)
    return (x - mu) * jax.lax.rsqrt(var + eps) * w + b


def _erf(x):
    # Abramowitz & Stegun 7.1.26 polynomial (|err| < 1.5e-7); avoids relying on a
    # lax.erf lowering inside Mosaic (only exp / mul / where are needed).
    a1, a2, a3, a4, a5 = 0.254829592, -0.284496736, 1.421413741, -1.453152027, 1.061405429
    p = 0.3275911
    ax = jnp.abs(x)
    t = 1.0 / (1.0 + p * ax)
    poly = ((((a5 * t + a4) * t + a3) * t + a2) * t + a1) * t
    y = 1.0 - poly * jnp.exp(-ax * ax)
    return jnp.where(x >= 0, y, -y)


def _gelu(x):
    # exact (erf-based) GELU, matching torch.nn.GELU default
    return 0.5 * x * (1.0 + _erf(x * (1.0 / math.sqrt(2.0))))


def make_layers_kernel(num_heads, model_dim, seq_len, batch_tile):
    H, D, S, TB = num_heads, model_dim, seq_len, batch_tile
    dh = D // H
    N = TB * S
    scale = 1.0 / math.sqrt(dh)
    bf16 = jnp.bfloat16

    def kernel(emb_ref, ln1w_ref, ln1b_ref, wqkv_ref, bqkv_ref, wo_ref, bo_ref,
               ln2w_ref, ln2b_ref, wup_ref, bup_ref, wdown_ref, bdown_ref,
               lnfw_ref, lnfb_ref, x_ref):
        l = pl.program_id(1)
        n_layers = pl.num_programs(1)

        # initialize the residual stream from the embeddings at layer 0
        @pl.when(l == 0)
        def _():
            x_ref[...] = emb_ref[...]

        x = x_ref[...].reshape(N, D)                                     # (TB*S, D) f32

        # ---- pre-attention LayerNorm + fused QKV projection (M = TB*S rows) ----
        xn = _layernorm(x, ln1w_ref[0], ln1b_ref[0])
        qkv = jnp.dot(xn.astype(bf16), wqkv_ref[0],
                      preferred_element_type=jnp.float32) + bqkv_ref[0]  # (N, 3D)

        # ALiBi distances with the causal mask folded in (slope > 0, slope*-inf = -inf)
        row = jax.lax.broadcasted_iota(jnp.int32, (S, S), 0)
        col = jax.lax.broadcasted_iota(jnp.int32, (S, S), 1)
        dist = jnp.where(col <= row, (col - row).astype(jnp.float32), -jnp.inf)  # (S, S)

        # ---- per-head attention, TB-batched; no (S,H,dh)->(H,S,dh) relayouts ----
        # W_qkv was permuted wrapper-side so columns are [Q h0|h1|... | K ... | V ...].
        o_heads = []
        for h in range(H):
            q_h = qkv[:, 0 * D + h * dh:0 * D + (h + 1) * dh].reshape(TB, S, dh)
            k_h = qkv[:, 1 * D + h * dh:1 * D + (h + 1) * dh].reshape(TB, S, dh)
            v_h = qkv[:, 2 * D + h * dh:2 * D + (h + 1) * dh].reshape(TB, S, dh)

            s_h = jnp.einsum('bqd,bkd->bqk', q_h.astype(bf16), k_h.astype(bf16),
                             preferred_element_type=jnp.float32)          # (TB, S, S)
            slope = 2.0 ** (-8.0 / H * (h + 1))
            s_h = s_h * scale + slope * dist[None, :, :]

            # softmax (f32), EUP reciprocal for the denominator
            m = jnp.max(s_h, axis=-1, keepdims=True)
            e = jnp.exp(s_h - m)
            p = e * pl.reciprocal(jnp.sum(e, axis=-1, keepdims=True), approx=True)

            o_h = jnp.einsum('bqk,bkd->bqd', p.astype(bf16), v_h.astype(bf16),
                             preferred_element_type=jnp.float32)          # (TB, S, dh)
            o_heads.append(o_h.reshape(N, dh))

        # head concat (lane dim) + single (N,D)@(D,D) output projection
        o = jnp.concatenate(o_heads, axis=-1)                             # (N, D)
        attn = jnp.dot(o.astype(bf16), wo_ref[0],
                       preferred_element_type=jnp.float32) + bo_ref[0]
        x = x + attn                                   # dropout == identity (eval)

        # ---- pre-MLP LayerNorm + GELU MLP ----
        xn2 = _layernorm(x, ln2w_ref[0], ln2b_ref[0])
        h_up = jnp.dot(xn2.astype(bf16), wup_ref[0],
                       preferred_element_type=jnp.float32) + bup_ref[0]   # (N, 4D)
        mlp = jnp.dot(_gelu(h_up).astype(bf16), wdown_ref[0],
                      preferred_element_type=jnp.float32) + bdown_ref[0]
        x = x + mlp                                    # dropouts == identity (eval)

        # carry the residual; at the last layer write the final-normed activations
        @pl.when(l < n_layers - 1)
        def _():
            x_ref[...] = x.reshape(TB, S, D)

        @pl.when(l == n_layers - 1)
        def _():
            xf = _layernorm(x, lnfw_ref[...], lnfb_ref[...])
            x_ref[...] = xf.reshape(TB, S, D)

    return kernel


def lm_head_kernel(x_ref, wlm_ref, blm_ref, out_ref):
    # x is already final-normed by the layers kernel; bf16 matmul, f32 accumulate.
    out_ref[...] = jnp.dot(x_ref[...].astype(jnp.bfloat16), wlm_ref[...],
                           preferred_element_type=jnp.float32) + blm_ref[...]


def _pick_vmem_limit():
    cap = 64 * 1024 * 1024
    try:
        info = pltpu.get_tpu_info()
        cap = int(getattr(info, "vmem_capacity_bytes", cap))
    except Exception:
        pass
    # ~80% of the per-core capacity, capped at ~100 MiB (v5e/v6e have 128 MiB).
    return int(min(cap * 0.8, 100 * 1024 * 1024))


def _pick_batch_tile(B, S, D, budget_bytes):
    # largest divisor of B whose rough f32 activation footprint fits the budget
    for tb in range(B, 0, -1):
        if B % tb:
            continue
        n = tb * S
        act = 4 * n * (2 * D + 3 * D + 4 * D + D) + 4 * tb * S * S * 3
        if act <= budget_bytes:
            return tb
    return 1


def kalegpt2_forward(tokens, params, *, num_heads, max_block_size):
    emb_table = params["embedding"]
    B, T = tokens.shape
    S = min(T, max_block_size)
    tokens = tokens[:, -S:]
    V, D = emb_table.shape
    L = params["ln1_w"].shape[0]
    H = num_heads
    dh = D // H
    bf16 = jnp.bfloat16

    # glue: embedding gather (torch nn.Embedding equivalent)
    emb = jnp.take(emb_table, tokens, axis=0).astype(jnp.float32)        # (B, S, D)

    # Pre-permute W_qkv / b_qkv columns from the torch [head: q,k,v] interleave to a
    # lane-aligned [Q all heads | K all heads | V all heads] layout (free, wrapper-side).
    w_qkv = params["w_qkv"].reshape(L, D, H, 3, dh).transpose(0, 1, 3, 2, 4).reshape(L, D, 3 * D)
    b_qkv = params["b_qkv"].reshape(L, 1, H, 3, dh).transpose(0, 1, 3, 2, 4).reshape(L, 1, 3 * D)
    w_qkv = w_qkv.astype(bf16)
    w_o = params["w_o"].astype(bf16)
    w_up = params["w_up"].astype(bf16)
    w_down = params["w_down"].astype(bf16)

    vmem_limit = _pick_vmem_limit()
    TB = _pick_batch_tile(B, S, D, vmem_limit // 2)
    nb = B // TB

    # ---- kernel 1: all transformer blocks + final norm; per-layer weight streaming,
    #      batch folded into the compute block (weights DMA'd once per batch tile) ----
    layers_kernel = make_layers_kernel(H, D, S, TB)

    def wspec(shape):
        nd = len(shape)
        return pl.BlockSpec((1,) + tuple(shape[1:]),
                            lambda b, l, _nd=nd: (l,) + (0,) * (_nd - 1))

    def fspec(shape):
        nd = len(shape)
        return pl.BlockSpec(tuple(shape), lambda b, l, _nd=nd: (0,) * _nd)

    x_final = pl.pallas_call(
        layers_kernel,
        out_shape=jax.ShapeDtypeStruct((B, S, D), jnp.float32),
        grid_spec=pltpu.PrefetchScalarGridSpec(
            num_scalar_prefetch=0,
            grid=(nb, L),
            in_specs=[
                pl.BlockSpec((TB, S, D), lambda b, l: (b, 0, 0)),          # embeddings
                wspec(params["ln1_w"].shape), wspec(params["ln1_b"].shape),
                wspec(w_qkv.shape), wspec(b_qkv.shape),
                wspec(w_o.shape), wspec(params["b_o"].shape),
                wspec(params["ln2_w"].shape), wspec(params["ln2_b"].shape),
                wspec(w_up.shape), wspec(params["b_up"].shape),
                wspec(w_down.shape), wspec(params["b_down"].shape),
                fspec(params["lnf_w"].shape), fspec(params["lnf_b"].shape),
            ],
            out_specs=pl.BlockSpec((TB, S, D), lambda b, l: (b, 0, 0)),    # residual carry
        ),
        compiler_params=pltpu.CompilerParams(
            dimension_semantics=("parallel", "arbitrary"),
            vmem_limit_bytes=vmem_limit,
        ),
    )(emb,
      params["ln1_w"], params["ln1_b"], w_qkv, b_qkv, w_o, params["b_o"],
      params["ln2_w"], params["ln2_b"], w_up, params["b_up"], w_down, params["b_down"],
      params["lnf_w"], params["lnf_b"])

    # ---- kernel 2: LM head; batch folded into M so each w_lm tile streams exactly once ----
    Vp = ((V + 127) // 128) * 128
    w_lm = params["w_lm"]
    b_lm = params["b_lm"]
    if Vp != V:
        w_lm = jnp.pad(w_lm, ((0, 0), (0, Vp - V)))
        b_lm = jnp.pad(b_lm, ((0, 0), (0, Vp - V)))
    w_lm = w_lm.astype(bf16)

    BS = B * S
    x2d = x_final.reshape(BS, D)

    TV = 128
    t = 128
    while t <= min(Vp, 2048):
        if Vp % t == 0:
            blk_bytes = 2 * (BS * t * 4 + D * t * 2 + t * 4)
            if blk_bytes <= vmem_limit // 2:
                TV = t
        t += 128

    logits2d = pl.pallas_call(
        lm_head_kernel,
        out_shape=jax.ShapeDtypeStruct((BS, Vp), jnp.float32),
        grid_spec=pltpu.PrefetchScalarGridSpec(
            num_scalar_prefetch=0,
            grid=(Vp // TV,),
            in_specs=[
                pl.BlockSpec((BS, D), lambda v: (0, 0)),    # resident activations
                pl.BlockSpec((D, TV), lambda v: (0, v)),    # streamed vocab tile
                pl.BlockSpec((1, TV), lambda v: (0, v)),
            ],
            out_specs=pl.BlockSpec((BS, TV), lambda v: (0, v)),
        ),
        compiler_params=pltpu.CompilerParams(
            dimension_semantics=("parallel",),
            vmem_limit_bytes=vmem_limit,
        ),
    )(x2d, w_lm, b_lm)

    return logits2d.reshape(B, S, Vp)[:, :, :V]


def init_params(key, vocab, D, H, L):
    k_emb, k_blocks, k_lm = jax.random.split(key, 3)
    params = {"embedding": jax.random.normal(k_emb, (vocab, D), jnp.float32)}

    def linear(k, fi, fo):
        kw, kb = jax.random.split(k)
        lim = 1.0 / math.sqrt(fi)
        w = jax.random.uniform(kw, (fi, fo), jnp.float32, -lim, lim)
        b = jax.random.uniform(kb, (fo,), jnp.float32, -lim, lim)
        return w, b

    ln1_w, ln1_b, ln2_w, ln2_b = [], [], [], []
    w_qkv, b_qkv, w_o, b_o = [], [], [], []
    w_up, b_up, w_down, b_down = [], [], [], []
    lkeys = jax.random.split(k_blocks, L)
    for l in range(L):
        k1, k2, k3, k4 = jax.random.split(lkeys[l], 4)
        ln1_w.append(jnp.ones((1, D), jnp.float32)); ln1_b.append(jnp.zeros((1, D), jnp.float32))
        ln2_w.append(jnp.ones((1, D), jnp.float32)); ln2_b.append(jnp.zeros((1, D), jnp.float32))
        w, b = linear(k1, D, 3 * D); w_qkv.append(w); b_qkv.append(b[None])
        w, b = linear(k2, D, D);     w_o.append(w);   b_o.append(b[None])
        w, b = linear(k3, D, 4 * D); w_up.append(w);  b_up.append(b[None])
        w, b = linear(k4, 4 * D, D); w_down.append(w); b_down.append(b[None])

    stack = lambda xs: jnp.stack(xs, axis=0)
    params.update(
        ln1_w=stack(ln1_w), ln1_b=stack(ln1_b),
        ln2_w=stack(ln2_w), ln2_b=stack(ln2_b),
        w_qkv=stack(w_qkv), b_qkv=stack(b_qkv),
        w_o=stack(w_o), b_o=stack(b_o),
        w_up=stack(w_up), b_up=stack(b_up),
        w_down=stack(w_down), b_down=stack(b_down),
        lnf_w=jnp.ones((1, D), jnp.float32), lnf_b=jnp.zeros((1, D), jnp.float32),
    )
    w, b = linear(k_lm, D, vocab)
    params["w_lm"] = w
    params["b_lm"] = b[None]
    return params


if __name__ == "__main__":
    VOCAB, D, H, L, MAX_BLOCK = 256, 128, 4, 2, 16
    B, T = 2, 16

    key = jax.random.PRNGKey(0)
    kp, kt = jax.random.split(key)
    params = init_params(kp, VOCAB, D, H, L)
    tokens = jax.random.randint(kt, (B, T), 0, VOCAB, dtype=jnp.int32)

    logits = kalegpt2_forward(tokens, params, num_heads=H, max_block_size=MAX_BLOCK)
    logits = jax.block_until_ready(logits)

    assert logits.shape == (B, min(T, MAX_BLOCK), VOCAB), logits.shape
    assert bool(jnp.all(jnp.isfinite(logits)))
    print("KERNEL_OK")
</pallas_src>

<mosaic_0001>
module attributes {stable_mosaic.version = 11 : i64} {
  func.func @kernel(%arg0: i32, %arg1: i32, %arg2: memref<2x16x128xf32, #tpu.memory_space<vmem>>, %arg3: memref<1x1x128xf32, #tpu.memory_space<vmem>>, %arg4: memref<1x1x128xf32, #tpu.memory_space<vmem>>, %arg5: memref<1x128x384xbf16, #tpu.memory_space<vmem>>, %arg6: memref<1x1x384xf32, #tpu.memory_space<vmem>>, %arg7: memref<1x128x128xbf16, #tpu.memory_space<vmem>>, %arg8: memref<1x1x128xf32, #tpu.memory_space<vmem>>, %arg9: memref<1x1x128xf32, #tpu.memory_space<vmem>>, %arg10: memref<1x1x128xf32, #tpu.memory_space<vmem>>, %arg11: memref<1x128x512xbf16, #tpu.memory_space<vmem>>, %arg12: memref<1x1x512xf32, #tpu.memory_space<vmem>>, %arg13: memref<1x512x128xbf16, #tpu.memory_space<vmem>>, %arg14: memref<1x1x128xf32, #tpu.memory_space<vmem>>, %arg15: memref<1x128xf32, #tpu.memory_space<vmem>>, %arg16: memref<1x128xf32, #tpu.memory_space<vmem>>, %arg17: memref<2x16x128xf32, #tpu.memory_space<vmem>>) attributes {dimension_semantics = [#tpu.dimension_semantics<parallel>, #tpu.dimension_semantics<arbitrary>], iteration_bounds = array<i64: 1, 2>, scalar_prefetch = 0 : i64, scratch_operands = 0 : i64, tpu.core_type = #tpu.core_type<tc>, window_params = [{transform_indices = @transform_0, window_bounds = array<i64: 2, 16, 128>}, {transform_indices = @transform_1, window_bounds = array<i64: 1, 1, 128>}, {transform_indices = @transform_2, window_bounds = array<i64: 1, 1, 128>}, {transform_indices = @transform_3, window_bounds = array<i64: 1, 128, 384>}, {transform_indices = @transform_4, window_bounds = array<i64: 1, 1, 384>}, {transform_indices = @transform_5, window_bounds = array<i64: 1, 128, 128>}, {transform_indices = @transform_6, window_bounds = array<i64: 1, 1, 128>}, {transform_indices = @transform_7, window_bounds = array<i64: 1, 1, 128>}, {transform_indices = @transform_8, window_bounds = array<i64: 1, 1, 128>}, {transform_indices = @transform_9, window_bounds = array<i64: 1, 128, 512>}, {transform_indices = @transform_10, window_bounds = array<i64: 1, 1, 512>}, {transform_indices = @transform_11, window_bounds = array<i64: 1, 512, 128>}, {transform_indices = @transform_12, window_bounds = array<i64: 1, 1, 128>}, {pipeline_mode = #tpu.pipeline_mode<synchronous>, transform_indices = @transform_13, window_bounds = array<i64: 1, 128>}, {pipeline_mode = #tpu.pipeline_mode<synchronous>, transform_indices = @transform_14, window_bounds = array<i64: 1, 128>}, {transform_indices = @transform_15, window_bounds = array<i64: 2, 16, 128>}]} {
    %c0_i32 = arith.constant 0 : i32
    %0 = arith.cmpi eq, %arg1, %c0_i32 : i32
    %1 = arith.extui %0 : i1 to i32
    %c0_i32_0 = arith.constant 0 : i32
    %2 = arith.cmpi ne, %1, %c0_i32_0 : i32
    scf.if %2 {
      %c0_95 = arith.constant 0 : index
      %c0_96 = arith.constant 0 : index
      %c0_97 = arith.constant 0 : index
      %265 = vector.load %arg2[%c0_95, %c0_96, %c0_97] : memref<2x16x128xf32, #tpu.memory_space<vmem>>, vector<2x16x128xf32>
      %c0_98 = arith.constant 0 : index
      %c0_99 = arith.constant 0 : index
      %c0_100 = arith.constant 0 : index
      %266 = vector.load %arg17[%c0_98, %c0_99, %c0_100] : memref<2x16x128xf32, #tpu.memory_space<vmem>>, vector<2x16x128xf32>
      tpu.vector_store %arg17[%c0_98, %c0_99, %c0_100], %265 {strides = array<i32>} : memref<2x16x128xf32, #tpu.memory_space<vmem>>, vector<2x16x128xf32>,
    } else {
    }
    %c0 = arith.constant 0 : index
    %c0_1 = arith.constant 0 : index
    %c0_2 = arith.constant 0 : index
    %3 = vector.load %arg17[%c0, %c0_1, %c0_2] : memref<2x16x128xf32, #tpu.memory_space<vmem>>, vector<2x16x128xf32>
    %4 = vector.shape_cast %3 : vector<2x16x128xf32> to vector<32x128xf32>
    %c0_3 = arith.constant 0 : index
    %c0_4 = arith.constant 0 : index
    %c0_5 = arith.constant 0 : index
    %5 = vector.load %arg3[%c0_3, %c0_4, %c0_5] : memref<1x1x128xf32, #tpu.memory_space<vmem>>, vector<1x1x128xf32>
    %6 = vector.shape_cast %5 : vector<1x1x128xf32> to vector<1x128xf32>
    %c0_6 = arith.constant 0 : index
    %c0_7 = arith.constant 0 : index
    %c0_8 = arith.constant 0 : index
    %7 = vector.load %arg4[%c0_6, %c0_7, %c0_8] : memref<1x1x128xf32, #tpu.memory_space<vmem>>, vector<1x1x128xf32>
    %8 = vector.shape_cast %7 : vector<1x1x128xf32> to vector<1x128xf32>
    %cst = arith.constant dense<0.000000e+00> : vector<32xf32>
    %9 = vector.multi_reduction <add>, %4, %cst [1] : vector<32x128xf32> to vector<32xf32>
    %10 = vector.shape_cast %9 : vector<32xf32> to vector<32x1xf32>
    %cst_9 = arith.constant 1.280000e+02 : f32
    %11 = vector.broadcast %cst_9 : f32 to vector<32x1xf32>
    %12 = arith.divf %10, %11 : vector<32x1xf32>
    %13 = vector.broadcast %12 : vector<32x1xf32> to vector<32x128xf32>
    %14 = arith.subf %4, %13 : vector<32x128xf32>
    %15 = arith.mulf %14, %14 : vector<32x128xf32>
    %cst_10 = arith.constant dense<0.000000e+00> : vector<32xf32>
    %16 = vector.multi_reduction <add>, %15, %cst_10 [1] : vector<32x128xf32> to vector<32xf32>
    %17 = vector.shape_cast %16 : vector<32xf32> to vector<32x1xf32>
    %cst_11 = arith.constant 1.280000e+02 : f32
    %18 = vector.broadcast %cst_11 : f32 to vector<32x1xf32>
    %19 = arith.divf %17, %18 : vector<32x1xf32>
    %20 = vector.broadcast %12 : vector<32x1xf32> to vector<32x128xf32>
    %21 = arith.subf %4, %20 : vector<32x128xf32>
    %cst_12 = arith.constant 9.99999974E-6 : f32
    %22 = vector.broadcast %cst_12 : f32 to vector<32x1xf32>
    %23 = arith.addf %19, %22 : vector<32x1xf32>
    %24 = math.rsqrt %23 : vector<32x1xf32>
    %25 = vector.broadcast %24 : vector<32x1xf32> to vector<32x128xf32>
    %26 = arith.mulf %21, %25 : vector<32x128xf32>
    %27 = vector.broadcast %6 : vector<1x128xf32> to vector<32x128xf32>
    %28 = arith.mulf %26, %27 : vector<32x128xf32>
    %29 = vector.broadcast %8 : vector<1x128xf32> to vector<32x128xf32>
    %30 = arith.addf %28, %29 : vector<32x128xf32>
    %31 = arith.truncf %30 : vector<32x128xf32> to vector<32x128xbf16>
    %c0_13 = arith.constant 0 : index
    %c0_14 = arith.constant 0 : index
    %c0_15 = arith.constant 0 : index
    %32 = vector.load %arg5[%c0_13, %c0_14, %c0_15] : memref<1x128x384xbf16, #tpu.memory_space<vmem>>, vector<1x128x384xbf16>
    %33 = vector.shape_cast %32 : vector<1x128x384xbf16> to vector<128x384xbf16>
    %cst_16 = arith.constant dense<0.000000e+00> : vector<32x384xf32>
    %34 = tpu.matmul %31, %33, %cst_16 {dimension_numbers = #tpu.dot_dimension_numbers<[1], [0], [0], [1], [0, 0, 1, 1], [], []>} : vector<32x128xbf16>, vector<128x384xbf16>, vector<32x384xf32> -> vector<32x384xf32>
    %c0_17 = arith.constant 0 : index
    %c0_18 = arith.constant 0 : index
    %c0_19 = arith.constant 0 : index
    %35 = vector.load %arg6[%c0_17, %c0_18, %c0_19] : memref<1x1x384xf32, #tpu.memory_space<vmem>>, vector<1x1x384xf32>
    %36 = vector.shape_cast %35 : vector<1x1x384xf32> to vector<1x384xf32>
    %37 = vector.broadcast %36 : vector<1x384xf32> to vector<32x384xf32>
    %38 = arith.addf %34, %37 : vector<32x384xf32>
    %39 = tpu.iota {dimensions = array<i32: 0>} : vector<16x16xi32>
    %40 = tpu.iota {dimensions = array<i32: 1>} : vector<16x16xi32>
    %41 = arith.cmpi sle, %40, %39 : vector<16x16xi32>
    %42 = arith.subi %40, %39 : vector<16x16xi32>
    %43 = arith.sitofp %42 : vector<16x16xi32> to vector<16x16xf32>
    %cst_20 = arith.constant 0xFF800000 : f32
    %44 = vector.broadcast %cst_20 : f32 to vector<16x16xf32>
    %45 = arith.select %41, %43, %44 : vector<16x16xi1>, vector<16x16xf32>
    %46 = vector.extract_strided_slice %38 {offsets = [0, 0], sizes = [32, 32], strides = [1, 1]} : vector<32x384xf32> to vector<32x32xf32>
    %47 = vector.shape_cast %46 : vector<32x32xf32> to vector<2x16x32xf32>
    %48 = vector.extract_strided_slice %38 {offsets = [0, 128], sizes = [32, 32], strides = [1, 1]} : vector<32x384xf32> to vector<32x32xf32>
    %49 = vector.shape_cast %48 : vector<32x32xf32> to vector<2x16x32xf32>
    %50 = vector.extract_strided_slice %38 {offsets = [0, 256], sizes = [32, 32], strides = [1, 1]} : vector<32x384xf32> to vector<32x32xf32>
    %51 = vector.shape_cast %50 : vector<32x32xf32> to vector<2x16x32xf32>
    %52 = arith.truncf %47 : vector<2x16x32xf32> to vector<2x16x32xbf16>
    %53 = arith.truncf %49 : vector<2x16x32xf32> to vector<2x16x32xbf16>
    "tpu.trace_start"() <{level = 10 : i32, message = "bqd,bkd->bqk"}> : () -> ()
    %cst_21 = arith.constant dense<0.000000e+00> : vector<2x16x16xf32>
    %54 = tpu.matmul %52, %53, %cst_21 {dimension_numbers = #tpu.dot_dimension_numbers<[2], [2], [1], [1], [0, 0, 0, 1, 1, 1], [0], [0]>} : vector<2x16x32xbf16>, vector<2x16x32xbf16>, vector<2x16x16xf32> -> vector<2x16x16xf32>
    "tpu.trace_stop"() : () -> ()
    %cst_22 = arith.constant 0.176776692 : f32
    %55 = vector.broadcast %cst_22 : f32 to vector<2x16x16xf32>
    %56 = arith.mulf %54, %55 : vector<2x16x16xf32>
    %57 = vector.shape_cast %45 : vector<16x16xf32> to vector<1x16x16xf32>
    %cst_23 = arith.constant 2.500000e-01 : f32
    %58 = vector.broadcast %cst_23 : f32 to vector<1x16x16xf32>
    %59 = arith.mulf %58, %57 : vector<1x16x16xf32>
    %60 = vector.broadcast %59 : vector<1x16x16xf32> to vector<2x16x16xf32>
    %61 = arith.addf %56, %60 : vector<2x16x16xf32>
    %cst_24 = arith.constant dense<0xFF800000> : vector<2x16xf32>
    %62 = vector.multi_reduction <maximumf>, %61, %cst_24 [2] : vector<2x16x16xf32> to vector<2x16xf32>
    %63 = vector.shape_cast %62 : vector<2x16xf32> to vector<2x16x1xf32>
    %64 = vector.broadcast %63 : vector<2x16x1xf32> to vector<2x16x16xf32>
    %65 = arith.subf %61, %64 : vector<2x16x16xf32>
    %66 = math.exp %65 : vector<2x16x16xf32>
    %cst_25 = arith.constant dense<0.000000e+00> : vector<2x16xf32>
    %67 = vector.multi_reduction <add>, %66, %cst_25 [2] : vector<2x16x16xf32> to vector<2x16xf32>
    %68 = vector.shape_cast %67 : vector<2x16xf32> to vector<2x16x1xf32>
    %69 = tpu.reciprocal %68 {approx = true} : vector<2x16x1xf32> -> vector<2x16x1xf32>
    %70 = vector.broadcast %69 : vector<2x16x1xf32> to vector<2x16x16xf32>
    %71 = arith.mulf %66, %70 : vector<2x16x16xf32>
    %72 = arith.truncf %71 : vector<2x16x16xf32> to vector<2x16x16xbf16>
    %73 = arith.truncf %51 : vector<2x16x32xf32> to vector<2x16x32xbf16>
    "tpu.trace_start"() <{level = 10 : i32, message = "bqk,bkd->bqd"}> : () -> ()
    %cst_26 = arith.constant dense<0.000000e+00> : vector<2x16x32xf32>
    %74 = tpu.matmul %72, %73, %cst_26 {dimension_numbers = #tpu.dot_dimension_numbers<[2], [1], [1], [2], [0, 0, 0, 1, 1, 2], [0], [0]>} : vector<2x16x16xbf16>, vector<2x16x32xbf16>, vector<2x16x32xf32> -> vector<2x16x32xf32>
    "tpu.trace_stop"() : () -> ()
    %75 = vector.shape_cast %74 : vector<2x16x32xf32> to vector<32x32xf32>
    %76 = vector.extract_strided_slice %38 {offsets = [0, 32], sizes = [32, 32], strides = [1, 1]} : vector<32x384xf32> to vector<32x32xf32>
    %77 = vector.shape_cast %76 : vector<32x32xf32> to vector<2x16x32xf32>
    %78 = vector.extract_strided_slice %38 {offsets = [0, 160], sizes = [32, 32], strides = [1, 1]} : vector<32x384xf32> to vector<32x32xf32>
    %79 = vector.shape_cast %78 : vector<32x32xf32> to vector<2x16x32xf32>
    %80 = vector.extract_strided_slice %38 {offsets = [0, 288], sizes = [32, 32], strides = [1, 1]} : vector<32x384xf32> to vector<32x32xf32>
    %81 = vector.shape_cast %80 : vector<32x32xf32> to vector<2x16x32xf32>
    %82 = arith.truncf %77 : vector<2x16x32xf32> to vector<2x16x32xbf16>
    %83 = arith.truncf %79 : vector<2x16x32xf32> to vector<2x16x32xbf16>
    "tpu.trace_start"() <{level = 10 : i32, message = "bqd,bkd->bqk"}> : () -> ()
    %cst_27 = arith.constant dense<0.000000e+00> : vector<2x16x16xf32>
    %84 = tpu.matmul %82, %83, %cst_27 {dimension_numbers = #tpu.dot_dimension_numbers<[2], [2], [1], [1], [0, 0, 0, 1, 1, 1], [0], [0]>} : vector<2x16x32xbf16>, vector<2x16x32xbf16>, vector<2x16x16xf32> -> vector<2x16x16xf32>
    "tpu.trace_stop"() : () -> ()
    %cst_28 = arith.constant 0.176776692 : f32
    %85 = vector.broadcast %cst_28 : f32 to vector<2x16x16xf32>
    %86 = arith.mulf %84, %85 : vector<2x16x16xf32>
    %87 = vector.shape_cast %45 : vector<16x16xf32> to vector<1x16x16xf32>
    %cst_29 = arith.constant 6.250000e-02 : f32
    %88 = vector.broadcast %cst_29 : f32 to vector<1x16x16xf32>
    %89 = arith.mulf %88, %87 : vector<1x16x16xf32>
    %90 = vector.broadcast %89 : vector<1x16x16xf32> to vector<2x16x16xf32>
    %91 = arith.addf %86, %90 : vector<2x16x16xf32>
    %cst_30 = arith.constant dense<0xFF800000> : vector<2x16xf32>
    %92 = vector.multi_reduction <maximumf>, %91, %cst_30 [2] : vector<2x16x16xf32> to vector<2x16xf32>
    %93 = vector.shape_cast %92 : vector<2x16xf32> to vector<2x16x1xf32>
    %94 = vector.broadcast %93 : vector<2x16x1xf32> to vector<2x16x16xf32>
    %95 = arith.subf %91, %94 : vector<2x16x16xf32>
    %96 = math.exp %95 : vector<2x16x16xf32>
    %cst_31 = arith.constant dense<0.000000e+00> : vector<2x16xf32>
    %97 = vector.multi_reduction <add>, %96, %cst_31 [2] : vector<2x16x16xf32> to vector<2x16xf32>
    %98 = vector.shape_cast %97 : vector<2x16xf32> to vector<2x16x1xf32>
    %99 = tpu.reciprocal %98 {approx = true} : vector<2x16x1xf32> -> vector<2x16x1xf32>
    %100 = vector.broadcast %99 : vector<2x16x1xf32> to vector<2x16x16xf32>
    %101 = arith.mulf %96, %100 : vector<2x16x16xf32>
    %102 = arith.truncf %101 : vector<2x16x16xf32> to vector<2x16x16xbf16>
    %103 = arith.truncf %81 : vector<2x16x32xf32> to vector<2x16x32xbf16>
    "tpu.trace_start"() <{level = 10 : i32, message = "bqk,bkd->bqd"}> : () -> ()
    %cst_32 = arith.constant dense<0.000000e+00> : vector<2x16x32xf32>
    %104 = tpu.matmul %102, %103, %cst_32 {dimension_numbers = #tpu.dot_dimension_numbers<[2], [1], [1], [2], [0, 0, 0, 1, 1, 2], [0], [0]>} : vector<2x16x16xbf16>, vector<2x16x32xbf16>, vector<2x16x32xf32> -> vector<2x16x32xf32>
    "tpu.trace_stop"() : () -> ()
    %105 = vector.shape_cast %104 : vector<2x16x32xf32> to vector<32x32xf32>
    %106 = vector.extract_strided_slice %38 {offsets = [0, 64], sizes = [32, 32], strides = [1, 1]} : vector<32x384xf32> to vector<32x32xf32>
    %107 = vector.shape_cast %106 : vector<32x32xf32> to vector<2x16x32xf32>
    %108 = vector.extract_strided_slice %38 {offsets = [0, 192], sizes = [32, 32], strides = [1, 1]} : vector<32x384xf32> to vector<32x32xf32>
    %109 = vector.shape_cast %108 : vector<32x32xf32> to vector<2x16x32xf32>
    %110 = vector.extract_strided_slice %38 {offsets = [0, 320], sizes = [32, 32], strides = [1, 1]} : vector<32x384xf32> to vector<32x32xf32>
    %111 = vector.shape_cast %110 : vector<32x32xf32> to vector<2x16x32xf32>
    %112 = arith.truncf %107 : vector<2x16x32xf32> to vector<2x16x32xbf16>
    %113 = arith.truncf %109 : vector<2x16x32xf32> to vector<2x16x32xbf16>
    "tpu.trace_start"() <{level = 10 : i32, message = "bqd,bkd->bqk"}> : () -> ()
    %cst_33 = arith.constant dense<0.000000e+00> : vector<2x16x16xf32>
    %114 = tpu.matmul %112, %113, %cst_33 {dimension_numbers = #tpu.dot_dimension_numbers<[2], [2], [1], [1], [0, 0, 0, 1, 1, 1], [0], [0]>} : vector<2x16x32xbf16>, vector<2x16x32xbf16>, vector<2x16x16xf32> -> vector<2x16x16xf32>
    "tpu.trace_stop"() : () -> ()
    %cst_34 = arith.constant 0.176776692 : f32
    %115 = vector.broadcast %cst_34 : f32 to vector<2x16x16xf32>
    %116 = arith.mulf %114, %115 : vector<2x16x16xf32>
    %117 = vector.shape_cast %45 : vector<16x16xf32> to vector<1x16x16xf32>
    %cst_35 = arith.constant 1.562500e-02 : f32
    %118 = vector.broadcast %cst_35 : f32 to vector<1x16x16xf32>
    %119 = arith.mulf %118, %117 : vector<1x16x16xf32>
    %120 = vector.broadcast %119 : vector<1x16x16xf32> to vector<2x16x16xf32>
    %121 = arith.addf %116, %120 : vector<2x16x16xf32>
    %cst_36 = arith.constant dense<0xFF800000> : vector<2x16xf32>
    %122 = vector.multi_reduction <maximumf>, %121, %cst_36 [2] : vector<2x16x16xf32> to vector<2x16xf32>
    %123 = vector.shape_cast %122 : vector<2x16xf32> to vector<2x16x1xf32>
    %124 = vector.broadcast %123 : vector<2x16x1xf32> to vector<2x16x16xf32>
    %125 = arith.subf %121, %124 : vector<2x16x16xf32>
    %126 = math.exp %125 : vector<2x16x16xf32>
    %cst_37 = arith.constant dense<0.000000e+00> : vector<2x16xf32>
    %127 = vector.multi_reduction <add>, %126, %cst_37 [2] : vector<2x16x16xf32> to vector<2x16xf32>
    %128 = vector.shape_cast %127 : vector<2x16xf32> to vector<2x16x1xf32>
    %129 = tpu.reciprocal %128 {approx = true} : vector<2x16x1xf32> -> vector<2x16x1xf32>
    %130 = vector.broadcast %129 : vector<2x16x1xf32> to vector<2x16x16xf32>
    %131 = arith.mulf %126, %130 : vector<2x16x16xf32>
    %132 = arith.truncf %131 : vector<2x16x16xf32> to vector<2x16x16xbf16>
    %133 = arith.truncf %111 : vector<2x16x32xf32> to vector<2x16x32xbf16>
    "tpu.trace_start"() <{level = 10 : i32, message = "bqk,bkd->bqd"}> : () -> ()
    %cst_38 = arith.constant dense<0.000000e+00> : vector<2x16x32xf32>
    %134 = tpu.matmul %132, %133, %cst_38 {dimension_numbers = #tpu.dot_dimension_numbers<[2], [1], [1], [2], [0, 0, 0, 1, 1, 2], [0], [0]>} : vector<2x16x16xbf16>, vector<2x16x32xbf16>, vector<2x16x32xf32> -> vector<2x16x32xf32>
    "tpu.trace_stop"() : () -> ()
    %135 = vector.shape_cast %134 : vector<2x16x32xf32> to vector<32x32xf32>
    %136 = vector.extract_strided_slice %38 {offsets = [0, 96], sizes = [32, 32], strides = [1, 1]} : vector<32x384xf32> to vector<32x32xf32>
    %137 = vector.shape_cast %136 : vector<32x32xf32> to vector<2x16x32xf32>
    %138 = vector.extract_strided_slice %38 {offsets = [0, 224], sizes = [32, 32], strides = [1, 1]} : vector<32x384xf32> to vector<32x32xf32>
    %139 = vector.shape_cast %138 : vector<32x32xf32> to vector<2x16x32xf32>
    %140 = vector.extract_strided_slice %38 {offsets = [0, 352], sizes = [32, 32], strides = [1, 1]} : vector<32x384xf32> to vector<32x32xf32>
    %141 = vector.shape_cast %140 : vector<32x32xf32> to vector<2x16x32xf32>
    %142 = arith.truncf %137 : vector<2x16x32xf32> to vector<2x16x32xbf16>
    %143 = arith.truncf %139 : vector<2x16x32xf32> to vector<2x16x32xbf16>
    "tpu.trace_start"() <{level = 10 : i32, message = "bqd,bkd->bqk"}> : () -> ()
    %cst_39 = arith.constant dense<0.000000e+00> : vector<2x16x16xf32>
    %144 = tpu.matmul %142, %143, %cst_39 {dimension_numbers = #tpu.dot_dimension_numbers<[2], [2], [1], [1], [0, 0, 0, 1, 1, 1], [0], [0]>} : vector<2x16x32xbf16>, vector<2x16x32xbf16>, vector<2x16x16xf32> -> vector<2x16x16xf32>
    "tpu.trace_stop"() : () -> ()
    %cst_40 = arith.constant 0.176776692 : f32
    %145 = vector.broadcast %cst_40 : f32 to vector<2x16x16xf32>
    %146 = arith.mulf %144, %145 : vector<2x16x16xf32>
    %147 = vector.shape_cast %45 : vector<16x16xf32> to vector<1x16x16xf32>
    %cst_41 = arith.constant 3.906250e-03 : f32
    %148 = vector.broadcast %cst_41 : f32 to vector<1x16x16xf32>
    %149 = arith.mulf %148, %147 : vector<1x16x16xf32>
    %150 = vector.broadcast %149 : vector<1x16x16xf32> to vector<2x16x16xf32>
    %151 = arith.addf %146, %150 : vector<2x16x16xf32>
    %cst_42 = arith.constant dense<0xFF800000> : vector<2x16xf32>
    %152 = vector.multi_reduction <maximumf>, %151, %cst_42 [2] : vector<2x16x16xf32> to vector<2x16xf32>
    %153 = vector.shape_cast %152 : vector<2x16xf32> to vector<2x16x1xf32>
    %154 = vector.broadcast %153 : vector<2x16x1xf32> to vector<2x16x16xf32>
    %155 = arith.subf %151, %154 : vector<2x16x16xf32>
    %156 = math.exp %155 : vector<2x16x16xf32>
    %cst_43 = arith.constant dense<0.000000e+00> : vector<2x16xf32>
    %157 = vector.multi_reduction <add>, %156, %cst_43 [2] : vector<2x16x16xf32> to vector<2x16xf32>
    %158 = vector.shape_cast %157 : vector<2x16xf32> to vector<2x16x1xf32>
    %159 = tpu.reciprocal %158 {approx = true} : vector<2x16x1xf32> -> vector<2x16x1xf32>
    %160 = vector.broadcast %159 : vector<2x16x1xf32> to vector<2x16x16xf32>
    %161 = arith.mulf %156, %160 : vector<2x16x16xf32>
    %162 = arith.truncf %161 : vector<2x16x16xf32> to vector<2x16x16xbf16>
    %163 = arith.truncf %141 : vector<2x16x32xf32> to vector<2x16x32xbf16>
    "tpu.trace_start"() <{level = 10 : i32, message = "bqk,bkd->bqd"}> : () -> ()
    %cst_44 = arith.constant dense<0.000000e+00> : vector<2x16x32xf32>
    %164 = tpu.matmul %162, %163, %cst_44 {dimension_numbers = #tpu.dot_dimension_numbers<[2], [1], [1], [2], [0, 0, 0, 1, 1, 2], [0], [0]>} : vector<2x16x16xbf16>, vector<2x16x32xbf16>, vector<2x16x32xf32> -> vector<2x16x32xf32>
    "tpu.trace_stop"() : () -> ()
    %165 = vector.shape_cast %164 : vector<2x16x32xf32> to vector<32x32xf32>
    %166 = tpu.concatenate %75, %105, %135, %165 in 1 : vector<32x32xf32>, vector<32x32xf32>, vector<32x32xf32>, vector<32x32xf32> -> vector<32x128xf32>
    %167 = arith.truncf %166 : vector<32x128xf32> to vector<32x128xbf16>
    %c0_45 = arith.constant 0 : index
    %c0_46 = arith.constant 0 : index
    %c0_47 = arith.constant 0 : index
    %168 = vector.load %arg7[%c0_45, %c0_46, %c0_47] : memref<1x128x128xbf16, #tpu.memory_space<vmem>>, vector<1x128x128xbf16>
    %169 = vector.shape_cast %168 : vector<1x128x128xbf16> to vector<128x128xbf16>
    %cst_48 = arith.constant dense<0.000000e+00> : vector<32x128xf32>
    %170 = tpu.matmul %167, %169, %cst_48 {dimension_numbers = #tpu.dot_dimension_numbers<[1], [0], [0], [1], [0, 0, 1, 1], [], []>} : vector<32x128xbf16>, vector<128x128xbf16>, vector<32x128xf32> -> vector<32x128xf32>
    %c0_49 = arith.constant 0 : index
    %c0_50 = arith.constant 0 : index
    %c0_51 = arith.constant 0 : index
    %171 = vector.load %arg8[%c0_49, %c0_50, %c0_51] : memref<1x1x128xf32, #tpu.memory_space<vmem>>, vector<1x1x128xf32>
    %172 = vector.shape_cast %171 : vector<1x1x128xf32> to vector<1x128xf32>
    %173 = vector.broadcast %172 : vector<1x128xf32> to vector<32x128xf32>
    %174 = arith.addf %170, %173 : vector<32x128xf32>
    %175 = arith.addf %4, %174 : vector<32x128xf32>
    %c0_52 = arith.constant 0 : index
    %c0_53 = arith.constant 0 : index
    %c0_54 = arith.constant 0 : index
    %176 = vector.load %arg9[%c0_52, %c0_53, %c0_54] : memref<1x1x128xf32, #tpu.memory_space<vmem>>, vector<1x1x128xf32>
    %177 = vector.shape_cast %176 : vector<1x1x128xf32> to vector<1x128xf32>
    %c0_55 = arith.constant 0 : index
    %c0_56 = arith.constant 0 : index
    %c0_57 = arith.constant 0 : index
    %178 = vector.load %arg10[%c0_55, %c0_56, %c0_57] : memref<1x1x128xf32, #tpu.memory_space<vmem>>, vector<1x1x128xf32>
    %179 = vector.shape_cast %178 : vector<1x1x128xf32> to vector<1x128xf32>
    %cst_58 = arith.constant dense<0.000000e+00> : vector<32xf32>
    %180 = vector.multi_reduction <add>, %175, %cst_58 [1] : vector<32x128xf32> to vector<32xf32>
    %181 = vector.shape_cast %180 : vector<32xf32> to vector<32x1xf32>
    %cst_59 = arith.constant 1.280000e+02 : f32
    %182 = vector.broadcast %cst_59 : f32 to vector<32x1xf32>
    %183 = arith.divf %181, %182 : vector<32x1xf32>
    %184 = vector.broadcast %183 : vector<32x1xf32> to vector<32x128xf32>
    %185 = arith.subf %175, %184 : vector<32x128xf32>
    %186 = arith.mulf %185, %185 : vector<32x128xf32>
    %cst_60 = arith.constant dense<0.000000e+00> : vector<32xf32>
    %187 = vector.multi_reduction <add>, %186, %cst_60 [1] : vector<32x128xf32> to vector<32xf32>
    %188 = vector.shape_cast %187 : vector<32xf32> to vector<32x1xf32>
    %cst_61 = arith.constant 1.280000e+02 : f32
    %189 = vector.broadcast %cst_61 : f32 to vector<32x1xf32>
    %190 = arith.divf %188, %189 : vector<32x1xf32>
    %191 = vector.broadcast %183 : vector<32x1xf32> to vector<32x128xf32>
    %192 = arith.subf %175, %191 : vector<32x128xf32>
    %cst_62 = arith.constant 9.99999974E-6 : f32
    %193 = vector.broadcast %cst_62 : f32 to vector<32x1xf32>
    %194 = arith.addf %190, %193 : vector<32x1xf32>
    %195 = math.rsqrt %194 : vector<32x1xf32>
    %196 = vector.broadcast %195 : vector<32x1xf32> to vector<32x128xf32>
    %197 = arith.mulf %192, %196 : vector<32x128xf32>
    %198 = vector.broadcast %177 : vector<1x128xf32> to vector<32x128xf32>
    %199 = arith.mulf %197, %198 : vector<32x128xf32>
    %200 = vector.broadcast %179 : vector<1x128xf32> to vector<32x128xf32>
    %201 = arith.addf %199, %200 : vector<32x128xf32>
    %202 = arith.truncf %201 : vector<32x128xf32> to vector<32x128xbf16>
    %c0_63 = arith.constant 0 : index
    %c0_64 = arith.constant 0 : index
    %c0_65 = arith.constant 0 : index
    %203 = vector.load %arg11[%c0_63, %c0_64, %c0_65] : memref<1x128x512xbf16, #tpu.memory_space<vmem>>, vector<1x128x512xbf16>
    %204 = vector.shape_cast %203 : vector<1x128x512xbf16> to vector<128x512xbf16>
    %cst_66 = arith.constant dense<0.000000e+00> : vector<32x512xf32>
    %205 = tpu.matmul %202, %204, %cst_66 {dimension_numbers = #tpu.dot_dimension_numbers<[1], [0], [0], [1], [0, 0, 1, 1], [], []>} : vector<32x128xbf16>, vector<128x512xbf16>, vector<32x512xf32> -> vector<32x512xf32>
    %c0_67 = arith.constant 0 : index
    %c0_68 = arith.constant 0 : index
    %c0_69 = arith.constant 0 : index
    %206 = vector.load %arg12[%c0_67, %c0_68, %c0_69] : memref<1x1x512xf32, #tpu.memory_space<vmem>>, vector<1x1x512xf32>
    %207 = vector.shape_cast %206 : vector<1x1x512xf32> to vector<1x512xf32>
    %208 = vector.broadcast %207 : vector<1x512xf32> to vector<32x512xf32>
    %209 = arith.addf %205, %208 : vector<32x512xf32>
    %cst_70 = arith.constant 5.000000e-01 : f32
    %210 = vector.broadcast %cst_70 : f32 to vector<32x512xf32>
    %211 = arith.mulf %210, %209 : vector<32x512xf32>
    %cst_71 = arith.constant 0.707106769 : f32
    %212 = vector.broadcast %cst_71 : f32 to vector<32x512xf32>
    %213 = arith.mulf %209, %212 : vector<32x512xf32>
    %214 = math.absf %213 : vector<32x512xf32>
    %cst_72 = arith.constant 0.327591091 : f32
    %215 = vector.broadcast %cst_72 : f32 to vector<32x512xf32>
    %216 = arith.mulf %215, %214 : vector<32x512xf32>
    %cst_73 = arith.constant 1.000000e+00 : f32
    %217 = vector.broadcast %cst_73 : f32 to vector<32x512xf32>
    %218 = arith.addf %217, %216 : vector<32x512xf32>
    %cst_74 = arith.constant 1.000000e+00 : f32
    %219 = vector.broadcast %cst_74 : f32 to vector<32x512xf32>
    %220 = arith.divf %219, %218 : vector<32x512xf32>
    %cst_75 = arith.constant 1.06140542 : f32
    %221 = vector.broadcast %cst_75 : f32 to vector<32x512xf32>
    %222 = arith.mulf %221, %220 : vector<32x512xf32>
    %cst_76 = arith.constant -1.45315206 : f32
    %223 = vector.broadcast %cst_76 : f32 to vector<32x512xf32>
    %224 = arith.addf %222, %223 : vector<32x512xf32>
    %225 = arith.mulf %224, %220 : vector<32x512xf32>
    %cst_77 = arith.constant 1.42141378 : f32
    %226 = vector.broadcast %cst_77 : f32 to vector<32x512xf32>
    %227 = arith.addf %225, %226 : vector<32x512xf32>
    %228 = arith.mulf %227, %220 : vector<32x512xf32>
    %cst_78 = arith.constant -0.284496725 : f32
    %229 = vector.broadcast %cst_78 : f32 to vector<32x512xf32>
    %230 = arith.addf %228, %229 : vector<32x512xf32>
    %231 = arith.mulf %230, %220 : vector<32x512xf32>
    %cst_79 = arith.constant 0.254829586 : f32
    %232 = vector.broadcast %cst_79 : f32 to vector<32x512xf32>
    %233 = arith.addf %231, %232 : vector<32x512xf32>
    %234 = arith.mulf %233, %220 : vector<32x512xf32>
    %cst_80 = arith.constant 0.000000e+00 : f32
    %235 = vector.broadcast %cst_80 : f32 to vector<32x512xf32>
    %236 = arith.subf %235, %214 : vector<32x512xf32>
    %237 = arith.mulf %236, %214 : vector<32x512xf32>
    %238 = math.exp %237 : vector<32x512xf32>
    %239 = arith.mulf %234, %238 : vector<32x512xf32>
    %cst_81 = arith.constant 1.000000e+00 : f32
    %240 = vector.broadcast %cst_81 : f32 to vector<32x512xf32>
    %241 = arith.subf %240, %239 : vector<32x512xf32>
    %cst_82 = arith.constant 0.000000e+00 : f32
    %242 = vector.broadcast %cst_82 : f32 to vector<32x512xf32>
    %243 = arith.cmpf oge, %213, %242 : vector<32x512xf32>
    %cst_83 = arith.constant 0.000000e+00 : f32
    %244 = vector.broadcast %cst_83 : f32 to vector<32x512xf32>
    %245 = arith.subf %244, %241 : vector<32x512xf32>
    %246 = arith.select %243, %241, %245 : vector<32x512xi1>, vector<32x512xf32>
    %cst_84 = arith.constant 1.000000e+00 : f32
    %247 = vector.broadcast %cst_84 : f32 to vector<32x512xf32>
    %248 = arith.addf %247, %246 : vector<32x512xf32>
    %249 = arith.mulf %211, %248 : vector<32x512xf32>
    %250 = arith.truncf %249 : vector<32x512xf32> to vector<32x512xbf16>
    %c0_85 = arith.constant 0 : index
    %c0_86 = arith.constant 0 : index
    %c0_87 = arith.constant 0 : index
    %251 = vector.load %arg13[%c0_85, %c0_86, %c0_87] : memref<1x512x128xbf16, #tpu.memory_space<vmem>>, vector<1x512x128xbf16>
    %252 = vector.shape_cast %251 : vector<1x512x128xbf16> to vector<512x128xbf16>
    %cst_88 = arith.constant dense<0.000000e+00> : vector<32x128xf32>
    %253 = tpu.matmul %250, %252, %cst_88 {dimension_numbers = #tpu.dot_dimension_numbers<[1], [0], [0], [1], [0, 0, 1, 1], [], []>} : vector<32x512xbf16>, vector<512x128xbf16>, vector<32x128xf32> -> vector<32x128xf32>
    %c0_89 = arith.constant 0 : index
    %c0_90 = arith.constant 0 : index
    %c0_91 = arith.constant 0 : index
    %254 = vector.load %arg14[%c0_89, %c0_90, %c0_91] : memref<1x1x128xf32, #tpu.memory_space<vmem>>, vector<1x1x128xf32>
    %255 = vector.shape_cast %254 : vector<1x1x128xf32> to vector<1x128xf32>
    %256 = vector.broadcast %255 : vector<1x128xf32> to vector<32x128xf32>
    %257 = arith.addf %253, %256 : vector<32x128xf32>
    %258 = arith.addf %175, %257 : vector<32x128xf32>
    %c1_i32 = arith.constant 1 : i32
    %259 = arith.cmpi slt, %arg1, %c1_i32 : i32
    %260 = arith.extui %259 : i1 to i32
    %c0_i32_92 = arith.constant 0 : i32
    %261 = arith.cmpi ne, %260, %c0_i32_92 : i32
    scf.if %261 {
      %265 = vector.shape_cast %258 : vector<32x128xf32> to vector<2x16x128xf32>
      %c0_95 = arith.constant 0 : index
      %c0_96 = arith.constant 0 : index
      %c0_97 = arith.constant 0 : index
      %266 = vector.load %arg17[%c0_95, %c0_96, %c0_97] : memref<2x16x128xf32, #tpu.memory_space<vmem>>, vector<2x16x128xf32>
      tpu.vector_store %arg17[%c0_95, %c0_96, %c0_97], %265 {strides = array<i32>} : memref<2x16x128xf32, #tpu.memory_space<vmem>>, vector<2x16x128xf32>,
    } else {
    }
    %c1_i32_93 = arith.constant 1 : i32
    %262 = arith.cmpi eq, %arg1, %c1_i32_93 : i32
    %263 = arith.extui %262 : i1 to i32
    %c0_i32_94 = arith.constant 0 : i32
    %264 = arith.cmpi ne, %263, %c0_i32_94 : i32
    scf.if %264 {
      %c0_95 = arith.constant 0 : index
      %c0_96 = arith.constant 0 : index
      %265 = vector.load %arg15[%c0_95, %c0_96] : memref<1x128xf32, #tpu.memory_space<vmem>>, vector<1x128xf32>
      %c0_97 = arith.constant 0 : index
      %c0_98 = arith.constant 0 : index
      %266 = vector.load %arg16[%c0_97, %c0_98] : memref<1x128xf32, #tpu.memory_space<vmem>>, vector<1x128xf32>
      %cst_99 = arith.constant dense<0.000000e+00> : vector<32xf32>
      %267 = vector.multi_reduction <add>, %258, %cst_99 [1] : vector<32x128xf32> to vector<32xf32>
      %268 = vector.shape_cast %267 : vector<32xf32> to vector<32x1xf32>
      %cst_100 = arith.constant 1.280000e+02 : f32
      %269 = vector.broadcast %cst_100 : f32 to vector<32x1xf32>
      %270 = arith.divf %268, %269 : vector<32x1xf32>
      %271 = vector.broadcast %270 : vector<32x1xf32> to vector<32x128xf32>
      %272 = arith.subf %258, %271 : vector<32x128xf32>
      %273 = arith.mulf %272, %272 : vector<32x128xf32>
      %cst_101 = arith.constant dense<0.000000e+00> : vector<32xf32>
      %274 = vector.multi_reduction <add>, %273, %cst_101 [1] : vector<32x128xf32> to vector<32xf32>
      %275 = vector.shape_cast %274 : vector<32xf32> to vector<32x1xf32>
      %cst_102 = arith.constant 1.280000e+02 : f32
      %276 = vector.broadcast %cst_102 : f32 to vector<32x1xf32>
      %277 = arith.divf %275, %276 : vector<32x1xf32>
      %278 = vector.broadcast %270 : vector<32x1xf32> to vector<32x128xf32>
      %279 = arith.subf %258, %278 : vector<32x128xf32>
      %cst_103 = arith.constant 9.99999974E-6 : f32
      %280 = vector.broadcast %cst_103 : f32 to vector<32x1xf32>
      %281 = arith.addf %277, %280 : vector<32x1xf32>
      %282 = math.rsqrt %281 : vector<32x1xf32>
      %283 = vector.broadcast %282 : vector<32x1xf32> to vector<32x128xf32>
      %284 = arith.mulf %279, %283 : vector<32x128xf32>
      %285 = vector.broadcast %265 : vector<1x128xf32> to vector<32x128xf32>
      %286 = arith.mulf %284, %285 : vector<32x128xf32>
      %287 = vector.broadcast %266 : vector<1x128xf32> to vector<32x128xf32>
      %288 = arith.addf %286, %287 : vector<32x128xf32>
      %289 = vector.shape_cast %288 : vector<32x128xf32> to vector<2x16x128xf32>
      %c0_104 = arith.constant 0 : index
      %c0_105 = arith.constant 0 : index
      %c0_106 = arith.constant 0 : index
      %290 = vector.load %arg17[%c0_104, %c0_105, %c0_106] : memref<2x16x128xf32, #tpu.memory_space<vmem>>, vector<2x16x128xf32>
      tpu.vector_store %arg17[%c0_104, %c0_105, %c0_106], %289 {strides = array<i32>} : memref<2x16x128xf32, #tpu.memory_space<vmem>>, vector<2x16x128xf32>,
    } else {
    }
    return
  }
  func.func @transform_0(%arg0: i32, %arg1: i32) -> (i32, i32, i32) {
    %c0_i32 = arith.constant 0 : i32
    %c0_i32_0 = arith.constant 0 : i32
    %c0_i32_1 = arith.constant 0 : i32
    return %arg0, %c0_i32, %c0_i32_0 : i32, i32, i32
  }
  func.func @transform_1(%arg0: i32, %arg1: i32) -> (i32, i32, i32) {
    %c0_i32 = arith.constant 0 : i32
    %c0_i32_0 = arith.constant 0 : i32
    %c0_i32_1 = arith.constant 0 : i32
    return %arg1, %c0_i32, %c0_i32_0 : i32, i32, i32
  }
  func.func @transform_2(%arg0: i32, %arg1: i32) -> (i32, i32, i32) {
    %c0_i32 = arith.constant 0 : i32
    %c0_i32_0 = arith.constant 0 : i32
    %c0_i32_1 = arith.constant 0 : i32
    return %arg1, %c0_i32, %c0_i32_0 : i32, i32, i32
  }
  func.func @transform_3(%arg0: i32, %arg1: i32) -> (i32, i32, i32) {
    %c0_i32 = arith.constant 0 : i32
    %c0_i32_0 = arith.constant 0 : i32
    %c0_i32_1 = arith.constant 0 : i32
    return %arg1, %c0_i32, %c0_i32_0 : i32, i32, i32
  }
  func.func @transform_4(%arg0: i32, %arg1: i32) -> (i32, i32, i32) {
    %c0_i32 = arith.constant 0 : i32
    %c0_i32_0 = arith.constant 0 : i32
    %c0_i32_1 = arith.constant 0 : i32
    return %arg1, %c0_i32, %c0_i32_0 : i32, i32, i32
  }
  func.func @transform_5(%arg0: i32, %arg1: i32) -> (i32, i32, i32) {
    %c0_i32 = arith.constant 0 : i32
    %c0_i32_0 = arith.constant 0 : i32
    %c0_i32_1 = arith.constant 0 : i32
    return %arg1, %c0_i32, %c0_i32_0 : i32, i32, i32
  }
  func.func @transform_6(%arg0: i32, %arg1: i32) -> (i32, i32, i32) {
    %c0_i32 = arith.constant 0 : i32
    %c0_i32_0 = arith.constant 0 : i32
    %c0_i32_1 = arith.constant 0 : i32
    return %arg1, %c0_i32, %c0_i32_0 : i32, i32, i32
  }
  func.func @transform_7(%arg0: i32, %arg1: i32) -> (i32, i32, i32) {
    %c0_i32 = arith.constant 0 : i32
    %c0_i32_0 = arith.constant 0 : i32
    %c0_i32_1 = arith.constant 0 : i32
    return %arg1, %c0_i32, %c0_i32_0 : i32, i32, i32
  }
  func.func @transform_8(%arg0: i32, %arg1: i32) -> (i32, i32, i32) {
    %c0_i32 = arith.constant 0 : i32
    %c0_i32_0 = arith.constant 0 : i32
    %c0_i32_1 = arith.constant 0 : i32
    return %arg1, %c0_i32, %c0_i32_0 : i32, i32, i32
  }
  func.func @transform_9(%arg0: i32, %arg1: i32) -> (i32, i32, i32) {
    %c0_i32 = arith.constant 0 : i32
    %c0_i32_0 = arith.constant 0 : i32
    %c0_i32_1 = arith.constant 0 : i32
    return %arg1, %c0_i32, %c0_i32_0 : i32, i32, i32
  }
  func.func @transform_10(%arg0: i32, %arg1: i32) -> (i32, i32, i32) {
    %c0_i32 = arith.constant 0 : i32
    %c0_i32_0 = arith.constant 0 : i32
    %c0_i32_1 = arith.constant 0 : i32
    return %arg1, %c0_i32, %c0_i32_0 : i32, i32, i32
  }
  func.func @transform_11(%arg0: i32, %arg1: i32) -> (i32, i32, i32) {
    %c0_i32 = arith.constant 0 : i32
    %c0_i32_0 = arith.constant 0 : i32
    %c0_i32_1 = arith.constant 0 : i32
    return %arg1, %c0_i32, %c0_i32_0 : i32, i32, i32
  }
  func.func @transform_12(%arg0: i32, %arg1: i32) -> (i32, i32, i32) {
    %c0_i32 = arith.constant 0 : i32
    %c0_i32_0 = arith.constant 0 : i32
    %c0_i32_1 = arith.constant 0 : i32
    return %arg1, %c0_i32, %c0_i32_0 : i32, i32, i32
  }
  func.func @transform_13(%arg0: i32, %arg1: i32) -> (i32, i32) {
    %c0_i32 = arith.constant 0 : i32
    %c0_i32_0 = arith.constant 0 : i32
    %c0_i32_1 = arith.constant 0 : i32
    return %c0_i32, %c0_i32_0 : i32, i32
  }
  func.func @transform_14(%arg0: i32, %arg1: i32) -> (i32, i32) {
    %c0_i32 = arith.constant 0 : i32
    %c0_i32_0 = arith.constant 0 : i32
    %c0_i32_1 = arith.constant 0 : i32
    return %c0_i32, %c0_i32_0 : i32, i32
  }
  func.func @transform_15(%arg0: i32, %arg1: i32) -> (i32, i32, i32) {
    %c0_i32 = arith.constant 0 : i32
    %c0_i32_0 = arith.constant 0 : i32
    %c0_i32_1 = arith.constant 0 : i32
    return %arg0, %c0_i32, %c0_i32_0 : i32, i32, i32
  }
}

</mosaic_0001>

<bundles_post_ra>
// kernel: tpu_custom_call.1
= control target key start
LH: loop header
LB: loop body
LE: loop exit
PB: predicated region body
PF: predicated region fallthrough
CT: control target
= control target key end

     0   :  { %s6737_s0 = inlined_call_operand.hbm [shape: f32[2,16,128], index: 0, kind: input, shape index: {}]   ;;  %s6738_s1 = inlined_call_operand.hbm [shape: f32[2,1,128], index: 1, kind: input, shape index: {}]   ;;  %s6739_s2 = inlined_call_operand.hbm [shape: f32[2,1,128], index: 2, kind: input, shape index: {}]   ;;  %s6740_s3 = inlined_call_operand.hbm [shape: bf16[2,128,384], index: 3, kind: input, shape index: {}]   ;;  %s6741_s4 = inlined_call_operand.hbm [shape: f32[2,1,384], index: 4, kind: input, shape index: {}]   ;;  %s6742_s5 = inlined_call_operand.hbm [shape: bf16[2,128,128], index: 5, kind: input, shape index: {}]   ;;  %s6743_s6 = inlined_call_operand.hbm [shape: f32[2,1,128], index: 6, kind: input, shape index: {}]   ;;  %s6744_s7 = inlined_call_operand.hbm [shape: f32[2,1,128], index: 7, kind: input, shape index: {}]   ;;  %s6745_s8 = inlined_call_operand.hbm [shape: f32[2,1,128], index: 8, kind: input, shape index: {}]   ;;  %s6746_s9 = inlined_call_operand.hbm [shape: bf16[2,128,512], index: 9, kind: input, shape index: {}]   ;;  %s6747_s10 = inlined_call_operand.vmem [shape: f32[2,1,512], index: 10, kind: input, shape index: {}]   ;;  %s6748_s11 = inlined_call_operand.hbm [shape: bf16[2,512,128], index: 11, kind: input, shape index: {}]   ;;  %s6749_s12 = inlined_call_operand.vmem [shape: f32[2,1,128], index: 12, kind: input, shape index: {}]   ;;  %s6750_s13 = inlined_call_operand.vmem [shape: f32[1,128], index: 13, kind: input, shape index: {}]   ;;  %s6751_s14 = inlined_call_operand.vmem [shape: f32[1,128], index: 14, kind: input, shape index: {}]   ;;  %s6752_s15 = inlined_call_operand.hbm [shape: f32[2,16,128], index: 15, kind: output, shape index: {}]  }
   0x1   :  { %6774 = sst [smem:[#allocation42_spill]] %s6737_s0 }
   0x2   :  { %6775 = sst [smem:[#allocation43_spill]] %s6738_s1 }
   0x3   :  { %6776 = sst [smem:[#allocation44_spill]] %s6739_s2 }
   0x4   :  { %6777 = sst [smem:[#allocation45_spill]] %s6740_s3 }
   0x5   :  { %6778 = sst [smem:[#allocation46_spill]] %s6741_s4 }
   0x6   :  { %6779 = sst [smem:[#allocation47_spill]] %s6745_s8 }
   0x7   :  { %6780 = sst [smem:[#allocation48_spill]] %s6747_s10 }
   0x8   :  { %6781 = sst [smem:[#allocation49_spill]] %s6749_s12 }
   0x9   :  { %6782 = sst [smem:[#allocation50_spill]] %s6750_s13 }
   0xa   :  { %6783 = sst [smem:[#allocation51_spill]] %s6751_s14 }
   0xb   :  { %6784 = sst [smem:[#allocation52_spill]] %s6752_s15 }
   0xc   :  { %20 = vsyncpa [#allocation3], 0 }
   0xd   :  { %21 = vsyncpa [#allocation6], 0 }
   0xe   :  { %23 = vsyncpa [#allocation6 + $0x1], 0 }
   0xf   :  { %24 = vsyncpa [#allocation9], 0 }
  0x10   :  { %26 = vsyncpa [#allocation9 + $0x1], 0 }
  0x11   :  { %27 = vsyncpa [#allocation12], 0 }
  0x12   :  { %29 = vsyncpa [#allocation12 + $0x1], 0 }
  0x13   :  { %30 = vsyncpa [#allocation15], 0 }
  0x14   :  { %32 = vsyncpa [#allocation15 + $0x1], 0 }
  0x15   :  { %33 = vsyncpa [#allocation18], 0 }
  0x16   :  { %35 = vsyncpa [#allocation18 + $0x1], 0 }
  0x17   :  { %36 = vsyncpa [#allocation4], 0  ;;  %s5224_s18 = smov 0   ;;  %s5226_s19 = smov 0  }
  0x18   :  { %s5228_s20 = smov 0   ;;  %s5230_s21 = smov 0  }
  0x19   :  { %s5232_s22 = smov 0   ;;  %s5234_s23 = smov 0  }
  0x1a LB: > { %6785 = sst [smem:[#allocation28_spill]] %s5114_s20  ;;  %s51_s24 = sadd.s32 1, %s5122_s22  ;;  %s5126_s23 = sphi %s5234_s23, %s42_s23   ;;  %s5122_s22 = sphi %s5232_s22, %s6865_s22   ;;  %s5118_s21 = sphi %s5230_s21, %s6864_s21   ;;  %s5114_s20 = sphi %s5228_s20, %s6860_s20   ;;  %s5110_s19 = sphi %s5226_s19, %s6863_s19   ;;  %s5106_s18 = sphi %s5224_s18, %s6862_s18  }
  0x1b   : > { %6786 = sst [smem:[#allocation29_spill]] %s5118_s21  ;;  %s87_s25 = sadd.s32 1, %s5114_s20 }
  0x1c   : > { %p52_p0 = scmp.ge.s32.totalorder %s51_s24, 2  ;;  %p94_p1 = scmp.ne.s32.totalorder %s5114_s20, %s5110_s19 }
  0x1d   : > { %p95_p2 = scmp.eq.s32.totalorder %s5126_s23, 0  ;;  %p4430_p4 = scmp.lt.s32.totalorder %s5126_s23, 2 }
  0x1e   : > { %s6867_s24 = smov (%p52_p0, %s51_s24), 0  ;;  %s5269_s28 = sand.u32 1, %s5126_s23  }
  0x1f   : > { %6787 = sst [smem:[#allocation30_spill]] %s6867_s24  ;;  %p5261_p3 = por %p95_p2, %p94_p1 }
  0x20   : > { %s84_s27 = ssub.s32 %s5122_s22, %s6867_s24  ;;  %s5272_s29 = sand.u32 1, %s5114_s20  }
  0x21   : > { %p85_p5 = scmp.eq.s32.totalorder %s84_s27, 0  ;;  %s6789_s1 = sld [smem:[#allocation43_spill]] }
  0x22   : > { %s505_s13 = scalar_lea.vmem [#allocation5], %s5272_s29  ;;  %p5284_p6 = pnand %p4430_p4, %p5261_p3 }
  0x23   : > { %s5279_s15 = scalar_select %p85_p5, %s5114_s20, %s87_s25  }
  0x24   : > { %s512_s24 = sshll.u32 %s505_s13, 4  ;;  %s4360_s30 = smul.u32 192, %s5272_s29  ;;  %s513_s24 = int_to_ptr.vmem [resolvable:$true] %s512_s24 }
  0x25   : > { %6790 = sst [smem:[#allocation31_spill]] %s5279_s15  ;;  %s4361_s16 = smul.u32 192, %s5122_s22 }
  0x26   : > { %s6756_s25 = scalar_lea.sflag [#allocation6], %s5269_s28  ;;  %s6792_s3 = sld [smem:[#allocation45_spill]] }
  0x27   : > { %s508_s17 = scalar_lea.hbm %s6789_s1, %s5122_s22  ;;  %s540_s26 = scalar_lea.vmem [#allocation8], %s4360_s30 }
  0x28   : > { %s510_s14 = sshll.u32 %s508_s17, 4  ;;  %s548_s20 = sshll.u32 %s540_s26, 4  ;;  %s511_s14 = int_to_ptr.hbm [resolvable:$true] %s510_s14  ;;  %s549_s20 = int_to_ptr.vmem [resolvable:$true] %s548_s20 }
  0x29   : > { %4401 = dma.hbm_to_vmem [thread:$0]  (!%p5284_p6), %s511_s14, 16, %s513_s24, %s6756_s25  }
  0x2a   : > { %s6762_s10 = scalar_lea.sflag [#allocation9], %s5269_s28  ;;  %s5128_s12 = smov 192  }
  0x2b   : > { %s5129_s21 = smov 12   ;;  %s3839_s14 = sshll.u32 %s5272_s29, 6 }
  0x2c   : > { %s545_s13 = scalar_lea.hbm %s6792_s3, %s4361_s16  ;;  %s4261_s24 = sshll.u32 %s5122_s22, 6 }
  0x2d   : > { %s546_s15 = sshll.u32 %s545_s13, 4  ;;  %s586_s30 = scalar_lea.hbm %s6742_s5, %s4261_s24  ;;  %s547_s15 = int_to_ptr.hbm [resolvable:$true] %s546_s15 }
  0x2e   : > { %4407 = dma.hbm_to_vmem [thread:$0]  (!%p5284_p6), %s547_s15, 3072, %s549_s20, %s6762_s10, %s5128_s12, %s5128_s12, %s5129_s21  }
  0x2f   : > { %s581_s17 = scalar_lea.vmem [#allocation11], %s3839_s14  ;;  %s587_s26 = sshll.u32 %s586_s30, 4  ;;  %s588_s26 = int_to_ptr.hbm [resolvable:$true] %s587_s26 }
  0x30   : > { %s589_s13 = sshll.u32 %s581_s17, 4  ;;  %s6760_s25 = scalar_lea.sflag [#allocation12], %s5269_s28  ;;  %s590_s13 = int_to_ptr.vmem [resolvable:$true] %s589_s13 }
  0x31   : > { %s6757_s3 = smov 64   ;;  %s6758_s8 = smov 4  }
  0x32   : > { %4413 = dma.hbm_to_vmem [thread:$0]  (!%p5284_p6), %s588_s26, 1024, %s590_s13, %s6760_s25, %s6757_s3, %s6757_s3, %s6758_s8  }
  0x33   : > { %s622_s20 = scalar_lea.hbm %s6744_s7, %s5122_s22  ;;  %s619_s14 = scalar_lea.vmem [#allocation14], %s5272_s29 }
  0x34   : > { %s624_s21 = sshll.u32 %s622_s20, 4  ;;  %s626_s24 = sshll.u32 %s619_s14, 4  ;;  %s625_s21 = int_to_ptr.hbm [resolvable:$true] %s624_s21  ;;  %s627_s24 = int_to_ptr.vmem [resolvable:$true] %s626_s24 }
  0x35   : > { %s6759_s1 = scalar_lea.sflag [#allocation15], %s5269_s28  ;;  %s3842_s16 = sshll.u32 %s5272_s29, 8 }
  0x36   : > { %4419 = dma.hbm_to_vmem [thread:$0]  (!%p5284_p6), %s625_s21, 16, %s627_s24, %s6759_s1  }
  0x37   : > { %s4262_s30 = sshll.u32 %s5122_s22, 8  ;;  %s654_s12 = scalar_lea.vmem [#allocation17], %s3842_s16 }
  0x38   : > { %s659_s26 = scalar_lea.hbm %s6746_s9, %s4262_s30  ;;  %s662_s15 = sshll.u32 %s654_s12, 4  ;;  %s663_s15 = int_to_ptr.vmem [resolvable:$true] %s662_s15 }
  0x39   : > { %s660_s20 = sshll.u32 %s659_s26, 4  ;;  %s6761_s14 = scalar_lea.sflag [#allocation18], %s5269_s28  ;;  %s661_s20 = int_to_ptr.hbm [resolvable:$true] %s660_s20 }
  0x3a   : > { %s5132_s3 = smov 256   ;;  %s5133_s8 = smov 16  }
  0x3b   : > { %4425 = dma.hbm_to_vmem [thread:$0]  (!%p5284_p6), %s661_s20, 4096, %s663_s15, %s6761_s14, %s5132_s3, %s5132_s3, %s5133_s8  }
  0x3c   : > { %s688_s17 = scalar_lea.hbm %s6748_s11, %s4262_s30  ;;  %s683_s13 = scalar_lea.vmem [#allocation19], %s3842_s16 }
  0x3d   : > { %s691_s1 = sshll.u32 %s683_s13, 4  ;;  %s689_s25 = sshll.u32 %s688_s17, 4  ;;  %s5339_s1 = int_to_ptr.vmem [resolvable:$true] %s691_s1  ;;  %s5341_s25 = int_to_ptr.hbm [resolvable:$true] %s689_s25 }
  0x3e   : > { %s5344_s26 = sadd.s32 4294967295, %s5126_s23   ;;  %p100_p7 = scmp.ne.s32.totalorder %s5110_s19, %s5106_s18 }
  0x3f   : > { %p101_p8 = scmp.eq.s32.totalorder %s5344_s26, 0  ;;  %p3835_p9 = scmp.ge.s32.totalorder %s5126_s23, 1 }
  0x40   : > { %p465_p10 = scmp.lt.s32.totalorder %s5126_s23, 3  ;;  %s6795_s0 = sld [smem:[#allocation42_spill]] }
  0x41   : > { %p5353_p11 = por %p101_p8, %p100_p7  ;;  %s5134_s18 = smov [#allocation2]  }
  0x42   : > { %p5357_p12 = pnand %p3835_p9, %p465_p10  ;;  %s482_s15 = sshll.u32 %s5134_s18, 4  ;;  %s483_s15 = int_to_ptr.vmem [resolvable:$true] %s482_s15 }
  0x43   : > { %s6796_s2 = sld [smem:[#allocation44_spill]]  ;;  %s5135_s13 = smov 128  }
  0x44   : > { %p4394_p13 = pneg %p5357_p12  ;;  %s5136_s16 = smov 8  }
  0x45   : > { %s522_s30 = scalar_lea.vmem [#allocation7], %s5272_s29  ;;  %s4362_s18 = smul.u32 3, %s5272_s29 }
  0x46   : > { %s480_s12 = sshll.u32 %s6795_s0, 4  ;;  %p4395_p0 = pnand %p4394_p13, %p101_p8  ;;  %s481_s12 = int_to_ptr.hbm [resolvable:$true] %s480_s12 }
  0x47   : > { %s529_s14 = sshll.u32 %s522_s30, 4  ;;  %s6797_s10 = scalar_lea.sflag [#allocation6], %s5269_s28  ;;  %s530_s14 = int_to_ptr.vmem [resolvable:$true] %s529_s14 }
  0x48   : > { %4397 = dma.hbm_to_vmem [thread:$0]  (!%p4395_p0), %s481_s12, 512, %s483_s15, [#allocation3], %s5135_s13, %s5135_s13, %s5136_s16  }
  0x49   : > { %s525_s24 = scalar_lea.hbm %s6796_s2, %s5122_s22  ;;  %s4363_s20 = smul.u32 3, %s5122_s22 }
  0x4a   : > { %s527_s17 = sshll.u32 %s525_s24, 4  ;;  %s562_s21 = scalar_lea.vmem [#allocation10], %s4362_s18  ;;  %s528_s17 = int_to_ptr.hbm [resolvable:$true] %s527_s17 }
  0x4b   : > { %4404 = dma.hbm_to_vmem [thread:$0]  (!%p5284_p6), %s528_s17, 16, %s530_s14, %s6797_s10  }
  0x4c   : > { %s570_s24 = sshll.u32 %s562_s21, 4  ;;  %s6798_s4 = sld [smem:[#allocation46_spill]]  ;;  %s571_s24 = int_to_ptr.vmem [resolvable:$true] %s570_s24 }
  0x4d   : > { %s605_s2 = scalar_lea.hbm %s6743_s6, %s5122_s22  ;;  %s6799_s14 = scalar_lea.sflag [#allocation9], %s5269_s28 }
  0x4e   : > { %s607_s10 = sshll.u32 %s605_s2, 4  ;;  %s602_s0 = scalar_lea.vmem [#allocation13], %s5272_s29  ;;  %s608_s10 = int_to_ptr.hbm [resolvable:$true] %s607_s10 }
  0x4f   : > { %s609_s17 = sshll.u32 %s602_s0, 4  ;;  %s6800_s18 = scalar_lea.sflag [#allocation12], %s5269_s28  ;;  %s610_s17 = int_to_ptr.vmem [resolvable:$true] %s609_s17 }
  0x50   : > { %4416 = dma.hbm_to_vmem [thread:$0]  (!%p5284_p6), %s608_s10, 16, %s610_s17, %s6800_s18  }
  0x51   : > { %s6801_s12 = sld [smem:[#allocation47_spill]]  ;;  %s636_s16 = scalar_lea.vmem [#allocation16], %s5272_s29 }
  0x52   : > { %s566_s15 = scalar_lea.hbm %s6798_s4, %s4363_s20  ;;  %s643_s30 = sshll.u32 %s636_s16, 4  ;;  %s644_s30 = int_to_ptr.vmem [resolvable:$true] %s643_s30 }
  0x53   : > { %s568_s13 = sshll.u32 %s566_s15, 4  ;;  %s6802_s2 = scalar_lea.sflag [#allocation15], %s5269_s28  ;;  %s569_s13 = int_to_ptr.hbm [resolvable:$true] %s568_s13 }
  0x54   : > { %4410 = dma.hbm_to_vmem [thread:$0]  (!%p5284_p6), %s569_s13, 48, %s571_s24, %s6799_s14  }
  0x55   : > { %s6803_s24 = smov 4   ;;  %s6804_s13 = smov 64  }
  0x56   : > { %s6805_s14 = scalar_lea.sflag [#allocation18], %s5269_s28  ;;  %709 = sbr.rel (%p5357_p12) target bundleno = 2553 (0x9f9), region = 80 }
  0x57   : > { %s639_s15 = scalar_lea.hbm %s6801_s12, %s5122_s22 }
  0x58   : > { %s641_s4 = sshll.u32 %s639_s15, 4  ;;  %s642_s4 = int_to_ptr.hbm [resolvable:$true] %s641_s4 }
  0x59   : > { %4422 = dma.hbm_to_vmem [thread:$0]  (!%p5284_p6), %s642_s4, 16, %s644_s30, %s6802_s2  }
  0x5a   : > { %4428 = dma.hbm_to_vmem [thread:$0]  (!%p5284_p6), %s5341_s25, 4096, %s5339_s1, %s6805_s14, %s6804_s13, %s6804_s13, %s6803_s24  }
  0x5b   : > { %5077 = dma.done.wait (%p101_p8), [#allocation3], 512  }
  0x5c   : > { %5079 = vsyncadd (%p101_p8), [#allocation3], 4294966784  ;;  %s5420_s29 = sand.u32 1, %s5344_s26   ;;  %s5423_s4 = sand.u32 1, %s5110_s19  }
  0x5d   : > { %s717_s28 = scalar_lea.sflag [#allocation6], %s5420_s29  ;;  %s719_s27 = scalar_lea.vmem [#allocation5], %s5423_s4 }
  0x5e   : > { %5081 = dma.done.wait (%p5353_p11), %s717_s28, 32  }
  0x5f   : > { %5083 = vsyncadd (%p5353_p11), %s717_s28, 4294967264  ;;  %s4364_s25 = smul.u32 192, %s5423_s4  ;;  %s728_s1 = scalar_lea.vmem [#allocation7], %s5423_s4 }
  0x60   : > { %s735_s8 = scalar_lea.sflag [#allocation9], %s5420_s29 }
  0x61   : > { %s5434_s10 = scalar_lea.vmem [#allocation8], %s4364_s25 }
  0x62   : > { %5085 = dma.done.wait (%p5353_p11), %s735_s8, 3120  }
  0x63   : > { %5087 = vsyncadd (%p5353_p11), %s735_s8, 4294964176  ;;  %s4365_s0 = smul.u32 3, %s5423_s4  ;;  %s3850_s17 = sshll.u32 %s5423_s4, 6 }
  0x64   : > { %s755_s20 = scalar_lea.sflag [#allocation12], %s5420_s29  ;;  %s5445_s21 = scalar_lea.vmem [#allocation11], %s3850_s17 }
  0x65   : > { %s5442_s18 = scalar_lea.vmem [#allocation10], %s4365_s0 }
  0x66   : > { %5089 = dma.done.wait (%p5353_p11), %s755_s20, 1040  }
  0x67   : > { %5091 = vsyncadd (%p5353_p11), %s755_s20, 4294966256  ;;  %s774_s15 = scalar_lea.sflag [#allocation15], %s5420_s29 }
  0x68   : > { %5093 = dma.done.wait (%p5353_p11), %s774_s15, 32  }
  0x69   : > { %5095 = vsyncadd (%p5353_p11), %s774_s15, 4294967264  ;;  %s3851_s30 = sshll.u32 %s5423_s4, 8  ;;  %s792_s24 = scalar_lea.sflag [#allocation18], %s5420_s29 }
  0x6a   : > { %s5461_s13 = scalar_lea.vmem [#allocation17], %s3851_s30 }
  0x6b   : > { %5097 = dma.done.wait (%p5353_p11), %s792_s24, 8192  }
  0x6c   : > { %5099 = vsyncadd (%p5353_p11), %s792_s24, 4294959104  ;;  %s6806_s14 = sld [smem:[#allocation29_spill]]  ;;  %s5481_s12 = scalar_lea.vmem [#allocation19], %s3851_s30 }
  0x6d   : > { %s6807_s17 = sld [smem:[#allocation49_spill]] }
  0x6e   : > { %s6808_s2 = sld [smem:[#allocation48_spill]] }
  0x72   : > { %p896_p1 = scmp.lt.s32.totalorder %s6806_s14, 1  ;;  %p3854_p2 = scmp.ne.s32.totalorder %s6806_s14, 0 }
  0x74   : > { %s5469_s28 = scalar_select %p896_p1, %s6806_s14, 1 }
  0x75   : > { %908 = sbr.rel (%p3854_p2) target bundleno = 127 (0x7f), region = 128 }
  0x76   : > { %s3853_s25 = sshll.u32 %s5469_s28, 2  ;;  %s902_s20 = scalar_lea.vmem %s6807_s17, %s5469_s28 }
  0x77   : > { %s5479_s16 = scalar_lea.vmem %s6808_s2, %s3853_s25 }
  0x7a   : > { %v909_v0 = vld [vmem:[#allocation2] sm:$0xff]  ;;  %v910_v1 = vld [vmem:[#allocation2 + $0x8] sm:$0xff]  ;;  %v911_v2 = vld [vmem:[#allocation2 + $0x10] sm:$0xff] }
  0x7b   : > { %913 = vst [vmem:[#allocation20] sm:$0xff] %v909_v0  ;;  %v912_v3 = vld [vmem:[#allocation2 + $0x18] sm:$0xff] }
  0x7c   : > { %914 = vst [vmem:[#allocation20 + $0x8] sm:$0xff] %v910_v1 }
  0x7d   : > { %915 = vst [vmem:[#allocation20 + $0x10] sm:$0xff] %v911_v2 }
  0x7e   : > { %916 = vst [vmem:[#allocation20 + $0x18] sm:$0xff] %v912_v3 }
  0x7f PF: > { %v5137_v8 = vmov 128.0   ;;  %v3941_v31 = vld [vmem:[%s5434_s10 + $0xa8] sm:$0xf]  ;;  %v4286_v32 = vld [vmem:[%s5434_s10 + $0xb0] sm:$0xf0]  ;;  %vm1282_vm13 = vcmask 261120  }
  0x80   : > { %4534 = vrcp.f32 %v5137_v8  ;;  %v4285_v33 = vld [vmem:[%s5434_s10 + $0xac] sm:$0xf]  ;;  %v3942_v34 = vor.u32 %v4286_v32, %v3941_v31  ;;  %v3943_v35 = vld [vmem:[%s5434_s10 + $0xb4] sm:$0xf0]  ;;  %v3949_v36 = vld [vmem:[%s5434_s10 + $0xb0] sm:$0xf] }
  0x81   : > { %v4287_v37 = vld [vmem:[%s5434_s10 + $0xb8] sm:$0xf0]  ;;  %v3946_v38 = vor.u32 %v4285_v33, %v3943_v35  ;;  %v3929_v40 = vld [vmem:[%s5434_s10 + $0x90] sm:$0xf]  ;;  %v4282_v42 = vld [vmem:[%s5434_s10 + $0x94] sm:$0xf] }
  0x82   : > { %v917_v5 = vld [vmem:[#allocation20] sm:$0xff]  ;;  %v3950_v39 = vor.u32 %v4287_v37, %v3949_v36  ;;  %1194 = vmatpush.bf16.msra.mxu0 %v3942_v34  ;;  %v4283_v41 = vld [vmem:[%s5434_s10 + $0x98] sm:$0xf0]  ;;  %v3931_v44 = vld [vmem:[%s5434_s10 + $0x9c] sm:$0xf0]  ;;  %s5138_s3 = smov 96  }
  0x83   : > { %923 = vadd.xlane.f32.xlu0 %v917_v5  ;;  %v918_v7 = vld [vmem:[#allocation20 + $0x8] sm:$0xff]  ;;  %1213 = vmatpush.bf16.msra.mxu1 %v3946_v38  ;;  %v3930_v43 = vor.u32 %v4283_v41, %v3929_v40  ;;  %v4284_v46 = vld [vmem:[%s5434_s10 + $0xa0] sm:$0xf0]  ;;  %v3934_v47 = vor.u32 %v4282_v42, %v3931_v44  ;;  %v4279_v51 = vld [vmem:[%s5434_s10 + $0x7c] sm:$0xf]  ;;  %s6853_s30 = sld [smem:[#allocation29_spill]] }
  0x84   : > { %v919_v4 = vld [vmem:[#allocation20 + $0x10] sm:$0xff]  ;;  %1232 = vmatpush.bf16.msra.mxu2 %v3950_v39  ;;  %v3937_v45 = vld [vmem:[%s5434_s10 + $0x98] sm:$0xf]  ;;  %v4280_v50 = vld [vmem:[%s5434_s10 + $0x80] sm:$0xf0] }
  0x85   : > { %927 = vadd.xlane.f32.xlu1 %v919_v4  ;;  %v920_v6 = vld [vmem:[#allocation20 + $0x18] sm:$0xff]  ;;  %v3938_v48 = vor.u32 %v4284_v46, %v3937_v45  ;;  %v3917_v49 = vld [vmem:[%s5434_s10 + $0x78] sm:$0xf]  ;;  %v3925_v54 = vld [vmem:[%s5434_s10 + $0x80] sm:$0xf] }
  0x86   : > { %v4535_v9 = vpop.eup %4534  ;;  %1195 = vmatpush.bf16.msra.mxu0 %v3930_v43  ;;  %v3918_v52 = vor.u32 %v4280_v50, %v3917_v49  ;;  %v3919_v53 = vld [vmem:[%s5434_s10 + $0x84] sm:$0xf0]  ;;  %v4281_v55 = vld [vmem:[%s5434_s10 + $0x88] sm:$0xf0]  ;;  %v3905_v58 = vld [vmem:[%s5434_s10 + $0x60] sm:$0xf] }
  0x87   : > { %v932_v10 = vmul.f32 128.0, %v4535_v9  ;;  %vm936_vm0 = vweird.f32 %v4535_v9  ;;  %1214 = vmatpush.bf16.msra.mxu1 %v3934_v47  ;;  %v3922_v56 = vor.u32 %v4279_v51, %v3919_v53  ;;  %v3926_v57 = vor.u32 %v4281_v55, %v3925_v54  ;;  %v4277_v59 = vld [vmem:[%s5434_s10 + $0x68] sm:$0xf0]  ;;  %v4276_v60 = vld [vmem:[%s5434_s10 + $0x64] sm:$0xf] }
  0x88   : > { %1233 = vmatpush.bf16.msra.mxu2 %v3938_v48  ;;  %v3906_v61 = vor.u32 %v4277_v59, %v3905_v58  ;;  %v3907_v62 = vld [vmem:[%s5434_s10 + $0x6c] sm:$0xf0]  ;;  %v3913_v63 = vld [vmem:[%s5434_s10 + $0x68] sm:$0xf]  ;;  %v4278_v0 = vld [vmem:[%s5434_s10 + $0x70] sm:$0xf0] }
  0x89   : > { %v933_v11 = vsub.f32 1.0, %v932_v10  ;;  %v3910_v1 = vor.u32 %v4276_v60, %v3907_v62  ;;  %v3914_v2 = vor.u32 %v4278_v0, %v3913_v63  ;;  %v3893_v3 = vld [vmem:[%s5434_s10 + $0x48] sm:$0xf]  ;;  %v3901_v8 = vld [vmem:[%s5434_s10 + $0x50] sm:$0xf]  ;;  %p4255_p3 = scmp.ge.s32.totalorder %s6853_s30, 1 }
  0x8a   : > { %1196 = vmatpush.bf16.msra.mxu0 %v3918_v52  ;;  %v3877_v31 = vld [vmem:[%s5434_s10 + $0x20] sm:$0xf]  ;;  %v4269_v32 = vld [vmem:[%s5434_s10 + $0x28] sm:$0xf0]  ;;  %v4264_v38 = vld [vmem:[%s5434_s10 + $0x4] sm:$0xf] }
  0x8b   : > { %925 = vadd.xlane.f32.xlu0 %v918_v7  ;;  %v934_v12 = vmul.f32 %v4535_v9, %v933_v11  ;;  %1215 = vmatpush.bf16.msra.mxu1 %v3922_v56  ;;  %v3878_v35 = vor.u32 %v4269_v32, %v3877_v31  ;;  %v3857_v36 = vld [vmem:[%s5434_s10] sm:$0xf]  ;;  %v4265_v37 = vld [vmem:[%s5434_s10 + $0x8] sm:$0xf0]  ;;  %v3859_v42 = vld [vmem:[%s5434_s10 + $0xc] sm:$0xf0] }
  0x8c   : > { %1234 = vmatpush.bf16.msra.mxu2 %v3926_v57  ;;  %v3858_v41 = vor.u32 %v4265_v37, %v3857_v36  ;;  %v3865_v43 = vld [vmem:[%s5434_s10 + $0x8] sm:$0xf]  ;;  %v4266_v44 = vld [vmem:[%s5434_s10 + $0x10] sm:$0xf0]  ;;  %v3862_v45 = vor.u32 %v4264_v38, %v3859_v42 }
  0x8d   : > { %929 = vadd.xlane.f32.xlu1 %v920_v6  ;;  %v935_v13 = vadd.f32 %v4535_v9, %v934_v12  ;;  %v3881_v12 = vld [vmem:[%s5434_s10 + $0x30] sm:$0xf]  ;;  %v3866_v46 = vor.u32 %v4266_v44, %v3865_v43 }
  0x8e   : > { %1197 = vmatpush.bf16.msra.mxu0 %v3906_v61 }
  0x8f   : > { %v5484_v14 = vsel %vm936_vm0, %v4535_v9, %v935_v13  ;;  %1216 = vmatpush.bf16.msra.mxu1 %v3910_v1  ;;  %v4275_v9 = vld [vmem:[%s5434_s10 + $0x58] sm:$0xf0]  ;;  %vm1343_vm0 = vcmask 130048  }
  0x90   : > { %6809 = vst [vmem:[#allocation32_spill] sm:$0xff] %v5484_v14  ;;  %1235 = vmatpush.bf16.msra.mxu2 %v3914_v2  ;;  %v3902_v11 = vor.u32 %v4275_v9, %v3901_v8  ;;  %v4271_v13 = vld [vmem:[%s5434_s10 + $0x38] sm:$0xf0] }
  0x94   : > { %1236 = vmatpush.bf16.msra.mxu2 %v3902_v11 }
  0xf6   : > { %v924_v16 = vpop.xlane.xlu0 %923 }
  0xf7   : > { %v938_v18 = vmul.f32 %v5484_v14, %v924_v16  ;;  %v3882_v16 = vor.u32 %v4271_v13, %v3881_v12  ;;  %v4528_v12 = vld [vmem:[%s719_s27] ss:$0 sm:$0xff]  ;;  %s5139_s27 = smov 64  }
  0xf8   : > { %v928_v15 = vpop.xlane.xlu1 %927 }
  0xf9   : > { %v940_v17 = vmul.f32 %v5484_v14, %v928_v15  ;;  %v5490_v20 = vsub.f32 %v917_v5, %v938_v18  ;;  %v4273_v5 = vld [vmem:[%s5434_s10 + $0x4c] sm:$0xf]  ;;  %v4270_v15 = vld [vmem:[%s5434_s10 + $0x34] sm:$0xf]  ;;  %v3889_v18 = vld [vmem:[%s5434_s10 + $0x38] sm:$0xf] }
  0xfb   : > { %v5488_v19 = vsub.f32 %v919_v4, %v940_v17  ;;  %v946_v22 = vmul.f32 %v5490_v20, %v5490_v20  ;;  %v4274_v4 = vld [vmem:[%s5434_s10 + $0x50] sm:$0xf0]  ;;  %v3883_v17 = vld [vmem:[%s5434_s10 + $0x3c] sm:$0xf0] }
  0xfd   : > { %v948_v21 = vmul.f32 %v5488_v19, %v5488_v19  ;;  %950 = vadd.xlane.f32.xlu2 %v946_v22  ;;  %v3886_v22 = vor.u32 %v4270_v15, %v3883_v17 }
  0xfe   : > { %v926_v24 = vpop.xlane.xlu0 %925 }
  0xff   : > { %954 = vadd.xlane.f32.xlu0 %v948_v21  ;;  %v939_v26 = vmul.f32 %v5484_v14, %v926_v24  ;;  %v4272_v21 = vld [vmem:[%s5434_s10 + $0x40] sm:$0xf0]  ;;  %v3869_v24 = vld [vmem:[%s5434_s10 + $0x18] sm:$0xf] }
 0x100   : > { %v930_v23 = vpop.xlane.xlu1 %929 }
 0x101   : > { %v941_v25 = vmul.f32 %v5484_v14, %v930_v23  ;;  %v5500_v28 = vsub.f32 %v918_v7, %v939_v26  ;;  %v3895_v7 = vld [vmem:[%s5434_s10 + $0x54] sm:$0xf0]  ;;  %v3890_v23 = vor.u32 %v4272_v21, %v3889_v18  ;;  %v4267_v26 = vld [vmem:[%s5434_s10 + $0x1c] sm:$0xf] }
 0x102   : > { %v3898_v10 = vor.u32 %v4273_v5, %v3895_v7 }
 0x103   : > { %v5498_v27 = vsub.f32 %v920_v6, %v941_v25  ;;  %v947_v30 = vmul.f32 %v5500_v28, %v5500_v28  ;;  %v3894_v6 = vor.u32 %v4274_v4, %v3893_v3  ;;  %1237 = vmatpush.bf16.msra.mxu2 %v3890_v23  ;;  %v4268_v25 = vld [vmem:[%s5434_s10 + $0x20] sm:$0xf0] }
 0x104   : > { %1217 = vmatpush.bf16.msra.mxu1 %v3898_v10 }
 0x105   : > { %v949_v29 = vmul.f32 %v5498_v27, %v5498_v27  ;;  %952 = vadd.xlane.f32.xlu2 %v947_v30  ;;  %1198 = vmatpush.bf16.msra.mxu0 %v3894_v6  ;;  %v3871_v30 = vld [vmem:[%s5434_s10 + $0x24] sm:$0xf0]  ;;  %s6810_s10 = scalar_lea.vmem [#allocation13], %s5423_s4 }
 0x106   : > { %v3874_v34 = vor.u32 %v4267_v26, %v3871_v30 }
 0x107   : > { %956 = vadd.xlane.f32.xlu1 %v949_v29  ;;  %v3870_v29 = vor.u32 %v4268_v25, %v3869_v24  ;;  %1238 = vmatpush.bf16.msra.mxu2 %v3878_v35 }
 0x108   : > { %1218 = vmatpush.bf16.msra.mxu1 %v3886_v22  ;;  %v4529_v22 = vld [vmem:[%s728_s1] ss:$0 sm:$0xff]  ;;  %s5140_s1 = smov 32  }
 0x109   : > { %1199 = vmatpush.bf16.msra.mxu0 %v3882_v16 }
 0x10b   : > { %1239 = vmatpush.bf16.msra.mxu2 %v3866_v46 }
 0x10c   : > { %1219 = vmatpush.bf16.msra.mxu1 %v3874_v34 }
 0x10d   : > { %1200 = vmatpush.bf16.msra.mxu0 %v3870_v29 }
 0x110   : > { %1220 = vmatpush.bf16.msra.mxu1 %v3862_v45 }
 0x111   : > { %1201 = vmatpush.bf16.msra.mxu0 %v3858_v41 }
 0x170   : > { %v951_v33 = vpop.xlane.xlu2 %950 }
 0x171   : > { %v958_v39 = vmul.f32 %v951_v33, %v5484_v14 }
 0x172   : > { %v955_v40 = vpop.xlane.xlu0 %954 }
 0x173   : > { %v962_v47 = vadd.f32 1e-05, %v958_v39  ;;  %v960_v48 = vmul.f32 %v955_v40, %v5484_v14  ;;  %v1058_v39 = vld [vmem:[%s5442_s18] sm:$0x7]  ;;  %s6815_s18 = scalar_lea.vmem [#allocation14], %s5423_s4 }
 0x174   : > { %v1060_v42 = vperm.slane %v1058_v39, 0  ;;  %v1061_v43 = vperm.slane %v1058_v39, 1 }
 0x175   : > { %4536 = vrsqrt.f32 %v962_v47  ;;  %v964_v49 = vadd.f32 1e-05, %v960_v48  ;;  %vm972_vm2 = vweird.f32 %v962_v47 }
 0x177   : > { %4538 = vrsqrt.f32 %v964_v49  ;;  %vm992_vm9 = vweird.f32 %v964_v49 }
 0x178   : > { %v953_v51 = vpop.xlane.xlu2 %952 }
 0x179   : > { %v959_v53 = vmul.f32 %v953_v51, %v5484_v14 }
 0x17a   : > { %v957_v50 = vpop.xlane.xlu1 %956 }
 0x17b   : > { %v961_v52 = vmul.f32 %v957_v50, %v5484_v14  ;;  %v4537_v54 = vpop.eup %4536  ;;  %v963_v56 = vadd.f32 1e-05, %v959_v53 }
 0x17c   : > { %v967_v57 = vmul.f32 %v4537_v54, %v962_v47  ;;  %vm973_vm1 = vweird.f32 %v4537_v54 }
 0x17d   : > { %v965_v55 = vadd.f32 1e-05, %v961_v52  ;;  %v4539_v60 = vpop.eup %4538  ;;  %vm974_vm3 = vmor %vm972_vm2, %vm973_vm1  ;;  %vm982_vm5 = vweird.f32 %v963_v56  ;;  %vm1972_vm1 = vcmask 523264   ;;  %vm1977_vm2 = vcmask 785408  }
 0x17e   : > { %v968_v58 = vmul.f32 %v4537_v54, %v967_v57  ;;  %v987_v2 = vmul.f32 %v4539_v60, %v964_v49  ;;  %vm993_vm10 = vweird.f32 %v4539_v60 }
 0x17f   : > { %4540 = vrsqrt.f32 %v965_v55  ;;  %vm1002_vm7 = vweird.f32 %v965_v55  ;;  %vm994_vm12 = vmor %vm992_vm9, %vm993_vm10 }
 0x180   : > { %4542 = vrsqrt.f32 %v963_v56  ;;  %v969_v59 = vmul.f32 0.5, %v968_v58  ;;  %v988_v7 = vmul.f32 %v4539_v60, %v987_v2 }
 0x182   : > { %v970_v61 = vsub.f32 1.5, %v969_v59  ;;  %v989_v13 = vmul.f32 0.5, %v988_v7 }
 0x184   : > { %v971_v1 = vmul.f32 %v4537_v54, %v970_v61  ;;  %v990_v23 = vsub.f32 1.5, %v989_v13 }
 0x185   : > { %v4541_v62 = vpop.eup %4540 }
 0x186   : > { %v4543_v63 = vpop.eup %4542  ;;  %v997_v0 = vmul.f32 %v4541_v62, %v965_v55  ;;  %v975_v6 = vsel %vm974_vm3, %v4537_v54, %v971_v1  ;;  %vm1003_vm8 = vweird.f32 %v4541_v62  ;;  %v991_v29 = vmul.f32 %v4539_v60, %v990_v23 }
 0x187   : > { %v977_v3 = vmul.f32 %v4543_v63, %v963_v56  ;;  %vm983_vm4 = vweird.f32 %v4543_v63  ;;  %v1006_v11 = vmul.f32 %v975_v6, %v5490_v20  ;;  %vm1004_vm11 = vmor %vm1002_vm7, %vm1003_vm8 }
 0x188   : > { %v998_v4 = vmul.f32 %v4541_v62, %v997_v0  ;;  %vm984_vm6 = vmor %vm982_vm5, %vm983_vm4 }
 0x189   : > { %v978_v5 = vmul.f32 %v4543_v63, %v977_v3  ;;  %v1013_v21 = vmul.f32 %v4528_v12, %v1006_v11 }
 0x18a   : > { %v999_v9 = vmul.f32 0.5, %v998_v4 }
 0x18b   : > { %v979_v8 = vmul.f32 0.5, %v978_v5  ;;  %v1020_v25 = vadd.f32 %v4529_v22, %v1013_v21 }
 0x18c   : > { %v1000_v16 = vsub.f32 1.5, %v999_v9 }
 0x18d   : > { %v980_v10 = vsub.f32 1.5, %v979_v8 }
 0x18e   : > { %v1001_v20 = vmul.f32 %v4541_v62, %v1000_v16 }
 0x18f   : > { %v981_v15 = vmul.f32 %v4543_v63, %v980_v10 }
 0x190   : > { %v1005_v31 = vsel %vm1004_vm11, %v4541_v62, %v1001_v20 }
 0x191   : > { %v985_v17 = vsel %vm984_vm6, %v4543_v63, %v981_v15  ;;  %v1009_v32 = vmul.f32 %v1005_v31, %v5498_v27  ;;  %v1062_v63 = vperm.slane %v1058_v39, 2 }
 0x192   : > { %v1007_v18 = vmul.f32 %v985_v17, %v5500_v28  ;;  %v995_v28 = vsel %vm994_vm12, %v4539_v60, %v991_v29 }
 0x193   : > { %v1008_v33 = vmul.f32 %v995_v28, %v5488_v19  ;;  %v1016_v34 = vmul.f32 %v4528_v12, %v1009_v32 }
 0x194   : > { %v1014_v24 = vmul.f32 %v4528_v12, %v1007_v18 }
 0x195   : > { %v1015_v35 = vmul.f32 %v4528_v12, %v1008_v33  ;;  %v1023_v36 = vadd.f32 %v4529_v22, %v1016_v34 }
 0x196   : > { %v1021_v26 = vadd.f32 %v4529_v22, %v1014_v24 }
 0x197   : > { %v1022_v37 = vadd.f32 %v4529_v22, %v1015_v35 }
 0x198   : > { %v1024_v30 = vpack.c.bf16 %v1021_v26, %v1020_v25 }
 0x199   : > { %v1025_v38 = vpack.c.bf16 %v1023_v36, %v1022_v37 }
 0x19a   : > { %1202 = vmatmul.bf16.vlgmr.msra.gmra.mxu0 %v1024_v30  ;;  %1221 = vmatmul.bf16.vlgmr.msra.gmra.mxu1 %v1024_v30 }
 0x19b   : > { %1240 = vmatmul.bf16.vlgmr.msra.gmra.mxu2 %v1024_v30 }
 0x1aa   : > { %1207 = vmatmul.bf16.gmra.mxu0 %v1025_v38  ;;  %1226 = vmatmul.bf16.gmra.mxu1 %v1025_v38 }
 0x1ab   : > { %1245 = vmatmul.bf16.gmra.mxu2 %v1025_v38 }
 0x217   : > { %v1203_v40 = vpop.f32.mrf.mxu0  ;;  %v1222_v41 = vpop.f32.mrf.mxu1 }
 0x218   : > { %v1204_v44 = vadd.f32 %v1203_v40, %v1060_v42  ;;  %v1223_v45 = vadd.f32 %v1222_v41, %v1061_v43 }
 0x21a   : > { %v1264_v48 = vpack.c.bf16 %v1204_v44, %v1204_v44  ;;  %v1268_v19 = vpack.c.bf16 %v1223_v45, %v1223_v45 }
 0x21c   : > { %v1274_v53 = vunpack.c.l.b16 %v1264_v48  ;;  %v1279_v54 = vunpack.c.l.b16 %v1268_v19 }
 0x21e   : > { %v1241_v46 = vpop.f32.mrf.mxu2 }
 0x21f   : > { %v1205_v47 = vpop.f32.mrf.mxu0  ;;  %v1224_v27 = vpop.f32.mrf.mxu1  ;;  %v1242_v3 = vadd.f32 %v1241_v46, %v1062_v63 }
 0x220   : > { %v1206_v49 = vadd.f32 %v1205_v47, %v1060_v42  ;;  %v1225_v50 = vadd.f32 %v1224_v27, %v1061_v43 }
 0x221   : > { %v1392_v12 = vpack.c.bf16 %v1242_v3, %v1242_v3 }
 0x222   : > { %v1265_v51 = vpack.c.bf16 %v1206_v49, %v1206_v49  ;;  %v1269_v52 = vpack.c.bf16 %v1225_v50, %v1225_v50 }
 0x223   : > { %v1403_v23 = vunpack.c.l.b16 %v1392_v12 }
 0x224   : > { %v1275_v55 = vunpack.c.l.b16 %v1265_v51  ;;  %v1280_v56 = vunpack.c.l.b16 %v1269_v52 }
 0x226   : > { %v1276_v57 = vpack.c.b16 %v1275_v55, %v1274_v53  ;;  %v1281_v58 = vpack.c.b16 %v1280_v56, %v1279_v54  ;;  %v1243_v59 = vpop.f32.mrf.mxu2 }
 0x227   : > { %v1208_v60 = vpop.f32.mrf.mxu0  ;;  %v1227_v61 = vpop.f32.mrf.mxu1  ;;  %v1244_v0 = vadd.f32 %v1243_v59, %v1062_v63 }
 0x228   : > { %1454 = vrot.lane.b32.xlu2 %v1281_v58, %s5138_s3  ;;  %1452 = vrot.lane.b32.xlu0 %v1276_v57, %s5138_s3  ;;  %v1287_v62 = vsel %vm1282_vm13, %v1281_v58, 0  ;;  %v1209_v1 = vadd.f32 %v1208_v60, %v1060_v42  ;;  %v1228_v2 = vadd.f32 %v1227_v61, %v1061_v43 }
 0x229   : > { %1296 = vmatpush.bf16.xpose.msra.mxu3 %v1287_v62  ;;  %v1393_v5 = vpack.c.bf16 %v1244_v0, %v1244_v0 }
 0x22a   : > { %v1266_v6 = vpack.c.bf16 %v1209_v1, %v1209_v1  ;;  %v1270_v9 = vpack.c.bf16 %v1228_v2, %v1228_v2 }
 0x22b   : > { %v1404_v16 = vunpack.c.l.b16 %v1393_v5 }
 0x22c   : > { %v1305_v17 = vunpack.c.l.b16 %v1266_v6  ;;  %v1310_v18 = vunpack.c.l.b16 %v1270_v9 }
 0x22d   : > { %v5572_v30 = vpack.c.b16 %v1404_v16, %v1403_v23 }
 0x22e   : > { %v1246_v4 = vpop.f32.mrf.mxu2 }
 0x22f   : > { %v1210_v7 = vpop.f32.mrf.mxu0  ;;  %v1229_v8 = vpop.f32.mrf.mxu1  ;;  %v1247_v24 = vadd.f32 %v1246_v4, %v1062_v63 }
 0x230   : > { %v1211_v10 = vadd.f32 %v1210_v7, %v1060_v42  ;;  %v1230_v11 = vadd.f32 %v1229_v8, %v1061_v43  ;;  %1610 = vrot.lane.b32.xlu2 %v1281_v58, %s5139_s27  ;;  %3951 = vmatmul.msk.bf16.vlgmr.msra.gmra.mxu3 %vm1282_vm13, %v1276_v57  ;;  %v1251_v42 = vlaneseq }
 0x231   : > { %v1394_v32 = vpack.c.bf16 %v1247_v24, %v1247_v24 }
 0x232   : > { %v1267_v13 = vpack.c.bf16 %v1211_v10, %v1211_v10  ;;  %v1271_v15 = vpack.c.bf16 %v1230_v11, %v1230_v11  ;;  %v1252_v43 = vshrl.u32 %v1251_v42, 7  ;;  %v1255_v44 = vand.u32 127, %v1251_v42 }
 0x233   : > { %v1431_v34 = vunpack.c.l.b16 %v1394_v32 }
 0x234   : > { %v1306_v21 = vunpack.c.l.b16 %v1267_v13  ;;  %v1311_v22 = vunpack.c.l.b16 %v1271_v15  ;;  %v1258_v45 = vsub.s32 %v1255_v44, %v1252_v43  ;;  %v1253_v19 = vadd.s32 8, %v1252_v43 }
 0x235   : > { %vm1256_vm14 = vcmp.le.s32.totalorder %v1255_v44, %v1252_v43 }
 0x236   : > { %v1307_v20 = vpack.c.b16 %v1306_v21, %v1305_v17  ;;  %v1312_v25 = vpack.c.b16 %v1311_v22, %v1310_v18  ;;  %v1248_v26 = vpop.f32.mrf.mxu2  ;;  %v1260_v48 = vcvt.s32.f32 %v1258_v45  ;;  %v1259_v50 = vsub.s32 %v1255_v44, %v1253_v19 }
 0x237   : > { %v1249_v29 = vadd.f32 %v1248_v26, %v1062_v63  ;;  %vm1257_vm15 = vcmp.le.s32.totalorder %v1255_v44, %v1253_v19 }
 0x238   : > { %1608 = vrot.lane.b32.xlu2 %v1276_v57, %s5139_s27  ;;  %1478 = vrot.lane.b32.xlu1 %v1312_v25, %s5138_s3  ;;  %v1317_v31 = vsel %vm1282_vm13, %v1312_v25, 0  ;;  %v5598_v49 = vsel %vm1256_vm14, %v1260_v48, -inf  ;;  %v1261_v56 = vcvt.s32.f32 %v1259_v50 }
 0x239   : > { %v1395_v28 = vpack.c.bf16 %v1249_v29, %v1249_v29  ;;  %1476 = vrot.lane.b32.xlu0 %v1307_v20, %s5138_s3  ;;  %1326 = vmatpush.bf16.xpose.msrb.mxu3 %v1317_v31  ;;  %v1337_v52 = vmul.f32 0.25, %v5598_v49  ;;  %v5622_v18 = vmul.f32 0.015625, %v5598_v49 }
 0x23a   : > { %v5604_v60 = vsel %vm1257_vm15, %v1261_v56, -inf }
 0x23b   : > { %v1432_v33 = vunpack.c.l.b16 %v1395_v28  ;;  %v1338_v63 = vmul.f32 0.25, %v5604_v60 }
 0x23d   : > { %v5579_v35 = vpack.c.b16 %v1432_v33, %v1431_v34 }
 0x240   : > { %1634 = vrot.lane.b32.xlu1 %v1312_v25, %s5139_s27  ;;  %1632 = vrot.lane.b32.xlu2 %v1307_v20, %s5139_s27 }
 0x241   : > { %1417 = vmatpush.bf16.msra.mxu3 %v5572_v30  ;;  %1766 = vrot.lane.b32.xlu0 %v1281_v58, %s5140_s1 }
 0x242   : > { %3952 = vmatmul.msk.bf16.vlgmr.msrb.gmra.mxu3 %vm1282_vm13, %v1307_v20 }
 0x245   : > { %1445 = vmatpush.bf16.msrb.mxu3 %v5579_v35 }
 0x248   : > { %1764 = vrot.lane.b32.xlu1 %v1276_v57, %s5140_s1  ;;  %1788 = vrot.lane.b32.xlu2 %v1307_v20, %s5140_s1  ;;  %v5630_v20 = vmul.f32 0.015625, %v5604_v60 }
 0x249   : > { %1790 = vrot.lane.b32.xlu0 %v1312_v25, %s5140_s1  ;;  %v1504_v25 = vmul.f32 0.0625, %v5598_v49 }
 0x250   : > { %1588 = vrot.lane.b32.xlu2 %v5579_v35, %s5138_s3 }
 0x251   : > { %1563 = vrot.lane.b32.xlu0 %v5572_v30, %s5138_s3 }
 0x282   : > { %v1455_v36 = vpop.permute.xlu2 %1454 }
 0x283   : > { %v1460_v37 = vsel %vm1282_vm13, %v1455_v36, 0 }
 0x284   : > { %1469 = vmatpush.bf16.xpose.msrb.mxu1 %v1460_v37  ;;  %v1505_v37 = vmul.f32 0.0625, %v5604_v60 }
 0x28a   : > { %v1611_v38 = vpop.permute.xlu2 %1610 }
 0x28b   : > { %v1616_v39 = vsel %vm1282_vm13, %v1611_v38, 0 }
 0x28c   : > { %1625 = vmatpush.bf16.xpose.msrb.mxu0 %v1616_v39 }
 0x292   : > { %v1609_v40 = vpop.permute.xlu2 %1608 }
 0x293   : > { %3959 = vmatmul.msk.bf16.vlgmr.msrb.gmra.mxu0 %vm1282_vm13, %v1609_v40 }
 0x29a   : > { %v1453_v41 = vpop.permute.xlu0 %1452  ;;  %v1633_v6 = vpop.permute.xlu2 %1632 }
 0x29b   : > { %3955 = vmatmul.msk.bf16.vlgmr.msrb.gmra.mxu1 %vm1282_vm13, %v1453_v41 }
 0x2a2   : > { %v1789_v17 = vpop.permute.xlu2 %1788 }
 0x2aa   : > { %v1479_v46 = vpop.permute.xlu1 %1478  ;;  %v5649_v48 = vpop.permute.xlu2 %1588 }
 0x2ab   : > { %v1484_v47 = vsel %vm1282_vm13, %v1479_v46, 0  ;;  %v1477_v27 = vpop.permute.xlu0 %1476 }
 0x2ac   : > { %1493 = vmatpush.bf16.xpose.msra.mxu1 %v1484_v47 }
 0x2b2   : > { %v1635_v51 = vpop.permute.xlu1 %1634 }
 0x2b3   : > { %v1640_v53 = vsel %vm1282_vm13, %v1635_v51, 0  ;;  %v1767_v54 = vpop.permute.xlu0 %1766  ;;  %v1298_v55 = vpop.f32.mrf.mxu3  ;;  %3956 = vmatmul.msk.bf16.vlgmr.msra.gmra.mxu1 %vm1282_vm13, %v1477_v27 }
 0x2b4   : > { %v1772_v57 = vsel %vm1282_vm13, %v1767_v54, 0  ;;  %v1333_v58 = vmul.f32 0.17677669, %v1298_v55  ;;  %1649 = vmatpush.bf16.xpose.msrb.mxu1 %v1640_v53  ;;  %v1816_v54 = vmul.f32 0.00390625, %v5598_v49 }
 0x2b5   : > { %1781 = vmatpush.bf16.xpose.msra.mxu0 %v1772_v57 }
 0x2b6   : > { %v1339_v59 = vadd.f32 %v1337_v52, %v1333_v58 }
 0x2b8   : > { %v1344_v61 = vsel %vm1343_vm0, %v1339_v59, -inf }
 0x2b9   : > { %1345 = vmax.xlane.f32.xlu1 %v1344_v61 }
 0x2ba   : > { %v1765_v62 = vpop.permute.xlu1 %1764 }
 0x2bb   : > { %v1791_v0 = vpop.permute.xlu0 %1790  ;;  %v1300_v1 = vpop.f32.mrf.mxu3 }
 0x2bc   : > { %v1796_v2 = vsel %vm1282_vm13, %v1791_v0, 0  ;;  %v1334_v3 = vmul.f32 0.17677669, %v1300_v1  ;;  %3963 = vmatmul.msk.bf16.vlgmr.msra.gmra.mxu0 %vm1282_vm13, %v1765_v62 }
 0x2bd   : > { %1805 = vmatpush.bf16.xpose.msra.mxu1 %v1796_v2  ;;  %v1817_v2 = vmul.f32 0.00390625, %v5604_v60 }
 0x2be   : > { %v1340_v4 = vadd.f32 %v1338_v63, %v1334_v3 }
 0x2c0   : > { %v1347_v5 = vsel %vm1343_vm0, %v1340_v4, -inf }
 0x2c1   : > { %1348 = vmax.xlane.f32.xlu0 %v1347_v5 }
 0x2c3   : > { %v1564_v7 = vpop.permute.xlu0 %1563  ;;  %3960 = vmatmul.msk.bf16.vlgmr.msrb.gmra.mxu1 %vm1282_vm13, %v1633_v6 }
 0x2c4   : > { %1576 = vmatpush.bf16.msrb.mxu2 %v1564_v7 }
 0x2c5   : > { %v1328_v8 = vpop.f32.mrf.mxu3 }
 0x2c6   : > { %v1335_v9 = vmul.f32 0.17677669, %v1328_v8 }
 0x2c8   : > { %v5612_v10 = vadd.f32 %v1337_v52, %v1335_v9 }
 0x2ca   : > { %v1350_v11 = vsel %vm1343_vm0, %v5612_v10, -inf }
 0x2cb   : > { %1351 = vmax.xlane.f32.xlu2 %v1350_v11 }
 0x2cd   : > { %v1330_v12 = vpop.f32.mrf.mxu3 }
 0x2ce   : > { %v1336_v13 = vmul.f32 0.17677669, %v1330_v12 }
 0x2d0   : > { %v5616_v15 = vadd.f32 %v1338_v63, %v1336_v13 }
 0x2d2   : > { %v1353_v16 = vsel %vm1343_vm0, %v5616_v15, -inf }
 0x2d3   : > { %1354 = vmax.xlane.f32.xlu1 %v1353_v16  ;;  %3964 = vmatmul.msk.bf16.vlgmr.msra.gmra.mxu1 %vm1282_vm13, %v1789_v17 }
 0x310   : > { %v1627_v21 = vpop.f32.mrf.mxu0 }
 0x311   : > { %v1656_v22 = vmul.f32 0.17677669, %v1627_v21 }
 0x313   : > { %v5625_v23 = vadd.f32 %v5622_v18, %v1656_v22 }
 0x315   : > { %v1666_v24 = vsel %vm1343_vm0, %v5625_v23, -inf }
 0x316   : > { %1667 = vmax.xlane.f32.xlu2 %v1666_v24 }
 0x318   : > { %v1471_v26 = vpop.f32.mrf.mxu1  ;;  %v1629_v29 = vpop.f32.mrf.mxu0 }
 0x319   : > { %v1500_v31 = vmul.f32 0.17677669, %v1471_v26  ;;  %v1657_v28 = vmul.f32 0.17677669, %v1629_v29 }
 0x31b   : > { %v5634_v32 = vadd.f32 %v5630_v20, %v1657_v28  ;;  %v5636_v33 = vadd.f32 %v1504_v25, %v1500_v31 }
 0x31d   : > { %v1669_v34 = vsel %vm1343_vm0, %v5634_v32, -inf  ;;  %v1510_v36 = vsel %vm1343_vm0, %v5636_v33, -inf }
 0x31e   : > { %1670 = vmax.xlane.f32.xlu1 %v1669_v34  ;;  %1511 = vmax.xlane.f32.xlu0 %v1510_v36 }
 0x320   : > { %v1473_v38 = vpop.f32.mrf.mxu1 }
 0x321   : > { %v1501_v39 = vmul.f32 0.17677669, %v1473_v38 }
 0x323   : > { %v5643_v40 = vadd.f32 %v1505_v37, %v1501_v39 }
 0x325   : > { %v1513_v41 = vsel %vm1343_vm0, %v5643_v40, -inf }
 0x326   : > { %1514 = vmax.xlane.f32.xlu2 %v1513_v41 }
 0x32c   : > { %v1346_v42 = vpop.xlane.xlu1 %1345 }
 0x32d   : > { %v1356_v43 = vsub.f32 %v1339_v59, %v1346_v42 }
 0x32f   : > { %v1360_v44 = vmul.f32 1.442695, %v1356_v43 }
 0x330   : > { %v1495_v45 = vpop.f32.mrf.mxu1 }
 0x331   : > { %4544 = vpow2.f32 %v1360_v44  ;;  %v1502_v46 = vmul.f32 0.17677669, %v1495_v45 }
 0x333   : > { %v5647_v47 = vadd.f32 %v1504_v25, %v1502_v46 }
 0x334   : > { %v1349_v27 = vpop.xlane.xlu0 %1348 }
 0x335   : > { %v1357_v19 = vsub.f32 %v1340_v4, %v1349_v27  ;;  %v1516_v50 = vsel %vm1343_vm0, %v5647_v47, -inf }
 0x336   : > { %1517 = vmax.xlane.f32.xlu1 %v1516_v50 }
 0x337   : > { %v5653_v51 = vpop.eup %4544  ;;  %v1362_v55 = vmul.f32 1.442695, %v1357_v19 }
 0x338   : > { %v1497_v52 = vpop.f32.mrf.mxu1  ;;  %v1368_v53 = vsel %vm1343_vm0, %v5653_v51, 0.0 }
 0x339   : > { %v1503_v56 = vmul.f32 0.17677669, %v1497_v52  ;;  %v1783_v57 = vpop.f32.mrf.mxu0  ;;  %1369 = vadd.xlane.f32.xlu2 %v1368_v53  ;;  %4546 = vpow2.f32 %v1362_v55 }
 0x33a   : > { %v1812_v58 = vmul.f32 0.17677669, %v1783_v57 }
 0x33b   : > { %v5658_v59 = vadd.f32 %v1505_v37, %v1503_v56 }
 0x33c   : > { %v5660_v61 = vadd.f32 %v1816_v54, %v1812_v58 }
 0x33d   : > { %v1519_v63 = vsel %vm1343_vm0, %v5658_v59, -inf }
 0x33e   : > { %v1352_v62 = vpop.xlane.xlu2 %1351  ;;  %1520 = vmax.xlane.f32.xlu0 %v1519_v63  ;;  %v1822_v49 = vsel %vm1343_vm0, %v5660_v61, -inf }
 0x33f   : > { %v1358_v0 = vsub.f32 %v5612_v10, %v1352_v62  ;;  %1823 = vmax.xlane.f32.xlu1 %v1822_v49  ;;  %v5668_v6 = vpop.eup %4546 }
 0x340   : > { %v1651_v1 = vpop.f32.mrf.mxu1  ;;  %v1371_v12 = vsel %vm1343_vm0, %v5668_v6, 0.0 }
 0x341   : > { %v1364_v3 = vmul.f32 1.442695, %v1358_v0  ;;  %v1785_v4 = vpop.f32.mrf.mxu0  ;;  %v1658_v9 = vmul.f32 0.17677669, %v1651_v1 }
 0x342   : > { %v1813_v5 = vmul.f32 0.17677669, %v1785_v4 }
 0x343   : > { %4548 = vpow2.f32 %v1364_v3  ;;  %v5678_v17 = vadd.f32 %v5622_v18, %v1658_v9 }
 0x344   : > { %v5670_v7 = vadd.f32 %v1817_v2, %v1813_v5 }
 0x345   : > { %v1672_v24 = vsel %vm1343_vm0, %v5678_v17, -inf }
 0x346   : > { %v1355_v8 = vpop.xlane.xlu1 %1354  ;;  %v1825_v11 = vsel %vm1343_vm0, %v5670_v7, -inf }
 0x347   : > { %v1359_v10 = vsub.f32 %v5616_v15, %v1355_v8  ;;  %1826 = vmax.xlane.f32.xlu0 %v1825_v11  ;;  %1372 = vadd.xlane.f32.xlu1 %v1371_v12 }
 0x348   : > { %v1653_v60 = vpop.f32.mrf.mxu1 }
 0x349   : > { %v1366_v13 = vmul.f32 1.442695, %v1359_v10  ;;  %v1659_v16 = vmul.f32 0.17677669, %v1653_v60  ;;  %v5680_v21 = vpop.eup %4548 }
 0x34a   : > { %v1374_v25 = vsel %vm1343_vm0, %v5680_v21, 0.0 }
 0x34b   : > { %v5683_v22 = vadd.f32 %v5630_v20, %v1659_v16  ;;  %4550 = vpow2.f32 %v1366_v13 }
 0x34d   : > { %v1675_v15 = vsel %vm1343_vm0, %v5683_v22, -inf }
 0x34e   : > { %1676 = vmax.xlane.f32.xlu2 %v1675_v15 }
 0x34f   : > { %1673 = vmax.xlane.f32.xlu0 %v1672_v24  ;;  %1375 = vadd.xlane.f32.xlu1 %v1374_v25 }
 0x350   : > { %v1807_v18 = vpop.f32.mrf.mxu1 }
 0x351   : > { %v5691_v26 = vpop.eup %4550  ;;  %v1814_v29 = vmul.f32 0.17677669, %v1807_v18 }
 0x352   : > { %v1377_v20 = vsel %vm1343_vm0, %v5691_v26, 0.0 }
 0x353   : > { %v5695_v34 = vadd.f32 %v1816_v54, %v1814_v29 }
 0x355   : > { %v1828_v38 = vsel %vm1343_vm0, %v5695_v34, -inf }
 0x357   : > { %1378 = vadd.xlane.f32.xlu0 %v1377_v20 }
 0x358   : > { %v1809_v31 = vpop.f32.mrf.mxu1 }
 0x359   : > { %v1815_v28 = vmul.f32 0.17677669, %v1809_v31 }
 0x35b   : > { %v5697_v36 = vadd.f32 %v1817_v2, %v1815_v28 }
 0x35d   : > { %v1831_v37 = vsel %vm1343_vm0, %v5697_v36, -inf }
 0x35e   : > { %1832 = vmax.xlane.f32.xlu2 %v1831_v37 }
 0x35f   : > { %1829 = vmax.xlane.f32.xlu0 %v1828_v38 }
 0x373   : > { %1719 = vrot.lane.b32.xlu0 %v5572_v30, %s5139_s27 }
 0x389   : > { %v1668_v39 = vpop.xlane.xlu2 %1667 }
 0x38a   : > { %v1678_v44 = vsub.f32 %v5625_v23, %v1668_v39 }
 0x38c   : > { %v1682_v45 = vmul.f32 1.442695, %v1678_v44 }
 0x391   : > { %v1512_v41 = vpop.xlane.xlu0 %1511  ;;  %v1671_v46 = vpop.xlane.xlu1 %1670 }
 0x392   : > { %v1522_v42 = vsub.f32 %v5636_v33, %v1512_v41  ;;  %v1679_v50 = vsub.f32 %v5634_v32, %v1671_v46 }
 0x394   : > { %v1526_v43 = vmul.f32 1.442695, %v1522_v42  ;;  %v1684_v33 = vmul.f32 1.442695, %v1679_v50 }
 0x396   : > { %4552 = vpow2.f32 %v1526_v43 }
 0x397   : > { %4554 = vpow2.f32 %v1682_v45 }
 0x399   : > { %v1515_v27 = vpop.xlane.xlu2 %1514 }
 0x39a   : > { %v1523_v19 = vsub.f32 %v5643_v40, %v1515_v27 }
 0x39c   : > { %v1528_v52 = vmul.f32 1.442695, %v1523_v19  ;;  %v5709_v53 = vpop.eup %4552 }
 0x39d   : > { %v1534_v54 = vsel %vm1343_vm0, %v5709_v53, 0.0  ;;  %v5713_v55 = vpop.eup %4554 }
 0x39e   : > { %4556 = vpow2.f32 %v1528_v52  ;;  %1535 = vadd.xlane.f32.xlu2 %v1534_v54  ;;  %v1690_v32 = vsel %vm1343_vm0, %v5713_v55, 0.0 }
 0x39f   : > { %4558 = vpow2.f32 %v1684_v33 }
 0x3a4   : > { %v5715_v23 = vpop.eup %4556 }
 0x3a5   : > { %v1537_v40 = vsel %vm1343_vm0, %v5715_v23, 0.0  ;;  %v5721_v57 = vpop.eup %4558 }
 0x3a6   : > { %1538 = vadd.xlane.f32.xlu1 %v1537_v40  ;;  %1691 = vadd.xlane.f32.xlu2 %v1690_v32  ;;  %v1693_v63 = vsel %vm1343_vm0, %v5721_v57, 0.0 }
 0x3a9   : > { %v1518_v56 = vpop.xlane.xlu1 %1517 }
 0x3aa   : > { %v1524_v58 = vsub.f32 %v5647_v47, %v1518_v56 }
 0x3ac   : > { %v1530_v62 = vmul.f32 1.442695, %v1524_v58  ;;  %v1370_v49 = vpop.xlane.xlu2 %1369 }
 0x3ae   : > { %4560 = vpow2.f32 %v1530_v62  ;;  %1694 = vadd.xlane.f32.xlu1 %v1693_v63 }
 0x3af   : > { %4562 = vrcp.f32 %v1370_v49 }
 0x3b1   : > { %v1521_v0 = vpop.xlane.xlu0 %1520 }
 0x3b2   : > { %v1824_v1 = vpop.xlane.xlu1 %1823  ;;  %v1525_v2 = vsub.f32 %v5658_v59, %v1521_v0 }
 0x3b3   : > { %v1834_v31 = vsub.f32 %v5660_v61, %v1824_v1 }
 0x3b4   : > { %v5727_v3 = vpop.eup %4560  ;;  %v1532_v4 = vmul.f32 1.442695, %v1525_v2 }
 0x3b5   : > { %v1540_v5 = vsel %vm1343_vm0, %v5727_v3, 0.0  ;;  %v4563_v9 = vpop.eup %4562  ;;  %v1838_v39 = vmul.f32 1.442695, %v1834_v31 }
 0x3b6   : > { %4564 = vpow2.f32 %v1532_v4  ;;  %1541 = vadd.xlane.f32.xlu2 %v1540_v5  ;;  %v1384_v59 = vmul.f32 %v4563_v9, %v5653_v51 }
 0x3b8   : > { %v1388_v13 = vpack.c.bf16 %v1384_v59, %v1384_v59 }
 0x3ba   : > { %v1373_v47 = vpop.xlane.xlu1 %1372  ;;  %v1827_v8 = vpop.xlane.xlu0 %1826  ;;  %v1398_v37 = vunpack.c.l.b16 %v1388_v13 }
 0x3bb   : > { %4566 = vrcp.f32 %v1373_v47  ;;  %v1835_v61 = vsub.f32 %v5670_v7, %v1827_v8 }
 0x3bc   : > { %v5731_v10 = vpop.eup %4564 }
 0x3bd   : > { %v1543_v11 = vsel %vm1343_vm0, %v5731_v10, 0.0  ;;  %v1840_v45 = vmul.f32 1.442695, %v1835_v61 }
 0x3be   : > { %1544 = vadd.xlane.f32.xlu1 %v1543_v11 }
 0x3c1   : > { %v4567_v12 = vpop.eup %4566  ;;  %v1677_v60 = vpop.xlane.xlu2 %1676 }
 0x3c2   : > { %v1385_v16 = vmul.f32 %v4567_v12, %v5668_v6  ;;  %v1681_v15 = vsub.f32 %v5683_v22, %v1677_v60  ;;  %v1376_v24 = vpop.xlane.xlu1 %1375  ;;  %v1674_v25 = vpop.xlane.xlu0 %1673 }
 0x3c3   : > { %v1680_v18 = vsub.f32 %v5678_v17, %v1674_v25  ;;  %4568 = vrcp.f32 %v1376_v24 }
 0x3c4   : > { %v1389_v29 = vpack.c.bf16 %v1385_v16, %v1385_v16  ;;  %v1688_v20 = vmul.f32 1.442695, %v1681_v15 }
 0x3c5   : > { %v1686_v28 = vmul.f32 1.442695, %v1680_v18 }
 0x3c6   : > { %v1399_v51 = vunpack.c.l.b16 %v1389_v29  ;;  %4570 = vpow2.f32 %v1688_v20 }
 0x3c7   : > { %4572 = vpow2.f32 %v1686_v28 }
 0x3c8   : > { %v1400_v38 = vpack.c.b16 %v1399_v51, %v1398_v37 }
 0x3c9   : > { %v4569_v22 = vpop.eup %4568 }
 0x3ca   : > { %3953 = vmatmul.msk.bf16.vlgmr.msra.gmra.mxu3 %vm1343_vm0, %v1400_v38  ;;  %v1379_v6 = vpop.xlane.xlu0 %1378  ;;  %v1386_v43 = vmul.f32 %v4569_v22, %v5680_v21 }
 0x3cb   : > { %1601 = vmatpush.bf16.msra.mxu3 %v5649_v48  ;;  %4574 = vrcp.f32 %v1379_v6 }
 0x3cc   : > { %v5742_v17 = vpop.eup %4570  ;;  %4576 = vpow2.f32 %v1838_v39  ;;  %v1390_v27 = vpack.c.bf16 %v1386_v43, %v1386_v43 }
 0x3cd   : > { %v5744_v41 = vpop.eup %4572  ;;  %v1699_v42 = vsel %vm1343_vm0, %v5742_v17, 0.0  ;;  %4578 = vpow2.f32 %v1840_v45 }
 0x3ce   : > { %1700 = vadd.xlane.f32.xlu0 %v1699_v42  ;;  %1744 = vrot.lane.b32.xlu2 %v5579_v35, %s5139_s27  ;;  %v1696_v48 = vsel %vm1343_vm0, %v5744_v41, 0.0  ;;  %v1426_v54 = vunpack.c.l.b16 %v1390_v27 }
 0x3cf   : > { %1697 = vadd.xlane.f32.xlu1 %v1696_v48 }
 0x3d1   : > { %v4575_v44 = vpop.eup %4574  ;;  %v1833_v46 = vpop.xlane.xlu2 %1832 }
 0x3d2   : > { %v1387_v19 = vmul.f32 %v4575_v44, %v5691_v26  ;;  %v1837_v7 = vsub.f32 %v5697_v36, %v1833_v46  ;;  %v5756_v50 = vpop.eup %4576  ;;  %v1830_v36 = vpop.xlane.xlu0 %1829 }
 0x3d3   : > { %v1846_v40 = vsel %vm1343_vm0, %v5756_v50, 0.0  ;;  %v5761_v56 = vpop.eup %4578  ;;  %v1836_v63 = vsub.f32 %v5695_v34, %v1830_v36 }
 0x3d4   : > { %v1391_v52 = vpack.c.bf16 %v1387_v19, %v1387_v19  ;;  %v1844_v21 = vmul.f32 1.442695, %v1837_v7  ;;  %v1849_v62 = vsel %vm1343_vm0, %v5761_v56, 0.0 }
 0x3d5   : > { %v1842_v49 = vmul.f32 1.442695, %v1836_v63 }
 0x3d6   : > { %v1427_v33 = vunpack.c.l.b16 %v1391_v52  ;;  %4580 = vpow2.f32 %v1844_v21 }
 0x3d7   : > { %1847 = vadd.xlane.f32.xlu1 %v1846_v40  ;;  %4582 = vpow2.f32 %v1842_v49 }
 0x3d8   : > { %v1428_v32 = vpack.c.b16 %v1427_v33, %v1426_v54 }
 0x3da   : > { %3954 = vmatmul.msk.bf16.vlgmr.msrb.gmra.mxu3 %vm1343_vm0, %v1428_v32 }
 0x3dc   : > { %v5763_v26 = vpop.eup %4580 }
 0x3dd   : > { %v1855_v58 = vsel %vm1343_vm0, %v5763_v26, 0.0  ;;  %v5770_v1 = vpop.eup %4582 }
 0x3de   : > { %1856 = vadd.xlane.f32.xlu0 %v1855_v58  ;;  %v1852_v2 = vsel %vm1343_vm0, %v5770_v1, 0.0 }
 0x3df   : > { %1850 = vadd.xlane.f32.xlu1 %v1849_v62 }
 0x3e5   : > { %v1720_v0 = vpop.permute.xlu0 %1719 }
 0x3e6   : > { %1732 = vmatpush.bf16.msra.mxu2 %v1720_v0 }
 0x3f7   : > { %1853 = vadd.xlane.f32.xlu2 %v1852_v2 }
 0x3f8   : > { %1875 = vrot.lane.b32.xlu1 %v5572_v30, %s5140_s1 }
 0x400   : > { %1900 = vrot.lane.b32.xlu1 %v5579_v35, %s5140_s1 }
 0x411   : > { %v1536_v4 = vpop.xlane.xlu2 %1535 }
 0x412   : > { %4584 = vrcp.f32 %v1536_v4 }
 0x418   : > { %v4585_v34 = vpop.eup %4584 }
 0x419   : > { %v1539_v5 = vpop.xlane.xlu1 %1538  ;;  %v1550_v47 = vmul.f32 %v4585_v34, %v5709_v53  ;;  %v1692_v59 = vpop.xlane.xlu2 %1691 }
 0x41a   : > { %4586 = vrcp.f32 %v1539_v5 }
 0x41b   : > { %v1554_v9 = vpack.c.bf16 %v1550_v47, %v1550_v47 }
 0x41d   : > { %v1560_v30 = vunpack.c.l.b16 %v1554_v9 }
 0x420   : > { %v4587_v8 = vpop.eup %4586 }
 0x421   : > { %v1551_v11 = vmul.f32 %v4587_v8, %v5715_v23  ;;  %v1695_v12 = vpop.xlane.xlu1 %1694 }
 0x422   : > { %4588 = vrcp.f32 %v1695_v12 }
 0x423   : > { %v1555_v60 = vpack.c.bf16 %v1551_v11, %v1551_v11  ;;  %4590 = vrcp.f32 %v1692_v59 }
 0x425   : > { %v1561_v13 = vunpack.c.l.b16 %v1555_v60 }
 0x427   : > { %v1562_v16 = vpack.c.b16 %v1561_v13, %v1560_v30 }
 0x428   : > { %v4589_v35 = vpop.eup %4588 }
 0x429   : > { %3957 = vmatmul.msk.bf16.vlgmr.msrb.gmra.mxu2 %vm1343_vm0, %v1562_v16  ;;  %v1542_v15 = vpop.xlane.xlu2 %1541  ;;  %v4591_v24 = vpop.eup %4590  ;;  %v1707_v25 = vmul.f32 %v4589_v35, %v5721_v57 }
 0x42a   : > { %4592 = vrcp.f32 %v1542_v15  ;;  %v1706_v53 = vmul.f32 %v4591_v24, %v5713_v55 }
 0x42b   : > { %v1711_v18 = vpack.c.bf16 %v1707_v25, %v1707_v25 }
 0x42c   : > { %v1710_v23 = vpack.c.bf16 %v1706_v53, %v1706_v53 }
 0x42d   : > { %v1717_v28 = vunpack.c.l.b16 %v1711_v18 }
 0x42e   : > { %v1716_v37 = vunpack.c.l.b16 %v1710_v23 }
 0x430   : > { %v4593_v31 = vpop.eup %4592  ;;  %v1718_v38 = vpack.c.b16 %v1717_v28, %v1716_v37 }
 0x431   : > { %v1745_v29 = vpop.permute.xlu2 %1744  ;;  %v1545_v20 = vpop.xlane.xlu1 %1544  ;;  %v1552_v51 = vmul.f32 %v4593_v31, %v5727_v3 }
 0x432   : > { %4594 = vrcp.f32 %v1545_v20  ;;  %1757 = vmatpush.bf16.msrb.mxu3 %v1745_v29 }
 0x433   : > { %v1556_v6 = vpack.c.bf16 %v1552_v51, %v1552_v51 }
 0x435   : > { %v1585_v55 = vunpack.c.l.b16 %v1556_v6  ;;  %v4295_v6 = vld [vmem:[%s5445_s21 + $0x38] sm:$0xff] }
 0x436   : > { %2052 = vmatpush.bf16.msrb.mxu0 %v4295_v6 }
 0x438   : > { %v4595_v39 = vpop.eup %4594 }
 0x439   : > { %v1553_v22 = vmul.f32 %v4595_v39, %v5731_v10  ;;  %3961 = vmatmul.msk.bf16.vlgmr.msra.gmra.mxu2 %vm1343_vm0, %v1718_v38 }
 0x43b   : > { %v1557_v57 = vpack.c.bf16 %v1553_v22, %v1553_v22  ;;  %v4294_v22 = vld [vmem:[%s5445_s21 + $0x30] sm:$0xff] }
 0x43c   : > { %2053 = vmatpush.bf16.msrb.mxu0 %v4294_v22 }
 0x43d   : > { %v1586_v61 = vunpack.c.l.b16 %v1557_v57  ;;  %v4293_v57 = vld [vmem:[%s5445_s21 + $0x28] sm:$0xff] }
 0x43f   : > { %v1587_v42 = vpack.c.b16 %v1586_v61, %v1585_v55  ;;  %v4292_v55 = vld [vmem:[%s5445_s21 + $0x20] sm:$0xff]  ;;  %v4291_v61 = vld [vmem:[%s5445_s21 + $0x18] sm:$0xff] }
 0x440   : > { %2054 = vmatpush.bf16.msrb.mxu0 %v4293_v57 }
 0x441   : > { %3958 = vmatmul.msk.bf16.vlgmr.msra.gmra.mxu3 %vm1343_vm0, %v1587_v42  ;;  %v1701_v43 = vpop.xlane.xlu0 %1700  ;;  %v4290_v42 = vld [vmem:[%s5445_s21 + $0x10] sm:$0xff] }
 0x442   : > { %v1698_v48 = vpop.xlane.xlu1 %1697  ;;  %4596 = vrcp.f32 %v1701_v43  ;;  %v4289_v43 = vld [vmem:[%s5445_s21 + $0x8] sm:$0xff] }
 0x443   : > { %4598 = vrcp.f32 %v1698_v48  ;;  %v4288_v48 = vld [vmem:[%s5445_s21] sm:$0xff]  ;;  %s6816_s21 = scalar_lea.vmem [#allocation16], %s5423_s4 }
 0x444   : > { %2055 = vmatpush.bf16.msrb.mxu0 %v4292_v55 }
 0x448   : > { %v4597_v44 = vpop.eup %4596  ;;  %2056 = vmatpush.bf16.msrb.mxu0 %v4291_v61 }
 0x449   : > { %v4599_v45 = vpop.eup %4598  ;;  %v1709_v3 = vmul.f32 %v4597_v44, %v5742_v17 }
 0x44a   : > { %v1708_v46 = vmul.f32 %v4599_v45, %v5744_v41  ;;  %v1848_v27 = vpop.xlane.xlu1 %1847 }
 0x44b   : > { %v1713_v10 = vpack.c.bf16 %v1709_v3, %v1709_v3 }
 0x44c   : > { %v1712_v19 = vpack.c.bf16 %v1708_v46, %v1708_v46  ;;  %2057 = vmatpush.bf16.msrb.mxu0 %v4290_v42 }
 0x44d   : > { %v1742_v7 = vunpack.c.l.b16 %v1713_v10  ;;  %v1419_v12 = vpop.f32.mrf.mxu3 }
 0x44e   : > { %v1741_v52 = vunpack.c.l.b16 %v1712_v19 }
 0x450   : > { %v1743_v21 = vpack.c.b16 %v1742_v7, %v1741_v52  ;;  %2058 = vmatpush.bf16.msrb.mxu0 %v4289_v43 }
 0x451   : > { %v1857_v17 = vpop.xlane.xlu0 %1856 }
 0x452   : > { %3962 = vmatmul.msk.bf16.vlgmr.msrb.gmra.mxu3 %vm1343_vm0, %v1743_v21  ;;  %v1851_v54 = vpop.xlane.xlu1 %1850 }
 0x453   : > { %4600 = vrcp.f32 %v1851_v54 }
 0x454   : > { %4602 = vrcp.f32 %v1848_v27  ;;  %2059 = vmatpush.bf16.msrb.mxu0 %v4288_v48 }
 0x455   : > { %4604 = vrcp.f32 %v1857_v17  ;;  %v1421_v60 = vpop.f32.mrf.mxu3 }
 0x459   : > { %v4601_v33 = vpop.eup %4600 }
 0x45a   : > { %v4603_v40 = vpop.eup %4602  ;;  %v1863_v32 = vmul.f32 %v4601_v33, %v5761_v56 }
 0x45b   : > { %v1862_v36 = vmul.f32 %v4603_v40, %v5756_v50  ;;  %v4605_v2 = vpop.eup %4604 }
 0x45c   : > { %v1867_v58 = vpack.c.bf16 %v1863_v32, %v1863_v32  ;;  %v1865_v5 = vmul.f32 %v4605_v2, %v5763_v26 }
 0x45d   : > { %v1866_v41 = vpack.c.bf16 %v1862_v36, %v1862_v36  ;;  %v5796_v13 = vpop.f32.mrf.mxu3 }
 0x45e   : > { %v1873_v62 = vunpack.c.l.b16 %v1867_v58  ;;  %v1869_v56 = vpack.c.bf16 %v1865_v5, %v1865_v5 }
 0x45f   : > { %v1872_v63 = vunpack.c.l.b16 %v1866_v41 }
 0x460   : > { %v1898_v9 = vunpack.c.l.b16 %v1869_v56 }
 0x461   : > { %v1874_v4 = vpack.c.b16 %v1873_v62, %v1872_v63 }
 0x465   : > { %v5799_v35 = vpop.f32.mrf.mxu3 }
 0x46a   : > { %v1876_v0 = vpop.permute.xlu1 %1875  ;;  %v1854_v49 = vpop.xlane.xlu2 %1853 }
 0x46b   : > { %4606 = vrcp.f32 %v1854_v49  ;;  %1888 = vmatpush.bf16.msrb.mxu2 %v1876_v0 }
 0x46e   : > { %3965 = vmatmul.msk.bf16.vlgmr.msrb.gmra.mxu2 %vm1343_vm0, %v1874_v4 }
 0x471   : > { %v4607_v34 = vpop.eup %4606 }
 0x472   : > { %v1864_v50 = vmul.f32 %v4607_v34, %v5770_v1  ;;  %v1901_v47 = vpop.permute.xlu1 %1900 }
 0x473   : > { %1913 = vmatpush.bf16.msra.mxu3 %v1901_v47 }
 0x474   : > { %v1868_v8 = vpack.c.bf16 %v1864_v50, %v1864_v50 }
 0x476   : > { %v1897_v11 = vunpack.c.l.b16 %v1868_v8 }
 0x478   : > { %v1899_v59 = vpack.c.b16 %v1898_v9, %v1897_v11 }
 0x47a   : > { %3966 = vmatmul.msk.bf16.vlgmr.msra.gmra.mxu3 %vm1343_vm0, %v1899_v59  ;;  %v4530_v59 = vld [vmem:[%s6810_s10] ss:$0 sm:$0xff] }
 0x4ac   : > { %v1578_v30 = vpop.f32.mrf.mxu2 }
 0x4b4   : > { %v1580_v26 = vpop.f32.mrf.mxu2 }
 0x4b5   : > { %v4498_v16 = vpack.i.bf16 %v1580_v26, %v1578_v30  ;;  %v4680_v30 = vld [vmem:[#allocation20] sm:$0xff] }
 0x4b7   : > { %4499 = vrot.lane.b32.xlu0 %v4498_v16, %s5140_s1 }
 0x4bc   : > { %v1734_v1 = vpop.f32.mrf.mxu2 }
 0x4c4   : > { %v1603_v15 = vpop.f32.mrf.mxu3  ;;  %v1736_v24 = vpop.f32.mrf.mxu2 }
 0x4c5   : > { %v4503_v25 = vpack.i.bf16 %v1736_v24, %v1734_v1 }
 0x4c7   : > { %4504 = vrot.lane.b32.xlu1 %v4503_v25, %s5139_s27  ;;  %v4682_v25 = vld [vmem:[#allocation20 + $0x10] sm:$0xff] }
 0x4cc   : > { %v1605_v53 = vpop.f32.mrf.mxu3 }
 0x4cd   : > { %v4513_v18 = vpack.i.bf16 %v1605_v53, %v1603_v15 }
 0x4cf   : > { %4514 = vrot.lane.b32.xlu2 %v4513_v18, %s5140_s1 }
 0x4d5   : > { %v1759_v23 = vpop.f32.mrf.mxu3 }
 0x4dd   : > { %v1761_v20 = vpop.f32.mrf.mxu3 }
 0x4de   : > { %v4518_v51 = vpack.i.bf16 %v1761_v20, %v1759_v23 }
 0x4f1   : > { %v1890_v29 = vpop.f32.mrf.mxu2 }
 0x4f9   : > { %v1892_v31 = vpop.f32.mrf.mxu2 }
 0x4fa   : > { %v4508_v28 = vpack.i.bf16 %v1892_v31, %v1890_v29  ;;  %v4683_v29 = vld [vmem:[#allocation20 + $0x18] sm:$0xff] }
 0x4fc   : > { %4509 = vrot.lane.b32.xlu1 %v4508_v28, %s5138_s3 }
 0x4fd   : > { %v1915_v37 = vpop.f32.mrf.mxu3 }
 0x504   : > { %4519 = vrot.lane.b32.xlu1 %v4518_v51, %s5139_s27 }
 0x505   : > { %v1917_v38 = vpop.f32.mrf.mxu3 }
 0x506   : > { %v4523_v39 = vpack.i.bf16 %v1917_v38, %v1915_v37 }
 0x508   : > { %4524 = vrot.lane.b32.xlu0 %v4523_v39, %s5138_s3 }
 0x529   : > { %v4500_v45 = vpop.permute.xlu0 %4499  ;;  %v4515_v58 = vpop.permute.xlu2 %4514 }
 0x52a   : > { %v4502_v3 = vunpack.i.h.bf16 %v4500_v45  ;;  %v4501_v46 = vunpack.i.l.bf16 %v4500_v45  ;;  %v4517_v62 = vunpack.i.h.bf16 %v4515_v58  ;;  %v4516_v63 = vunpack.i.l.bf16 %v4515_v58  ;;  %v4320_v58 = vld [vmem:[%s5461_s13 + $0xc4] sm:$0xf] }
 0x52c   : > { %v1969_v7 = vsel %vm1282_vm13, %v1421_v60, %v4502_v3  ;;  %v1968_v52 = vsel %vm1282_vm13, %v1419_v12, %v4501_v46  ;;  %v1971_v34 = vsel %vm1282_vm13, %v5799_v35, %v4517_v62  ;;  %v1970_v56 = vsel %vm1282_vm13, %v5796_v13, %v4516_v63  ;;  %v4681_v35 = vld [vmem:[#allocation20 + $0x8] sm:$0xff]  ;;  %v4113_v3 = vld [vmem:[%s5461_s13 + $0xe0] sm:$0xf]  ;;  %v4326_v46 = vld [vmem:[%s5461_s13 + $0xec] sm:$0xf0] }
 0x52d   : > { %v4099_v62 = vld [vmem:[%s5461_s13 + $0xd0] sm:$0xf0]  ;;  %v4105_v63 = vld [vmem:[%s5461_s13 + $0xc8] sm:$0xf] }
 0x539   : > { %v4505_v44 = vpop.permute.xlu1 %4504 }
 0x53a   : > { %v4507_v27 = vunpack.i.h.bf16 %v4505_v44  ;;  %v4506_v10 = vunpack.i.l.bf16 %v4505_v44 }
 0x53c   : > { %v1973_v33 = vsel %vm1972_vm1, %v1968_v52, %v4506_v10  ;;  %v1974_v40 = vsel %vm1972_vm1, %v1969_v7, %v4507_v27  ;;  %v4324_v27 = vld [vmem:[%s5461_s13 + $0xe4] sm:$0xf]  ;;  %v4114_v10 = vor.u32 %v4326_v46, %v4113_v3  ;;  %v4121_v7 = vld [vmem:[%s5461_s13 + $0xe8] sm:$0xf]  ;;  %v4327_v52 = vld [vmem:[%s5461_s13 + $0xf4] sm:$0xf0] }
 0x53e   : > { %2375 = vmatpush.bf16.msrb.mxu1 %v4114_v10  ;;  %v4059_v10 = vld [vmem:[%s5461_s13 + $0x78] sm:$0xf0] }
 0x56e   : > { %v4510_v19 = vpop.permute.xlu1 %4509 }
 0x56f   : > { %v4512_v21 = vunpack.i.h.bf16 %v4510_v19  ;;  %v4511_v54 = vunpack.i.l.bf16 %v4510_v19  ;;  %v4115_v19 = vld [vmem:[%s5461_s13 + $0xf0] sm:$0xf0] }
 0x571   : > { %v1978_v32 = vsel %vm1977_vm2, %v1973_v33, %v4511_v54  ;;  %v1979_v36 = vsel %vm1977_vm2, %v1974_v40, %v4512_v21  ;;  %v4118_v21 = vor.u32 %v4324_v27, %v4115_v19  ;;  %v4122_v54 = vor.u32 %v4327_v52, %v4121_v7  ;;  %v4325_v33 = vld [vmem:[%s5461_s13 + $0xec] sm:$0xf]  ;;  %v4123_v40 = vld [vmem:[%s5461_s13 + $0xf8] sm:$0xf0]  ;;  %v4033_v7 = vld [vmem:[%s5461_s13 + $0x40] sm:$0xf] }
 0x572   : > { %v1982_v17 = vpack.c.bf16 %v1979_v36, %v1978_v32  ;;  %v4126_v32 = vor.u32 %v4325_v33, %v4123_v40  ;;  %v4097_v36 = vld [vmem:[%s5461_s13 + $0xc0] sm:$0xf]  ;;  %v4309_v27 = vld [vmem:[%s5461_s13 + $0x6c] sm:$0xf]  ;;  %v4306_v52 = vld [vmem:[%s5461_s13 + $0x4c] sm:$0xf0] }
 0x573   : > { %2394 = vmatpush.bf16.msra.mxu2 %v4118_v21  ;;  %2413 = vmatpush.bf16.msrb.mxu3 %v4122_v54  ;;  %v4062_v19 = vor.u32 %v4309_v27, %v4059_v10  ;;  %v4304_v21 = vld [vmem:[%s5461_s13 + $0x44] sm:$0xf]  ;;  %v4034_v54 = vor.u32 %v4306_v52, %v4033_v7  ;;  %v4035_v33 = vld [vmem:[%s5461_s13 + $0x50] sm:$0xf0]  ;;  %v4041_v40 = vld [vmem:[%s5461_s13 + $0x48] sm:$0xf] }
 0x574   : > { %2060 = vmatmul.bf16.vlgmr.msrb.gmra.mxu0 %v1982_v17  ;;  %v4322_v17 = vld [vmem:[%s5461_s13 + $0xcc] sm:$0xf0] }
 0x575   : > { %2432 = vmatpush.bf16.msra.mxu0 %v4126_v32  ;;  %v4307_v32 = vld [vmem:[%s5461_s13 + $0x54] sm:$0xf0] }
 0x576   : > { %v4520_v41 = vpop.permute.xlu1 %4519 }
 0x577   : > { %v4522_v0 = vunpack.i.h.bf16 %v4520_v41  ;;  %v4521_v49 = vunpack.i.l.bf16 %v4520_v41  ;;  %v4098_v41 = vor.u32 %v4322_v17, %v4097_v36  ;;  %v4038_v36 = vor.u32 %v4304_v21, %v4035_v33 }
 0x578   : > { %v4042_v17 = vor.u32 %v4307_v32, %v4041_v40 }
 0x579   : > { %v1975_v50 = vsel %vm1972_vm1, %v1970_v56, %v4521_v49  ;;  %v1976_v47 = vsel %vm1972_vm1, %v1971_v34, %v4522_v0  ;;  %v4323_v0 = vld [vmem:[%s5461_s13 + $0xd4] sm:$0xf0]  ;;  %v4102_v49 = vor.u32 %v4320_v58, %v4099_v62  ;;  %2376 = vmatpush.bf16.msrb.mxu1 %v4098_v41  ;;  %v4081_v56 = vld [vmem:[%s5461_s13 + $0xa0] sm:$0xf]  ;;  %v4305_v58 = vld [vmem:[%s5461_s13 + $0x4c] sm:$0xf] }
 0x57a   : > { %v4525_v2 = vpop.permute.xlu0 %4524  ;;  %v4043_v41 = vld [vmem:[%s5461_s13 + $0x58] sm:$0xf0] }
 0x57b   : > { %v4527_v4 = vunpack.i.h.bf16 %v4525_v2  ;;  %v4526_v5 = vunpack.i.l.bf16 %v4525_v2  ;;  %v4106_v2 = vor.u32 %v4323_v0, %v4105_v63  ;;  %2395 = vmatpush.bf16.msra.mxu2 %v4102_v49  ;;  %v4046_v62 = vor.u32 %v4305_v58, %v4043_v41  ;;  %v4017_v63 = vld [vmem:[%s5461_s13 + $0x20] sm:$0xf]  ;;  %v4302_v0 = vld [vmem:[%s5461_s13 + $0x2c] sm:$0xf0]  ;;  %v4300_v49 = vld [vmem:[%s5461_s13 + $0x24] sm:$0xf] }
 0x57d   : > { %v1980_v8 = vsel %vm1977_vm2, %v1975_v50, %v4526_v5  ;;  %v1981_v9 = vsel %vm1977_vm2, %v1976_v47, %v4527_v4  ;;  %v4321_v4 = vld [vmem:[%s5461_s13 + $0xcc] sm:$0xf]  ;;  %v4107_v5 = vld [vmem:[%s5461_s13 + $0xd8] sm:$0xf0]  ;;  %2414 = vmatpush.bf16.msrb.mxu3 %v4106_v2  ;;  %v4318_v50 = vld [vmem:[%s5461_s13 + $0xac] sm:$0xf0]  ;;  %v4018_v2 = vor.u32 %v4302_v0, %v4017_v63 }
 0x57e   : > { %v1983_v11 = vpack.c.bf16 %v1981_v9, %v1980_v8  ;;  %v4110_v34 = vor.u32 %v4321_v4, %v4107_v5  ;;  %v4316_v47 = vld [vmem:[%s5461_s13 + $0xa4] sm:$0xf]  ;;  %v4082_v8 = vor.u32 %v4318_v50, %v4081_v56  ;;  %v4083_v9 = vld [vmem:[%s5461_s13 + $0xb0] sm:$0xf0]  ;;  %v4025_v5 = vld [vmem:[%s5461_s13 + $0x28] sm:$0xf] }
 0x57f   : > { %v4019_v4 = vld [vmem:[%s5461_s13 + $0x30] sm:$0xf0] }
 0x580   : > { %2433 = vmatpush.bf16.msra.mxu0 %v4110_v34  ;;  %2377 = vmatpush.bf16.msrb.mxu1 %v4082_v8  ;;  %v4303_v34 = vld [vmem:[%s5461_s13 + $0x34] sm:$0xf0]  ;;  %v4022_v50 = vor.u32 %v4300_v49, %v4019_v4  ;;  %v4301_v8 = vld [vmem:[%s5461_s13 + $0x2c] sm:$0xf]  ;;  %v4532_v49 = vld [vmem:[%s6816_s21] ss:$0 sm:$0xff] }
 0x584   : > { %2065 = vmatmul.bf16.gmra.mxu0 %v1983_v11  ;;  %v4089_v11 = vld [vmem:[%s5461_s13 + $0xa8] sm:$0xf] }
 0x5f1   : > { %v2061_v12 = vpop.f32.mrf.mxu0 }
 0x5f2   : > { %v2062_v60 = vadd.f32 %v4530_v59, %v2061_v12  ;;  %v4086_v12 = vor.u32 %v4316_v47, %v4083_v9  ;;  %v4026_v47 = vor.u32 %v4303_v34, %v4025_v5  ;;  %v4027_v9 = vld [vmem:[%s5461_s13 + $0x38] sm:$0xf0] }
 0x5f4   : > { %v5830_v26 = vadd.f32 %v4680_v30, %v2062_v60  ;;  %v4317_v30 = vld [vmem:[%s5461_s13 + $0xac] sm:$0xf]  ;;  %2396 = vmatpush.bf16.msra.mxu2 %v4086_v12  ;;  %v4001_v12 = vld [vmem:[%s5461_s13] sm:$0xf] }
 0x5f6   : > { %6811 = vst [vmem:[#allocation33_spill] sm:$0xff] %v5830_v26  ;;  %2077 = vadd.xlane.f32.xlu1 %v5830_v26 }
 0x5f9   : > { %v2063_v13 = vpop.f32.mrf.mxu0 }
 0x5fa   : > { %v2064_v16 = vadd.f32 %v4530_v59, %v2063_v13  ;;  %v4091_v13 = vld [vmem:[%s5461_s13 + $0xb8] sm:$0xf0] }
 0x5fc   : > { %v5833_v1 = vadd.f32 %v4681_v35, %v2064_v16  ;;  %v4094_v16 = vor.u32 %v4317_v30, %v4091_v13  ;;  %v4065_v35 = vld [vmem:[%s5461_s13 + $0x80] sm:$0xf]  ;;  %v4296_v30 = vld [vmem:[%s5461_s13 + $0x4] sm:$0xf] }
 0x5fe   : > { %6812 = vst [vmem:[#allocation34_spill] sm:$0xff] %v5833_v1  ;;  %2079 = vadd.xlane.f32.xlu0 %v5833_v1  ;;  %2434 = vmatpush.bf16.msra.mxu0 %v4094_v16 }
 0x601   : > { %v2066_v15 = vpop.f32.mrf.mxu0 }
 0x602   : > { %v2067_v24 = vadd.f32 %v4530_v59, %v2066_v15  ;;  %v4314_v15 = vld [vmem:[%s5461_s13 + $0x8c] sm:$0xf0] }
 0x604   : > { %v5836_v53 = vadd.f32 %v4682_v25, %v2067_v24  ;;  %v4312_v24 = vld [vmem:[%s5461_s13 + $0x84] sm:$0xf]  ;;  %v4066_v25 = vor.u32 %v4314_v15, %v4065_v35  ;;  %v4003_v35 = vld [vmem:[%s5461_s13 + $0x10] sm:$0xf0]  ;;  %v4009_v15 = vld [vmem:[%s5461_s13 + $0x8] sm:$0xf] }
 0x606   : > { %6813 = vst [vmem:[#allocation35_spill] sm:$0xff] %v5836_v53  ;;  %2081 = vadd.xlane.f32.xlu2 %v5836_v53  ;;  %2378 = vmatpush.bf16.msrb.mxu1 %v4066_v25  ;;  %v4299_v25 = vld [vmem:[%s5461_s13 + $0x14] sm:$0xf0] }
 0x609   : > { %v2068_v18 = vpop.f32.mrf.mxu0 }
 0x60a   : > { %v2069_v23 = vadd.f32 %v4530_v59, %v2068_v18  ;;  %v4319_v59 = vld [vmem:[%s5461_s13 + $0xb4] sm:$0xf0]  ;;  %v4067_v18 = vld [vmem:[%s5461_s13 + $0x90] sm:$0xf0] }
 0x60b   : > { %v4090_v60 = vor.u32 %v4319_v59, %v4089_v11  ;;  %v4030_v59 = vor.u32 %v4301_v8, %v4027_v9 }
 0x60c   : > { %v5839_v20 = vadd.f32 %v4683_v29, %v2069_v23  ;;  %v4073_v23 = vld [vmem:[%s5461_s13 + $0x88] sm:$0xf]  ;;  %v4315_v29 = vld [vmem:[%s5461_s13 + $0x94] sm:$0xf0] }
 0x60d   : > { %2415 = vmatpush.bf16.msrb.mxu3 %v4090_v60  ;;  %v4298_v60 = vld [vmem:[%s5461_s13 + $0xc] sm:$0xf0] }
 0x60e   : > { %6814 = vst [vmem:[#allocation36_spill] sm:$0xff] %v5839_v20  ;;  %2083 = vadd.xlane.f32.xlu1 %v5839_v20  ;;  %v4002_v16 = vor.u32 %v4298_v60, %v4001_v12 }
 0x669   : > { %v2078_v31 = vpop.xlane.xlu1 %2077 }
 0x66a   : > { %v2085_v28 = vmul.f32 %v2078_v31, %v5484_v14  ;;  %v4070_v31 = vor.u32 %v4312_v24, %v4067_v18  ;;  %v4006_v24 = vor.u32 %v4296_v30, %v4003_v35  ;;  %v4297_v18 = vld [vmem:[%s5461_s13 + $0xc] sm:$0xf] }
 0x66c   : > { %v5844_v37 = vsub.f32 %v5830_v26, %v2085_v28  ;;  %v4074_v28 = vor.u32 %v4315_v29, %v4073_v23  ;;  %2397 = vmatpush.bf16.msra.mxu2 %v4070_v31  ;;  %v4011_v23 = vld [vmem:[%s5461_s13 + $0x18] sm:$0xf0]  ;;  %v4010_v29 = vor.u32 %v4299_v25, %v4009_v15  ;;  %v4337_v26 = vld [vmem:[%s5481_s12 + $0x48] sm:$0xff] }
 0x66d   : > { %v4014_v31 = vor.u32 %v4297_v18, %v4011_v23  ;;  %v2205_v18 = vld [vmem:[%s5479_s16] sm:$0xf] }
 0x66e   : > { %v2093_v51 = vmul.f32 %v5844_v37, %v5844_v37  ;;  %2416 = vmatpush.bf16.msrb.mxu3 %v4074_v28  ;;  %v5943_v23 = vperm.slane %v2205_v18, 0 }
 0x670   : > { %2097 = vadd.xlane.f32.xlu0 %v2093_v51  ;;  %v4313_v51 = vld [vmem:[%s5461_s13 + $0x8c] sm:$0xf] }
 0x671   : > { %v2080_v38 = vpop.xlane.xlu0 %2079 }
 0x672   : > { %v2086_v39 = vmul.f32 %v2080_v38, %v5484_v14  ;;  %v4075_v38 = vld [vmem:[%s5461_s13 + $0x98] sm:$0xf0] }
 0x674   : > { %v5850_v6 = vsub.f32 %v5833_v1, %v2086_v39  ;;  %v4078_v39 = vor.u32 %v4313_v51, %v4075_v38 }
 0x676   : > { %v2094_v22 = vmul.f32 %v5850_v6, %v5850_v6  ;;  %2435 = vmatpush.bf16.msra.mxu0 %v4078_v39 }
 0x678   : > { %2099 = vadd.xlane.f32.xlu1 %v2094_v22  ;;  %v4049_v22 = vld [vmem:[%s5461_s13 + $0x60] sm:$0xf] }
 0x679   : > { %v2082_v57 = vpop.xlane.xlu2 %2081 }
 0x67a   : > { %v2087_v55 = vmul.f32 %v2082_v57, %v5484_v14  ;;  %v4310_v57 = vld [vmem:[%s5461_s13 + $0x6c] sm:$0xf0]  ;;  %2436 = vmatpush.bf16.msra.mxu0 %v4062_v19 }
 0x67c   : > { %v5856_v61 = vsub.f32 %v5836_v53, %v2087_v55  ;;  %v4308_v55 = vld [vmem:[%s5461_s13 + $0x64] sm:$0xf] }
 0x67e   : > { %v2095_v42 = vmul.f32 %v5856_v61, %v5856_v61  ;;  %2437 = vmatpush.bf16.msra.mxu0 %v4046_v62 }
 0x680   : > { %2101 = vadd.xlane.f32.xlu0 %v2095_v42  ;;  %v4050_v42 = vor.u32 %v4310_v57, %v4049_v22 }
 0x681   : > { %v2084_v43 = vpop.xlane.xlu1 %2083 }
 0x682   : > { %v2088_v48 = vmul.f32 %v2084_v43, %v5484_v14  ;;  %v4051_v43 = vld [vmem:[%s5461_s13 + $0x70] sm:$0xf0]  ;;  %2379 = vmatpush.bf16.msrb.mxu1 %v4050_v42  ;;  %2438 = vmatpush.bf16.msra.mxu0 %v4030_v59 }
 0x683   : > { %v4054_v3 = vor.u32 %v4308_v55, %v4051_v43 }
 0x684   : > { %v5862_v44 = vsub.f32 %v5839_v20, %v2088_v48  ;;  %v4057_v48 = vld [vmem:[%s5461_s13 + $0x68] sm:$0xf] }
 0x685   : > { %2398 = vmatpush.bf16.msra.mxu2 %v4054_v3  ;;  %v4353_v20 = vld [vmem:[%s5481_s12 + $0xc8] sm:$0xff] }
 0x686   : > { %v2096_v45 = vmul.f32 %v5862_v44, %v5862_v44  ;;  %2380 = vmatpush.bf16.msrb.mxu1 %v4034_v54  ;;  %2439 = vmatpush.bf16.msra.mxu0 %v4014_v31 }
 0x688   : > { %2103 = vadd.xlane.f32.xlu2 %v2096_v45  ;;  %v4311_v45 = vld [vmem:[%s5461_s13 + $0x74] sm:$0xf0] }
 0x689   : > { %v4058_v46 = vor.u32 %v4311_v45, %v4057_v48  ;;  %2399 = vmatpush.bf16.msra.mxu2 %v4038_v36  ;;  %v4531_v36 = vld [vmem:[%s6815_s18] ss:$0 sm:$0xff] }
 0x68a   : > { %2381 = vmatpush.bf16.msrb.mxu1 %v4018_v2 }
 0x68b   : > { %2417 = vmatpush.bf16.msrb.mxu3 %v4058_v46 }
 0x68d   : > { %2400 = vmatpush.bf16.msra.mxu2 %v4022_v50 }
 0x68e   : > { %2382 = vmatpush.bf16.msrb.mxu1 %v4002_v16 }
 0x68f   : > { %2418 = vmatpush.bf16.msrb.mxu3 %v4042_v17 }
 0x691   : > { %2401 = vmatpush.bf16.msra.mxu2 %v4006_v24 }
 0x693   : > { %2419 = vmatpush.bf16.msrb.mxu3 %v4026_v47 }
 0x697   : > { %2420 = vmatpush.bf16.msrb.mxu3 %v4010_v29  ;;  %v5945_v29 = vperm.slane %v2205_v18, 3 }
 0x6e3   : > { %v2098_v56 = vpop.xlane.xlu0 %2097 }
 0x6e4   : > { %v2105_v11 = vmul.f32 %v2098_v56, %v5484_v14 }
 0x6e6   : > { %v2109_v13 = vadd.f32 1e-05, %v2105_v11 }
 0x6e8   : > { %4608 = vrsqrt.f32 %v2109_v13  ;;  %vm2119_vm4 = vweird.f32 %v2109_v13 }
 0x6eb   : > { %v2100_v28 = vpop.xlane.xlu1 %2099 }
 0x6ec   : > { %v2106_v51 = vmul.f32 %v2100_v28, %v5484_v14 }
 0x6ee   : > { %v4609_v38 = vpop.eup %4608  ;;  %v2110_v39 = vadd.f32 1e-05, %v2106_v51 }
 0x6ef   : > { %v2114_v22 = vmul.f32 %v4609_v38, %v2109_v13  ;;  %vm2120_vm3 = vweird.f32 %v4609_v38 }
 0x6f0   : > { %4610 = vrsqrt.f32 %v2110_v39  ;;  %vm2121_vm5 = vmor %vm2119_vm4, %vm2120_vm3  ;;  %vm2129_vm7 = vweird.f32 %v2110_v39 }
 0x6f1   : > { %v2115_v57 = vmul.f32 %v4609_v38, %v2114_v22  ;;  %v5961_v22 = vperm.slane %v2205_v18, 2 }
 0x6f3   : > { %v2116_v55 = vmul.f32 0.5, %v2115_v57  ;;  %v2102_v42 = vpop.xlane.xlu0 %2101 }
 0x6f4   : > { %v2107_v43 = vmul.f32 %v2102_v42, %v5484_v14 }
 0x6f5   : > { %v2117_v48 = vsub.f32 1.5, %v2116_v55 }
 0x6f6   : > { %v4611_v45 = vpop.eup %4610  ;;  %v2111_v3 = vadd.f32 1e-05, %v2107_v43 }
 0x6f7   : > { %v2118_v46 = vmul.f32 %v4609_v38, %v2117_v48  ;;  %v2124_v27 = vmul.f32 %v4611_v45, %v2110_v39  ;;  %vm2130_vm6 = vweird.f32 %v4611_v45 }
 0x6f8   : > { %4612 = vrsqrt.f32 %v2111_v3  ;;  %vm2131_vm8 = vmor %vm2129_vm7, %vm2130_vm6  ;;  %vm2139_vm10 = vweird.f32 %v2111_v3 }
 0x6f9   : > { %v2125_v10 = vmul.f32 %v4611_v45, %v2124_v27  ;;  %v2122_v19 = vsel %vm2121_vm5, %v4609_v38, %v2118_v46  ;;  %v5956_v38 = vperm.slane %v2205_v18, 1 }
 0x6fa   : > { %v2153_v40 = vmul.f32 %v2122_v19, %v5844_v37 }
 0x6fb   : > { %v2126_v7 = vmul.f32 0.5, %v2125_v10  ;;  %v2104_v52 = vpop.xlane.xlu2 %2103 }
 0x6fc   : > { %v2108_v21 = vmul.f32 %v2104_v52, %v5484_v14  ;;  %v2160_v0 = vmul.f32 %v4531_v36, %v2153_v40  ;;  %v4329_v14 = vld [vmem:[%s5481_s12 + $0x8] sm:$0xff] }
 0x6fd   : > { %v2127_v54 = vsub.f32 1.5, %v2126_v7 }
 0x6fe   : > { %v4613_v33 = vpop.eup %4612  ;;  %v2112_v32 = vadd.f32 1e-05, %v2108_v21  ;;  %v2167_v37 = vadd.f32 %v4532_v49, %v2160_v0 }
 0x6ff   : > { %v2128_v17 = vmul.f32 %v4611_v45, %v2127_v54  ;;  %v2134_v58 = vmul.f32 %v4613_v33, %v2111_v3  ;;  %vm2140_vm9 = vweird.f32 %v4613_v33 }
 0x700   : > { %4614 = vrsqrt.f32 %v2112_v32  ;;  %vm2141_vm11 = vmor %vm2139_vm10, %vm2140_vm9  ;;  %vm2149_vm13 = vweird.f32 %v2112_v32 }
 0x701   : > { %v2132_v41 = vsel %vm2131_vm8, %v4611_v45, %v2128_v17  ;;  %v2135_v62 = vmul.f32 %v4613_v33, %v2134_v58 }
 0x702   : > { %v2154_v63 = vmul.f32 %v2132_v41, %v5850_v6 }
 0x703   : > { %v2136_v2 = vmul.f32 0.5, %v2135_v62 }
 0x704   : > { %v2161_v4 = vmul.f32 %v4531_v36, %v2154_v63 }
 0x705   : > { %v2137_v5 = vsub.f32 1.5, %v2136_v2 }
 0x706   : > { %v4615_v34 = vpop.eup %4614  ;;  %v2168_v56 = vadd.f32 %v4532_v49, %v2161_v4 }
 0x707   : > { %v2138_v50 = vmul.f32 %v4613_v33, %v2137_v5  ;;  %v2144_v47 = vmul.f32 %v4615_v34, %v2112_v32  ;;  %vm2150_vm12 = vweird.f32 %v4615_v34 }
 0x708   : > { %v2171_v8 = vpack.c.bf16 %v2168_v56, %v2167_v37  ;;  %vm2151_vm14 = vmor %vm2149_vm13, %vm2150_vm12 }
 0x709   : > { %v2145_v9 = vmul.f32 %v4615_v34, %v2144_v47  ;;  %v2142_v11 = vsel %vm2141_vm11, %v4613_v33, %v2138_v50 }
 0x70a   : > { %2383 = vmatmul.bf16.vlgmr.msrb.gmra.mxu1 %v2171_v8  ;;  %2402 = vmatmul.bf16.vlgmr.msra.gmra.mxu2 %v2171_v8  ;;  %v2155_v12 = vmul.f32 %v2142_v11, %v5856_v61 }
 0x70b   : > { %v2146_v6 = vmul.f32 0.5, %v2145_v9  ;;  %2421 = vmatmul.bf16.vlgmr.msrb.gmra.mxu3 %v2171_v8  ;;  %2440 = vmatmul.bf16.vlgmr.msra.gmra.mxu0 %v2171_v8 }
 0x70c   : > { %v2162_v16 = vmul.f32 %v4531_v36, %v2155_v12 }
 0x70d   : > { %v2147_v59 = vsub.f32 1.5, %v2146_v6 }
 0x70e   : > { %v2169_v15 = vadd.f32 %v4532_v49, %v2162_v16 }
 0x70f   : > { %v2148_v60 = vmul.f32 %v4615_v34, %v2147_v59 }
 0x711   : > { %v2152_v30 = vsel %vm2151_vm14, %v4615_v34, %v2148_v60 }
 0x712   : > { %v2156_v13 = vmul.f32 %v2152_v30, %v5862_v44 }
 0x714   : > { %v2163_v35 = vmul.f32 %v4531_v36, %v2156_v13 }
 0x716   : > { %v2170_v24 = vadd.f32 %v4532_v49, %v2163_v35 }
 0x718   : > { %v2172_v25 = vpack.c.bf16 %v2170_v24, %v2169_v15 }
 0x71a   : > { %2388 = vmatmul.bf16.gmra.mxu1 %v2172_v25  ;;  %2407 = vmatmul.bf16.gmra.mxu2 %v2172_v25 }
 0x71b   : > { %2426 = vmatmul.bf16.gmra.mxu3 %v2172_v25  ;;  %2445 = vmatmul.bf16.gmra.mxu0 %v2172_v25 }
 0x787   : > { %v2384_v61 = vpop.f32.mrf.mxu1 }
 0x788   : > { %v5948_v31 = vadd.f32 %v2384_v61, %v5943_v23  ;;  %v2441_v28 = vpop.f32.mrf.mxu0 }
 0x789   : > { %v5951_v44 = vadd.f32 %v2441_v28, %v5945_v29 }
 0x78a   : > { %v5954_v51 = vmul.f32 0.70710677, %v5948_v31 }
 0x78b   : > { %v5959_v39 = vmul.f32 0.70710677, %v5951_v44 }
 0x78c   : > { %v2483_v57 = vand.u32 2147483647, %v5954_v51 }
 0x78d   : > { %v2486_v55 = vand.u32 2147483647, %v5959_v39  ;;  %v2403_v42 = vpop.f32.mrf.mxu2 }
 0x78e   : > { %v2499_v43 = vmul.f32 0.3275911, %v2483_v57  ;;  %v5966_v48 = vadd.f32 %v2403_v42, %v5956_v38  ;;  %v2422_v45 = vpop.f32.mrf.mxu3  ;;  %v2915_v21 = vsub.f32 0.0, %v2483_v57 }
 0x78f   : > { %v2502_v3 = vmul.f32 0.3275911, %v2486_v55  ;;  %v5969_v46 = vadd.f32 %v2422_v45, %v5961_v22  ;;  %v2918_v58 = vsub.f32 0.0, %v2486_v55  ;;  %v2386_v62 = vpop.f32.mrf.mxu1 }
 0x790   : > { %v2515_v27 = vadd.f32 1.0, %v2499_v43  ;;  %v5972_v19 = vmul.f32 0.70710677, %v5966_v48  ;;  %v5987_v0 = vmul.f32 %v2915_v21, %v2483_v57  ;;  %v2443_v4 = vpop.f32.mrf.mxu0  ;;  %v5994_v47 = vadd.f32 %v2386_v62, %v5943_v23 }
 0x791   : > { %v2518_v10 = vadd.f32 1.0, %v2502_v3  ;;  %v5975_v7 = vmul.f32 0.70710677, %v5969_v46  ;;  %v5996_v9 = vmul.f32 %v2918_v58, %v2486_v55  ;;  %v5999_v11 = vadd.f32 %v2443_v4, %v5945_v29 }
 0x792   : > { %4616 = vrcp.f32 %v2515_v27  ;;  %v5978_v52 = vand.u32 2147483647, %v5972_v19  ;;  %v2540_v63 = vand.u32 2147483647, %v2515_v27  ;;  %v2542_v34 = vand.u32 2147483648, %v2515_v27 }
 0x793   : > { %4618 = vrcp.f32 %v2518_v10  ;;  %v5981_v54 = vand.u32 2147483647, %v5975_v7  ;;  %v2585_v37 = vand.u32 2147483647, %v2518_v10  ;;  %v2587_v50 = vand.u32 2147483648, %v2518_v10 }
 0x794   : > { %v2500_v33 = vmul.f32 0.3275911, %v5978_v52  ;;  %vm2536_vm0 = vweird.f32 %v2515_v27  ;;  %vm2581_vm1 = vweird.f32 %v2518_v10  ;;  %vm2541_vm3 = vcmp.eq.f32.partialorder %v2540_v63, 8.507059e+37 }
 0x795   : > { %v2501_v32 = vmul.f32 0.3275911, %v5981_v54  ;;  %v2543_v12 = vor.u32 1.1754944e-38, %v2542_v34  ;;  %vm6001_vm4 = vcmp.eq.f32.partialorder %v2585_v37, 8.507059e+37  ;;  %v2588_v13 = vor.u32 1.1754944e-38, %v2587_v50 }
 0x796   : > { %v5985_v41 = vadd.f32 1.0, %v2500_v33  ;;  %v6007_v35 = vmul.f32 0.70710677, %v5994_v47  ;;  %v2916_v25 = vsub.f32 0.0, %v5978_v52  ;;  %v6012_v18 = vmul.f32 0.70710677, %v5999_v11 }
 0x797   : > { %v5989_v2 = vadd.f32 1.0, %v2501_v32  ;;  %v2917_v33 = vsub.f32 0.0, %v5981_v54 }
 0x798   : > { %v4617_v40 = vpop.eup %4616  ;;  %4620 = vrcp.f32 %v5985_v41  ;;  %v2555_v16 = vand.u32 2147483647, %v5985_v41  ;;  %vm2551_vm7 = vweird.f32 %v5985_v41  ;;  %v2557_v42 = vand.u32 2147483648, %v5985_v41 }
 0x799   : > { %v4619_v36 = vpop.eup %4618  ;;  %v2532_v17 = vmul.f32 %v4617_v40, %v2515_v27  ;;  %4622 = vrcp.f32 %v5989_v2  ;;  %vm2537_vm15 = vweird.f32 %v4617_v40  ;;  %v2570_v27 = vand.u32 2147483647, %v5989_v2 }
 0x79a   : > { %v2577_v49 = vmul.f32 %v4619_v36, %v2518_v10  ;;  %vm2582_vm2 = vweird.f32 %v4619_v36  ;;  %vm2538_vm5 = vmor %vm2536_vm0, %vm2537_vm15  ;;  %vm6026_vm8 = vcmp.eq.f32.partialorder %v2555_v16, 8.507059e+37  ;;  %v6035_v58 = vand.u32 2147483647, %v6012_v18 }
 0x79b   : > { %v2533_v5 = vsub.f32 1.0, %v2532_v17  ;;  %vm2583_vm6 = vmor %vm2581_vm1, %vm2582_vm2  ;;  %v2572_v17 = vand.u32 2147483648, %v5989_v2  ;;  %vm2566_vm11 = vweird.f32 %v5989_v2  ;;  %vm2571_vm14 = vcmp.eq.f32.partialorder %v2570_v27, 8.507059e+37 }
 0x79c   : > { %v2578_v56 = vsub.f32 1.0, %v2577_v49  ;;  %v2506_v34 = vmul.f32 0.3275911, %v6035_v58 }
 0x79d   : > { %v2534_v8 = vmul.f32 %v4617_v40, %v2533_v5 }
 0x79e   : > { %v2579_v6 = vmul.f32 %v4619_v36, %v2578_v56  ;;  %v4621_v15 = vpop.eup %4620 }
 0x79f   : > { %v2535_v59 = vadd.f32 %v4617_v40, %v2534_v8  ;;  %v4623_v61 = vpop.eup %4622  ;;  %v2547_v55 = vmul.f32 %v4621_v15, %v5985_v41  ;;  %vm2552_vm9 = vweird.f32 %v4621_v15  ;;  %v2947_v41 = vmul.f32 1.442695, %v5987_v0 }
 0x7a0   : > { %v2580_v30 = vadd.f32 %v4619_v36, %v2579_v6  ;;  %v2562_v3 = vmul.f32 %v4623_v61, %v5989_v2  ;;  %vm2567_vm10 = vweird.f32 %v4623_v61  ;;  %vm2553_vm12 = vmor %vm2551_vm7, %vm2552_vm9  ;;  %v2558_v6 = vor.u32 1.1754944e-38, %v2557_v42 }
 0x7a1   : > { %v2539_v24 = vsel %vm2538_vm5, %v4617_v40, %v2535_v59  ;;  %v2548_v21 = vsub.f32 1.0, %v2547_v55  ;;  %v6031_v40 = vand.u32 2147483647, %v6007_v35  ;;  %vm2568_vm13 = vmor %vm2566_vm11, %vm2567_vm10  ;;  %vm3011_vm7 = vcmp.ge.f32.partialorder %v5954_v51, 0.0 }
 0x7a2   : > { %v6014_v28 = vsel %vm2541_vm3, %v2543_v12, %v2539_v24  ;;  %v2584_v57 = vsel %vm2583_vm6, %v4619_v36, %v2580_v30  ;;  %v2563_v36 = vsub.f32 1.0, %v2562_v3  ;;  %v6046_v12 = vadd.f32 1.0, %v2506_v34 }
 0x7a3   : > { %v2771_v43 = vmul.f32 1.0614054, %v6014_v28  ;;  %v6021_v45 = vsel %vm6001_vm4, %v2588_v13, %v2584_v57  ;;  %v2549_v63 = vmul.f32 %v4621_v15, %v2548_v21  ;;  %v2503_v49 = vmul.f32 0.3275911, %v6031_v40 }
 0x7a4   : > { %v2774_v10 = vmul.f32 1.0614054, %v6021_v45  ;;  %v2564_v5 = vmul.f32 %v4623_v61, %v2563_v36  ;;  %v2573_v13 = vor.u32 1.1754944e-38, %v2572_v17  ;;  %vm2641_vm4 = vweird.f32 %v6046_v12 }
 0x7a5   : > { %v2787_v32 = vadd.f32 -1.4531521, %v2771_v43  ;;  %v2550_v56 = vadd.f32 %v4621_v15, %v2549_v63  ;;  %v6042_v50 = vadd.f32 1.0, %v2503_v49  ;;  %v2953_v43 = vmul.f32 1.442695, %v5996_v9 }
 0x7a6   : > { %v2790_v62 = vadd.f32 -1.4531521, %v2774_v10  ;;  %v2565_v59 = vadd.f32 %v4623_v61, %v2564_v5  ;;  %vm3012_vm9 = vcmp.ge.f32.partialorder %v5972_v19, 0.0  ;;  %vm3013_vm10 = vcmp.ge.f32.partialorder %v5975_v7, 0.0 }
 0x7a7   : > { %v2803_v4 = vmul.f32 %v2787_v32, %v6014_v28  ;;  %v2554_v30 = vsel %vm2553_vm12, %v4621_v15, %v2550_v56  ;;  %4624 = vrcp.f32 %v6042_v50  ;;  %v2405_v32 = vpop.f32.mrf.mxu2  ;;  %v2933_v56 = vmul.f32 %v2917_v33, %v5981_v54 }
 0x7a8   : > { %v2806_v37 = vmul.f32 %v2790_v62, %v6021_v45  ;;  %v6052_v2 = vsel %vm6026_vm8, %v2558_v6, %v2554_v30  ;;  %v2569_v24 = vsel %vm2568_vm13, %v4623_v61, %v2565_v59  ;;  %4626 = vrcp.f32 %v6046_v12 }
 0x7a9   : > { %v2819_v8 = vadd.f32 1.4214138, %v2803_v4  ;;  %v2772_v55 = vmul.f32 1.0614054, %v6052_v2  ;;  %v6057_v42 = vsel %vm2571_vm14, %v2573_v13, %v2569_v24  ;;  %v2932_v61 = vmul.f32 %v2916_v25, %v5978_v52 }
 0x7aa   : > { %v2822_v60 = vadd.f32 1.4214138, %v2806_v37  ;;  %v2773_v3 = vmul.f32 1.0614054, %v6057_v42  ;;  %4628 = vpow2.f32 %v2947_v41  ;;  %v2602_v52 = vand.u32 2147483648, %v6042_v50 }
 0x7ab   : > { %v2835_v16 = vmul.f32 %v2819_v8, %v6014_v28  ;;  %v2788_v21 = vadd.f32 -1.4531521, %v2772_v55  ;;  %4630 = vpow2.f32 %v2953_v43  ;;  %v2949_v4 = vmul.f32 1.442695, %v2932_v61 }
 0x7ac   : > { %v2838_v57 = vmul.f32 %v2822_v60, %v6021_v45  ;;  %v2789_v0 = vadd.f32 -1.4531521, %v2773_v3  ;;  %v6071_v25 = vadd.f32 %v2405_v32, %v5956_v38  ;;  %vm2596_vm15 = vweird.f32 %v6042_v50 }
 0x7ad   : > { %v2851_v15 = vadd.f32 -0.28449672, %v2835_v16  ;;  %v4625_v36 = vpop.eup %4624  ;;  %v2804_v17 = vmul.f32 %v2788_v21, %v6052_v2  ;;  %v2600_v59 = vand.u32 2147483647, %v6042_v50  ;;  %v2647_v21 = vand.u32 2147483648, %v6046_v12 }
 0x7ae   : > { %v2854_v10 = vadd.f32 -0.28449672, %v2838_v57  ;;  %v2805_v62 = vmul.f32 %v2789_v0, %v6057_v42  ;;  %v2592_v63 = vmul.f32 %v4625_v36, %v6042_v50  ;;  %v4627_v5 = vpop.eup %4626  ;;  %vm2597_vm0 = vweird.f32 %v4625_v36 }
 0x7af   : > { %v2867_v27 = vmul.f32 %v2851_v15, %v6014_v28  ;;  %v2820_v49 = vadd.f32 1.4214138, %v2804_v17  ;;  %v2637_v60 = vmul.f32 %v4627_v5, %v6046_v12  ;;  %v2603_v57 = vor.u32 1.1754944e-38, %v2602_v52  ;;  %vm2598_vm1 = vmor %vm2596_vm15, %vm2597_vm0 }
 0x7b0   : > { %v2870_v9 = vmul.f32 %v2854_v10, %v6021_v45  ;;  %v2821_v37 = vadd.f32 1.4214138, %v2805_v62  ;;  %v2593_v8 = vsub.f32 1.0, %v2592_v63  ;;  %v4629_v24 = vpop.eup %4628  ;;  %v6080_v54 = vmul.f32 0.70710677, %v6071_v25 }
 0x7b1   : > { %v2883_v34 = vadd.f32 0.2548296, %v2867_v27  ;;  %v2836_v6 = vmul.f32 %v2820_v49, %v6052_v2  ;;  %v2638_v55 = vsub.f32 1.0, %v2637_v60  ;;  %v4631_v15 = vpop.eup %4630  ;;  %v2645_v10 = vand.u32 2147483647, %v6046_v12  ;;  %v2424_v60 = vpop.f32.mrf.mxu3 }
 0x7b2   : > { %v2886_v30 = vadd.f32 0.2548296, %v2870_v9  ;;  %v2837_v13 = vmul.f32 %v2821_v37, %v6057_v42  ;;  %v2594_v16 = vmul.f32 %v4625_v36, %v2593_v8  ;;  %vm2642_vm2 = vweird.f32 %v4627_v5 }
 0x7b3   : > { %v2852_v41 = vadd.f32 -0.28449672, %v2836_v6  ;;  %v2899_v43 = vmul.f32 %v2883_v34, %v6014_v28  ;;  %v2639_v27 = vmul.f32 %v4627_v5, %v2638_v55  ;;  %v6088_v0 = vand.u32 2147483647, %v6080_v54  ;;  %vm2643_vm5 = vmor %vm2641_vm4, %vm2642_vm2 }
 0x7b4   : > { %v2595_v3 = vadd.f32 %v4625_v36, %v2594_v16  ;;  %v2853_v61 = vadd.f32 -0.28449672, %v2837_v13  ;;  %v2902_v33 = vmul.f32 %v2886_v30, %v6021_v45  ;;  %vm2601_vm3 = vcmp.eq.f32.partialorder %v2600_v59, 8.507059e+37 }
 0x7b5   : > { %v2868_v32 = vmul.f32 %v2852_v41, %v6052_v2  ;;  %v2919_v9 = vsub.f32 0.0, %v6031_v40  ;;  %v2640_v62 = vadd.f32 %v4627_v5, %v2639_v27  ;;  %v2979_v50 = vmul.f32 %v4629_v24, %v2899_v43 }
 0x7b6   : > { %v2599_v17 = vsel %vm2598_vm1, %v4625_v36, %v2595_v3  ;;  %v2648_v49 = vor.u32 1.1754944e-38, %v2647_v21  ;;  %v2504_v52 = vmul.f32 0.3275911, %v6088_v0  ;;  %v2869_v45 = vmul.f32 %v2853_v61, %v6057_v42 }
 0x7b7   : > { %v6092_v28 = vsel %vm2601_vm3, %v2603_v57, %v2599_v17  ;;  %v2951_v34 = vmul.f32 1.442695, %v2933_v56  ;;  %v2644_v37 = vsel %vm2643_vm5, %v4627_v5, %v2640_v62  ;;  %vm2646_vm6 = vcmp.eq.f32.partialorder %v2645_v10, 8.507059e+37 }
 0x7b8   : > { %v2775_v63 = vmul.f32 1.0614054, %v6092_v28  ;;  %v2982_v36 = vmul.f32 %v4631_v15, %v2902_v33  ;;  %v2884_v8 = vadd.f32 0.2548296, %v2868_v32  ;;  %v6099_v59 = vsel %vm2646_vm6, %v2648_v49, %v2644_v37 }
 0x7b9   : > { %v6102_v12 = vmul.f32 0.5, %v5948_v31  ;;  %4632 = vpow2.f32 %v2949_v4  ;;  %v2778_v30 = vmul.f32 1.0614054, %v6099_v59  ;;  %v6105_v13 = vadd.f32 1.0, %v2504_v52 }
 0x7ba   : > { %v2791_v6 = vadd.f32 -1.4531521, %v2775_v63  ;;  %v2995_v16 = vsub.f32 1.0, %v2979_v50  ;;  %v2935_v5 = vmul.f32 %v2919_v9, %v6031_v40  ;;  %v2922_v56 = vsub.f32 0.0, %v6035_v58 }
 0x7bb   : > { %v2885_v41 = vadd.f32 0.2548296, %v2869_v45  ;;  %v2794_v57 = vadd.f32 -1.4531521, %v2778_v30  ;;  %4634 = vrcp.f32 %v6105_v13  ;;  %v6112_v55 = vadd.f32 %v2424_v60, %v5961_v22 }
 0x7bc   : > { %v2807_v24 = vmul.f32 %v2791_v6, %v6092_v28  ;;  %v2998_v31 = vsub.f32 1.0, %v2982_v36  ;;  %v2900_v4 = vmul.f32 %v2884_v8, %v6052_v2  ;;  %4636 = vpow2.f32 %v2951_v34  ;;  %v2389_v2 = vpop.f32.mrf.mxu1 }
 0x7bd   : > { %v6117_v43 = vmul.f32 0.5, %v5951_v44  ;;  %vm3014_vm8 = vcmp.ge.f32.partialorder %v5959_v39, 0.0  ;;  %v2810_v40 = vmul.f32 %v2794_v57, %v6099_v59  ;;  %v6122_v3 = vmul.f32 0.5, %v5966_v48 }
 0x7be   : > { %v2823_v15 = vadd.f32 1.4214138, %v2807_v24  ;;  %v2955_v21 = vmul.f32 1.442695, %v2935_v5  ;;  %v2938_v61 = vmul.f32 %v2922_v56, %v6035_v58  ;;  %v3027_v33 = vsub.f32 0.0, %v2995_v16 }
 0x7bf   : > { %v4633_v27 = vpop.eup %4632  ;;  %v2901_v32 = vmul.f32 %v2885_v41, %v6057_v42  ;;  %v2826_v17 = vadd.f32 1.4214138, %v2810_v40  ;;  %v6128_v44 = vmul.f32 0.70710677, %v6112_v55  ;;  %v3030_v9 = vsub.f32 0.0, %v2998_v31 }
 0x7c0   : > { %v2839_v10 = vmul.f32 %v2823_v15, %v6092_v28  ;;  %v2980_v62 = vmul.f32 %v4633_v27, %v2900_v4  ;;  %v6131_v50 = vmul.f32 0.5, %v5969_v46  ;;  %v6134_v49 = vmul.f32 0.5, %v5994_v47 }
 0x7c1   : > { %v4635_v63 = vpop.eup %4634  ;;  %v2842_v58 = vmul.f32 %v2826_v17, %v6099_v59  ;;  %v6138_v52 = vand.u32 2147483647, %v6128_v44  ;;  %v6141_v42 = vadd.f32 %v2389_v2, %v5943_v23  ;;  %4638 = vpow2.f32 %v2955_v21 }
 0x7c2   : > { %v2855_v48 = vadd.f32 -0.28449672, %v2839_v10  ;;  %v4637_v45 = vpop.eup %4636  ;;  %v2961_v37 = vmul.f32 1.442695, %v2938_v61  ;;  %v2607_v46 = vmul.f32 %v4635_v63, %v6105_v13  ;;  %v3043_v36 = vsel %vm3011_vm7, %v2995_v16, %v3027_v33 }
 0x7c3   : > { %v2981_v47 = vmul.f32 %v4637_v45, %v2901_v32  ;;  %v2858_v8 = vadd.f32 -0.28449672, %v2842_v58  ;;  %v2505_v6 = vmul.f32 0.3275911, %v6138_v52  ;;  %v3046_v60 = vsel %vm3014_vm8, %v2998_v31, %v3030_v9  ;;  %v2446_v31 = vpop.f32.mrf.mxu0 }
 0x7c4   : > { %v2871_v34 = vmul.f32 %v2855_v48, %v6092_v28  ;;  %v2996_v30 = vsub.f32 1.0, %v2980_v62  ;;  %v2608_v5 = vsub.f32 1.0, %v2607_v46  ;;  %v2617_v41 = vand.u32 2147483648, %v6105_v13 }
 0x7c5   : > { %v2874_v56 = vmul.f32 %v2858_v8, %v6099_v59  ;;  %v6153_v57 = vadd.f32 1.0, %v2505_v6  ;;  %v6156_v51 = vmul.f32 0.70710677, %v6141_v42  ;;  %vm2612_vm11 = vweird.f32 %v4635_v63 }
 0x7c6   : > { %v2887_v24 = vadd.f32 0.2548296, %v2871_v34  ;;  %v2609_v4 = vmul.f32 %v4635_v63, %v2608_v5  ;;  %v2615_v39 = vand.u32 2147483647, %v6105_v13  ;;  %v2997_v15 = vsub.f32 1.0, %v2981_v47 }
 0x7c7   : > { %v2890_v40 = vadd.f32 0.2548296, %v2874_v56  ;;  %v2920_v10 = vsub.f32 0.0, %v6088_v0  ;;  %4640 = vrcp.f32 %v6153_v57  ;;  %v4639_v21 = vpop.eup %4638  ;;  %v3028_v61 = vsub.f32 0.0, %v2996_v30 }
 0x7c8   : > { %v2903_v16 = vmul.f32 %v2887_v24, %v6092_v28  ;;  %4642 = vpow2.f32 %v2961_v37  ;;  %v2610_v2 = vadd.f32 %v4635_v63, %v2609_v4  ;;  %vm2611_vm12 = vweird.f32 %v6105_v13 }
 0x7c9   : > { %v3059_v27 = vadd.f32 1.0, %v3043_v36  ;;  %vm2613_vm13 = vmor %vm2611_vm12, %vm2612_vm11  ;;  %v2618_v28 = vor.u32 1.1754944e-38, %v2617_v41  ;;  %v6165_v33 = vand.u32 2147483647, %v6156_v51  ;;  %v6168_v32 = vadd.f32 %v2446_v31, %v5945_v29 }
 0x7ca   : > { %v3062_v17 = vadd.f32 1.0, %v3046_v60  ;;  %v2983_v9 = vmul.f32 %v4639_v21, %v2903_v16  ;;  %v2614_v62 = vsel %vm2613_vm13, %v4635_v63, %v2610_v2  ;;  %vm2616_vm14 = vcmp.eq.f32.partialorder %v2615_v39, 8.507059e+37 }
 0x7cb   : > { %v3029_v48 = vsub.f32 0.0, %v2997_v15  ;;  %v2906_v58 = vmul.f32 %v2890_v40, %v6099_v59  ;;  %v6171_v45 = vsel %vm2616_vm14, %v2618_v28, %v2614_v62  ;;  %v2936_v13 = vmul.f32 %v2920_v10, %v6088_v0  ;;  %v4359_v62 = vld [vmem:[%s5481_s12 + $0xf8] sm:$0xff] }
 0x7cc   : > { %v3044_v34 = vsel %vm3012_vm9, %v2996_v30, %v3028_v61  ;;  %v6177_v37 = vmul.f32 0.5, %v5999_v11  ;;  %v2776_v46 = vmul.f32 1.0614054, %v6171_v45  ;;  %v2507_v36 = vmul.f32 0.3275911, %v6165_v33  ;;  %v2408_v30 = vpop.f32.mrf.mxu2  ;;  %3416 = vmatpush.bf16.msrb.mxu0 %v4359_v62 }
 0x7cd   : > { %v4641_v47 = vpop.eup %4640  ;;  %v6182_v63 = vmul.f32 %v3059_v27, %v6102_v12  ;;  %vm3015_vm15 = vcmp.ge.f32.partialorder %v6007_v35, 0.0  ;;  %v6186_v59 = vmul.f32 0.5, %v6071_v25  ;;  %v6189_v0 = vmul.f32 0.70710677, %v6168_v32 }
 0x7ce   : > { %v4643_v19 = vpop.eup %4642  ;;  %v6192_v11 = vmul.f32 %v3062_v17, %v6117_v43  ;;  %v2999_v8 = vsub.f32 1.0, %v2983_v9  ;;  %v2792_v6 = vadd.f32 -1.4531521, %v2776_v46  ;;  %v2622_v60 = vmul.f32 %v4641_v47, %v6153_v57  ;;  %v2427_v17 = vpop.f32.mrf.mxu3  ;;  %v4335_v9 = vld [vmem:[%s5481_s12 + $0x38] sm:$0xff] }
 0x7cf   : > { %v3060_v24 = vadd.f32 1.0, %v3044_v34  ;;  %v3045_v12 = vsel %vm3013_vm10, %v2997_v15, %v3029_v48  ;;  %v6197_v5 = vmul.f32 %v4643_v19, %v2906_v58  ;;  %v2957_v25 = vmul.f32 1.442695, %v2936_v13  ;;  %v2391_v19 = vpop.f32.mrf.mxu1  ;;  %3359 = vmatpush.bf16.msra.mxu1 %v4335_v9 }
 0x7d0   : > { %v2808_v56 = vmul.f32 %v2792_v6, %v6171_v45  ;;  %v2623_v41 = vsub.f32 1.0, %v2622_v60  ;;  %v2921_v16 = vsub.f32 0.0, %v6138_v52  ;;  %v6201_v4 = vadd.f32 1.0, %v2507_v36 }
 0x7d1   : > { %v2630_v43 = vand.u32 2147483647, %v6153_v57  ;;  %v2632_v39 = vand.u32 2147483648, %v6153_v57  ;;  %v6206_v31 = vand.u32 2147483647, %v6189_v0  ;;  %v6209_v7 = vadd.f32 %v2408_v30, %v5956_v38 }
 0x7d2   : > { %v3031_v15 = vsub.f32 0.0, %v2999_v8  ;;  %vm3018_vm0 = vcmp.ge.f32.partialorder %v6012_v18, 0.0  ;;  %v2824_v40 = vadd.f32 1.4214138, %v2808_v56  ;;  %v2624_v10 = vmul.f32 %v4641_v47, %v2623_v41 }
 0x7d3   : > { %6821 = vst [vmem:[#allocation37_spill] sm:$0xff] %v6209_v7  ;;  %vm2627_vm1 = vweird.f32 %v4641_v47  ;;  %v3061_v21 = vadd.f32 1.0, %v3045_v12  ;;  %v3002_v61 = vsub.f32 1.0, %v6197_v5  ;;  %4644 = vpow2.f32 %v2957_v25  ;;  %v4334_v5 = vld [vmem:[%s5481_s12 + $0x30] sm:$0xff] }
 0x7d4   : > { %v2510_v2 = vmul.f32 0.3275911, %v6206_v31  ;;  %v2840_v27 = vmul.f32 %v2824_v40, %v6171_v45  ;;  %v2625_v28 = vadd.f32 %v4641_v47, %v2624_v10  ;;  %vm2626_vm2 = vweird.f32 %v6153_v57  ;;  %v4358_v25 = vld [vmem:[%s5481_s12 + $0xf0] sm:$0xff]  ;;  %3360 = vmatpush.bf16.msra.mxu1 %v4334_v5 }
 0x7d5   : > { %4646 = vrcp.f32 %v6201_v4  ;;  %vm2628_vm3 = vmor %vm2626_vm2, %vm2627_vm1  ;;  %vm2631_vm4 = vcmp.eq.f32.partialorder %v2630_v43, 8.507059e+37  ;;  %v2633_v48 = vor.u32 1.1754944e-38, %v2632_v39  ;;  %v2937_v58 = vmul.f32 %v2921_v16, %v6138_v52  ;;  %3417 = vmatpush.bf16.msrb.mxu0 %v4358_v25 }
 0x7d6   : > { %v6221_v13 = vmul.f32 0.70710677, %v6209_v7  ;;  %v3047_v34 = vsel %vm3015_vm15, %v2999_v8, %v3031_v15  ;;  %v2856_v46 = vadd.f32 -0.28449672, %v2840_v27  ;;  %v2629_v57 = vsel %vm2628_vm3, %v4641_v47, %v2625_v28 }
 0x7d7   : > { %v2923_v36 = vsub.f32 0.0, %v6165_v33  ;;  %v3034_v6 = vsub.f32 0.0, %v3002_v61  ;;  %v6226_v60 = vsel %vm2631_vm4, %v2633_v48, %v2629_v57  ;;  %v6228_v30 = vadd.f32 1.0, %v2510_v2  ;;  %v4351_v2 = vld [vmem:[%s5481_s12 + $0xb8] sm:$0xff]  ;;  %v4350_v57 = vld [vmem:[%s5481_s12 + $0xb0] sm:$0xff] }
 0x7d8   : > { %v6231_v52 = vadd.f32 %v2427_v17, %v5961_v22  ;;  %v6234_v35 = vmul.f32 %v3060_v24, %v6122_v3  ;;  %v2872_v8 = vmul.f32 %v2856_v46, %v6171_v45  ;;  %v6238_v47 = vmul.f32 0.5, %v6112_v55  ;;  %v4357_v17 = vld [vmem:[%s5481_s12 + $0xe8] sm:$0xff]  ;;  %3397 = vmatpush.bf16.msra.mxu3 %v4351_v2  ;;  %v4342_v46 = vld [vmem:[%s5481_s12 + $0x70] sm:$0xff] }
 0x7d9   : > { %v2777_v12 = vmul.f32 1.0614054, %v6226_v60  ;;  %v4645_v56 = vpop.eup %4644  ;;  %v6244_v41 = vmul.f32 %v3061_v21, %v6131_v50  ;;  %v2959_v16 = vmul.f32 1.442695, %v2937_v58  ;;  %v6247_v43 = vand.u32 2147483647, %v6221_v13  ;;  %3418 = vmatpush.bf16.msrb.mxu0 %v4357_v17 }
 0x7da   : > { %6822 = vst [vmem:[#allocation38_spill] sm:$0xff] %v6231_v52  ;;  %v6250_v3 = vadd.f32 %v2391_v19, %v5943_v23  ;;  %v3063_v55 = vadd.f32 1.0, %v3047_v34  ;;  %v2888_v39 = vadd.f32 0.2548296, %v2872_v8  ;;  %v2939_v40 = vmul.f32 %v2923_v36, %v6165_v33  ;;  %v4343_v50 = vld [vmem:[%s5481_s12 + $0x78] sm:$0xff] }
 0x7db   : > { %v6252_v24 = vpop.eup %4646  ;;  %v2793_v15 = vadd.f32 -1.4531521, %v2777_v12  ;;  %v3050_v10 = vsel %vm3018_vm0, %v3002_v61, %v3034_v6  ;;  %vm3016_vm5 = vcmp.ge.f32.partialorder %v6080_v54, 0.0  ;;  %4648 = vrcp.f32 %v6228_v30  ;;  %3378 = vmatpush.bf16.msrb.mxu2 %v4343_v50  ;;  %v4333_v61 = vld [vmem:[%s5481_s12 + $0x28] sm:$0xff] }
 0x7dc   : > { %v2508_v23 = vmul.f32 0.3275911, %v6247_v43  ;;  %v6262_v21 = vmul.f32 0.70710677, %v6231_v52  ;;  %v2904_v27 = vmul.f32 %v2888_v39, %v6171_v45  ;;  %v6268_v28 = vmul.f32 0.5, %v6141_v42  ;;  %3361 = vmatpush.bf16.msra.mxu1 %v4333_v61  ;;  %3398 = vmatpush.bf16.msra.mxu3 %v4350_v57  ;;  %v4340_v57 = vld [vmem:[%s5481_s12 + $0x60] sm:$0xff] }
 0x7dd   : > { %v2809_v33 = vmul.f32 %v2793_v15, %v6226_v60  ;;  %v2926_v18 = vsub.f32 0.0, %v6206_v31  ;;  %v2652_v9 = vmul.f32 %v6252_v24, %v6201_v4  ;;  %v6281_v45 = vmul.f32 0.70710677, %v6250_v3 }
 0x7de   : > { %6823 = vst [vmem:[#allocation39_spill] sm:$0xff] %v6262_v21  ;;  %v6275_v62 = vadd.f32 1.0, %v2508_v23  ;;  %v6278_v48 = vand.u32 2147483647, %v6262_v21  ;;  %v3066_v42 = vadd.f32 1.0, %v3050_v10  ;;  %v2984_v58 = vmul.f32 %v4645_v56, %v2904_v27  ;;  %v4332_v56 = vld [vmem:[%s5481_s12 + $0x20] sm:$0xff] }
 0x7df   : > { %v2825_v34 = vadd.f32 1.4214138, %v2809_v33  ;;  %4650 = vpow2.f32 %v2959_v16  ;;  %v6286_v36 = vmul.f32 %v3063_v55, %v6134_v49  ;;  %v2662_v19 = vand.u32 2147483648, %v6201_v4  ;;  %3379 = vmatpush.bf16.msrb.mxu2 %v4342_v46  ;;  %v4356_v16 = vld [vmem:[%s5481_s12 + $0xe0] sm:$0xff]  ;;  %v4341_v27 = vld [vmem:[%s5481_s12 + $0x68] sm:$0xff]  ;;  %v4355_v46 = vld [vmem:[%s5481_s12 + $0xd8] sm:$0xff] }
 0x7e0   : > { %v2963_v6 = vmul.f32 1.442695, %v2939_v40  ;;  %v2924_v8 = vsub.f32 0.0, %v6247_v43  ;;  %v3000_v12 = vsub.f32 1.0, %v2984_v58  ;;  %4652 = vrcp.f32 %v6275_v62  ;;  %3362 = vmatpush.bf16.msra.mxu1 %v4332_v56  ;;  %3419 = vmatpush.bf16.msrb.mxu0 %v4356_v16  ;;  %v4349_v33 = vld [vmem:[%s5481_s12 + $0xa8] sm:$0xff]  ;;  %v2448_v16 = vpop.f32.mrf.mxu0 }
 0x7e1   : > { %v2841_v5 = vmul.f32 %v2825_v34, %v6226_v60  ;;  %v2509_v25 = vmul.f32 0.3275911, %v6278_v48  ;;  %v6295_v39 = vpop.eup %4648  ;;  %v2653_v49 = vsub.f32 1.0, %v2652_v9  ;;  %v2707_v55 = vand.u32 2147483648, %v6228_v30  ;;  %v4331_v34 = vld [vmem:[%s5481_s12 + $0x18] sm:$0xff]  ;;  %3399 = vmatpush.bf16.msra.mxu3 %v4349_v33 }
 0x7e2   : > { %v2942_v15 = vmul.f32 %v2926_v18, %v6206_v31  ;;  %v6300_v40 = vand.u32 2147483647, %v6281_v45  ;;  %v6303_v50 = vmul.f32 %v3066_v42, %v6177_v37  ;;  %v3032_v10 = vsub.f32 0.0, %v3000_v12 }
 0x7e3   : > { %v2857_v23 = vadd.f32 -0.28449672, %v2841_v5  ;;  %v6305_v2 = vadd.f32 1.0, %v2509_v25  ;;  %v6309_v61 = vor.u32 1.1754944e-38, %v2662_v19  ;;  %4654 = vpow2.f32 %v2963_v6  ;;  %3380 = vmatpush.bf16.msrb.mxu2 %v4341_v27 }
 0x7e4   : > { %v2925_v31 = vsub.f32 0.0, %v6278_v48  ;;  %v2511_v37 = vmul.f32 0.3275911, %v6300_v40  ;;  %v3048_v17 = vsel %vm3016_vm5, %v3000_v12, %v3032_v10  ;;  %v6318_v42 = vmul.f32 %v6295_v39, %v6228_v30  ;;  %v4348_v12 = vld [vmem:[%s5481_s12 + $0xa0] sm:$0xff]  ;;  %v2410_v10 = vpop.f32.mrf.mxu2  ;;  %3363 = vmatpush.bf16.msra.mxu1 %v4331_v34  ;;  %3420 = vmatpush.bf16.msrb.mxu0 %v4355_v46 }
 0x7e5   : > { %v4651_v18 = vpop.eup %4650  ;;  %v2873_v9 = vmul.f32 %v2857_v23, %v6226_v60  ;;  %v2940_v58 = vmul.f32 %v2924_v8, %v6247_v43  ;;  %v2969_v6 = vmul.f32 1.442695, %v2942_v15  ;;  %4656 = vrcp.f32 %v6305_v2  ;;  %v4330_v15 = vld [vmem:[%s5481_s12 + $0x10] sm:$0xff]  ;;  %3400 = vmatpush.bf16.msra.mxu3 %v4348_v12 }
 0x7e6   : > { %v6327_v54 = vadd.f32 1.0, %v2511_v37  ;;  %v6330_v5 = vpop.eup %4652  ;;  %v6335_v25 = vmul.f32 %v6252_v24, %v2653_v49  ;;  %v6337_v56 = vor.u32 1.1754944e-38, %v2707_v55  ;;  %v4354_v23 = vld [vmem:[%s5481_s12 + $0xd0] sm:$0xff]  ;;  %v3064_v27 = vadd.f32 1.0, %v3048_v17  ;;  %v4339_v17 = vld [vmem:[%s5481_s12 + $0x58] sm:$0xff] }
 0x7e7   : > { %v2889_v8 = vadd.f32 0.2548296, %v2873_v9  ;;  %vm3017_vm6 = vcmp.ge.f32.partialorder %v6128_v44, 0.0  ;;  %v2677_v33 = vand.u32 2147483648, %v6275_v62  ;;  %v2941_v37 = vmul.f32 %v2925_v31, %v6278_v48  ;;  %v2429_v9 = vpop.f32.mrf.mxu3  ;;  %3381 = vmatpush.bf16.msrb.mxu2 %v4340_v57 }
 0x7e8   : > { %v2927_v49 = vsub.f32 0.0, %v6300_v40  ;;  %v2698_v43 = vsub.f32 1.0, %v6318_v42  ;;  %v2965_v19 = vmul.f32 1.442695, %v2940_v58  ;;  %4658 = vrcp.f32 %v6327_v54  ;;  %v4347_v42 = vld [vmem:[%s5481_s12 + $0x98] sm:$0xff]  ;;  %3364 = vmatpush.bf16.msra.mxu1 %v4330_v15  ;;  %3421 = vmatpush.bf16.msrb.mxu0 %v4354_v23 }
 0x7e9   : > { %v2905_v55 = vmul.f32 %v2889_v8, %v6226_v60  ;;  %v6349_v34 = vpop.eup %4654  ;;  %v6353_v46 = vmul.f32 %v6330_v5, %v6275_v62  ;;  %v2692_v48 = vand.u32 2147483648, %v6305_v2  ;;  %v6357_v31 = vadd.f32 %v2448_v16, %v5945_v29  ;;  %3401 = vmatpush.bf16.msra.mxu3 %v4347_v42 }
 0x7ea   : > { %v6360_v60 = vadd.f32 %v2410_v10, %v5956_v38  ;;  %4660 = vpow2.f32 %v2969_v6  ;;  %v6364_v57 = vmul.f32 0.5, %v6250_v3  ;;  %v6367_v8 = vadd.f32 %v2429_v9, %v5961_v22 }
 0x7eb   : > { %v2985_v58 = vmul.f32 %v4651_v18, %v2905_v55  ;;  %v6371_v29 = vpop.eup %4656  ;;  %v6374_v38 = vmul.f32 %v3064_v27, %v6186_v59  ;;  %vm2657_vm7 = vweird.f32 %v6252_v24  ;;  %v6377_v18 = vor.u32 1.1754944e-38, %v2677_v33  ;;  %3382 = vmatpush.bf16.msrb.mxu2 %v4339_v17  ;;  %v4338_v59 = vld [vmem:[%s5481_s12 + $0x50] sm:$0xff]  ;;  %v4328_v27 = vld [vmem:[%s5481_s12] sm:$0xff] }
 0x7ec   : > { %6824 = vst [vmem:[#allocation40_spill] sm:$0xff] %v6360_v60  ;;  %v6379_v3 = vmul.f32 1.442695, %v2941_v37  ;;  %v2943_v22 = vmul.f32 %v2927_v49, %v6300_v40  ;;  %4662 = vpow2.f32 %v2965_v19  ;;  %v6383_v12 = vmul.f32 0.70710677, %v6357_v31  ;;  %v4346_v19 = vld [vmem:[%s5481_s12 + $0x90] sm:$0xff]  ;;  %3365 = vmatpush.bf16.msra.mxu1 %v4329_v14  ;;  %3422 = vmatpush.bf16.msrb.mxu0 %v4353_v20 }
 0x7ed   : > { %6825 = vst [vmem:[#allocation41_spill] sm:$0xff] %v6367_v8  ;;  %v3001_v6 = vsub.f32 1.0, %v2985_v58  ;;  %v6386_v16 = vmul.f32 0.70710677, %v6360_v60  ;;  %vm2656_vm8 = vweird.f32 %v6201_v4  ;;  %v6391_v10 = vmul.f32 %v6295_v39, %v2698_v43  ;;  %v4352_v55 = vld [vmem:[%s5481_s12 + $0xc0] sm:$0xff]  ;;  %3402 = vmatpush.bf16.msra.mxu3 %v4346_v19 }
 0x7ee   : > { %v2668_v15 = vsub.f32 1.0, %v6353_v46  ;;  %v6394_v23 = vor.u32 1.1754944e-38, %v2692_v48  ;;  %v6397_v40 = vmul.f32 0.70710677, %v6367_v8  ;;  %v6401_v33 = vpop.eup %4658  ;;  %v2682_v49 = vmul.f32 %v6371_v29, %v6305_v2  ;;  %vm6446_vm12 = vmor %vm2656_vm8, %vm2657_vm7 }
 0x7ef   : > { %v3033_v37 = vsub.f32 0.0, %v3001_v6  ;;  %v2498_v9 = vand.u32 2147483647, %v6383_v12  ;;  %v2496_v43 = vand.u32 2147483647, %v6386_v16  ;;  %v2712_v46 = vmul.f32 %v6401_v33, %v6327_v54  ;;  %3383 = vmatpush.bf16.msrb.mxu2 %v4338_v59 }
 0x7f0   : > { %v2722_v48 = vand.u32 2147483648, %v6327_v54  ;;  %v2971_v42 = vmul.f32 1.442695, %v2943_v22  ;;  %v6413_v58 = vpop.eup %4660  ;;  %vm2716_vm9 = vweird.f32 %v6327_v54  ;;  %vm2702_vm10 = vweird.f32 %v6295_v39  ;;  %v4345_v22 = vld [vmem:[%s5481_s12 + $0x88] sm:$0xff]  ;;  %3366 = vmatpush.bf16.msra.mxu1 %v4328_v27  ;;  %3423 = vmatpush.bf16.msrb.mxu0 %v4352_v55 }
 0x7f1   : > { %v3049_v53 = vsel %vm3017_vm6, %v3001_v6, %v3033_v37  ;;  %v2514_v14 = vmul.f32 0.3275911, %v2498_v9  ;;  %v2930_v20 = vsub.f32 0.0, %v2498_v9  ;;  %v2512_v1 = vmul.f32 0.3275911, %v2496_v43  ;;  %3403 = vmatpush.bf16.msra.mxu3 %v4345_v22 }
 0x7f2   : > { %v3065_v17 = vadd.f32 1.0, %v3049_v53  ;;  %v2713_v8 = vsub.f32 1.0, %v2712_v46  ;;  %v2928_v52 = vsub.f32 0.0, %v2496_v43  ;;  %v2497_v21 = vand.u32 2147483647, %v6397_v40  ;;  %v6422_v60 = vpop.eup %4662 }
 0x7f3   : > { %v2683_v44 = vsub.f32 1.0, %v2682_v49  ;;  %v6424_v6 = vadd.f32 1.0, %v2514_v14  ;;  %v2946_v37 = vmul.f32 %v2930_v20, %v2498_v9  ;;  %v6426_v7 = vadd.f32 1.0, %v2512_v1  ;;  %3384 = vmatpush.bf16.msrb.mxu2 %v4337_v26  ;;  %v4336_v1 = vld [vmem:[%s5481_s12 + $0x40] sm:$0xff] }
 0x7f4   : > { %vm2701_vm11 = vweird.f32 %v6228_v30  ;;  %4664 = vpow2.f32 %v2971_v42  ;;  %v2944_v53 = vmul.f32 %v2928_v52, %v2496_v43  ;;  %v2513_v59 = vmul.f32 0.3275911, %v2497_v21 }
 0x7f5   : > { %v2655_v19 = vadd.f32 %v6252_v24, %v6335_v25  ;;  %v3081_v46 = vmul.f32 %v3065_v17, %v6238_v47  ;;  %v2714_v49 = vmul.f32 %v6401_v33, %v2713_v8  ;;  %4666 = vrcp.f32 %v6424_v6  ;;  %v4344_v47 = vld [vmem:[%s5481_s12 + $0x80] sm:$0xff]  ;;  %vm6504_vm4 = vmor %vm2701_vm11, %vm2702_vm10 }
 0x7f6   : > { %v2977_v9 = vmul.f32 1.442695, %v2946_v37  ;;  %v2669_v27 = vmul.f32 %v6330_v5, %v2668_v15  ;;  %v2723_v55 = vor.u32 1.1754944e-38, %v2722_v48  ;;  %v2767_v42 = vand.u32 2147483648, %v6424_v6  ;;  %3404 = vmatpush.bf16.msra.mxu3 %v4344_v47 }
 0x7f7   : > { %4668 = vrcp.f32 %v6426_v7  ;;  %v6826_v52 = vpack.c.bf16 %v6286_v36, %v6182_v63  ;;  %vm2672_vm13 = vweird.f32 %v6330_v5  ;;  %v6452_v25 = vmul.f32 %v6371_v29, %v2683_v44  ;;  %3385 = vmatpush.bf16.msrb.mxu2 %v4336_v1 }
 0x7f8   : > { %vm2717_vm14 = vweird.f32 %v6401_v33  ;;  %v2737_v8 = vand.u32 2147483648, %v6426_v7  ;;  %v6456_v63 = vadd.f32 1.0, %v2513_v59  ;;  %v6829_v36 = vpack.c.bf16 %v6303_v50, %v6192_v11 }
 0x7f9   : > { %3367 = vmatmul.bf16.vlgmr.msra.gmra.mxu1 %v6826_v52  ;;  %v2973_v15 = vmul.f32 1.442695, %v2944_v53  ;;  %v2929_v43 = vsub.f32 0.0, %v2497_v21  ;;  %v2659_v17 = vsel %vm6446_vm12, %v6252_v24, %v2655_v19  ;;  %v2660_v48 = vand.u32 2147483647, %v6201_v4  ;;  %vm6475_vm0 = vmor %vm2716_vm9, %vm2717_vm14 }
 0x7fa   : > { %3424 = vmatmul.bf16.vlgmr.msrb.gmra.mxu0 %v6829_v36  ;;  %v3093_v14 = vpack.c.bf16 %v3081_v46, %v6244_v41  ;;  %vm2671_vm15 = vweird.f32 %v6275_v62  ;;  %4670 = vpow2.f32 %v2977_v9  ;;  %v2752_v20 = vand.u32 2147483648, %v6456_v63  ;;  %v6469_v11 = vpop.eup %4664 }
 0x7fb   : > { %v2715_v22 = vadd.f32 %v6401_v33, %v2714_v49  ;;  %vm2761_vm1 = vweird.f32 %v6424_v6  ;;  %v2768_v4 = vor.u32 1.1754944e-38, %v2767_v42  ;;  %4672 = vrcp.f32 %v6456_v63  ;;  %v4667_v50 = vpop.eup %4666  ;;  %vm6540_vm9 = vmor %vm2671_vm15, %vm2672_vm13 }
 0x7fc   : > { %vm2661_vm2 = vcmp.eq.f32.partialorder %v2660_v48, 8.507059e+37  ;;  %v2720_v41 = vand.u32 2147483647, %v6327_v54  ;;  %v6482_v44 = vor.u32 1.1754944e-38, %v2737_v8  ;;  %v2700_v59 = vadd.f32 %v6295_v39, %v6391_v10  ;;  %3405 = vmatmul.bf16.vlgmr.msra.gmra.mxu3 %v3093_v14 }
 0x7fd   : > { %v6485_v37 = vsel %vm2661_vm2, %v6309_v61, %v2659_v17  ;;  %v2719_v53 = vsel %vm6475_vm0, %v6401_v33, %v2715_v22  ;;  %v6492_v19 = vpop.eup %4668  ;;  %v2757_v46 = vmul.f32 %v4667_v50, %v6424_v6  ;;  %4674 = vpow2.f32 %v2973_v15 }
 0x7fe   : > { %v6495_v49 = vmul.f32 %v2929_v43, %v2497_v21  ;;  %v6832_v54 = vpack.c.bf16 %v6374_v38, %v6234_v35  ;;  %vm2721_vm3 = vcmp.eq.f32.partialorder %v2720_v41, 8.507059e+37  ;;  %v2727_v10 = vmul.f32 %v6492_v19, %v6426_v7 }
 0x7ff   : > { %v6510_v33 = vor.u32 1.1754944e-38, %v2752_v20  ;;  %v6512_v21 = vsel %vm2721_vm3, %v2723_v55, %v2719_v53  ;;  %v2779_v35 = vmul.f32 1.0614054, %v6485_v37  ;;  %v2758_v38 = vsub.f32 1.0, %v2757_v46 }
 0x800   : > { %3386 = vmatmul.bf16.vlgmr.msrb.gmra.mxu2 %v6832_v54  ;;  %vm2762_vm5 = vweird.f32 %v4667_v50  ;;  %vm2731_vm6 = vweird.f32 %v6426_v7  ;;  %v2783_v9 = vmul.f32 1.0614054, %v6512_v21  ;;  %v2704_v1 = vsel %vm6504_vm4, %v6295_v39, %v2700_v59  ;;  %v6520_v42 = vpop.eup %4670 }
 0x801   : > { %v2728_v52 = vsub.f32 1.0, %v2727_v10  ;;  %v2795_v47 = vadd.f32 -1.4531521, %v2779_v35  ;;  %v2705_v26 = vand.u32 2147483647, %v6228_v30  ;;  %v2670_v55 = vadd.f32 %v6330_v5, %v2669_v27  ;;  %v6524_v8 = vpop.eup %4672  ;;  %vm2763_vm14 = vmor %vm2761_vm1, %vm2762_vm5 }
 0x802   : > { %v2759_v36 = vmul.f32 %v4667_v50, %v2758_v38  ;;  %v2799_v15 = vadd.f32 -1.4531521, %v2783_v9  ;;  %v2765_v43 = vand.u32 2147483647, %v6424_v6  ;;  %v2675_v17 = vand.u32 2147483647, %v6275_v62 }
 0x803   : > { %vm2687_vm7 = vweird.f32 %v6371_v29  ;;  %v2729_v39 = vmul.f32 %v6492_v19, %v2728_v52  ;;  %vm2732_vm8 = vweird.f32 %v6492_v19  ;;  %v2742_v48 = vmul.f32 %v6524_v8, %v6456_v63  ;;  %v6534_v27 = vpop.eup %4674 }
 0x804   : > { %v2811_v30 = vmul.f32 %v2795_v47, %v6485_v37  ;;  %v2815_v20 = vmul.f32 %v2799_v15, %v6512_v21  ;;  %vm2706_vm10 = vcmp.eq.f32.partialorder %v2705_v26, 8.507059e+37  ;;  %v2760_v22 = vadd.f32 %v4667_v50, %v2759_v36  ;;  %vm6571_vm1 = vmor %vm2731_vm6, %vm2732_vm8 }
 0x805   : > { %vm2766_vm11 = vcmp.eq.f32.partialorder %v2765_v43, 8.507059e+37  ;;  %vm2686_vm12 = vweird.f32 %v6305_v2  ;;  %v2743_v24 = vsub.f32 1.0, %v2742_v48  ;;  %v6550_v53 = vsel %vm2706_vm10, %v6337_v56, %v2704_v1 }
 0x806   : > { %v2827_v41 = vadd.f32 1.4214138, %v2811_v30  ;;  %v2674_v62 = vsel %vm6540_vm9, %v6330_v5, %v2670_v55  ;;  %v2831_v59 = vadd.f32 1.4214138, %v2815_v20  ;;  %v2764_v46 = vsel %vm2763_vm14, %v4667_v50, %v2760_v22  ;;  %vm6598_vm4 = vmor %vm2686_vm12, %vm2687_vm7 }
 0x807   : > { %v2782_v54 = vmul.f32 1.0614054, %v6550_v53  ;;  %vm2676_vm13 = vcmp.eq.f32.partialorder %v2675_v17, 8.507059e+37  ;;  %vm2746_vm15 = vweird.f32 %v6456_v63  ;;  %vm2747_vm0 = vweird.f32 %v6524_v8 }
 0x808   : > { %v2843_v6 = vmul.f32 %v2827_v41, %v6485_v37  ;;  %v6559_v61 = vsel %vm2766_vm11, %v2768_v4, %v2764_v46  ;;  %v6562_v56 = vsel %vm2676_vm13, %v6377_v18, %v2674_v62  ;;  %v2847_v10 = vmul.f32 %v2831_v59, %v6512_v21  ;;  %vm6613_vm6 = vmor %vm2746_vm15, %vm2747_vm0 }
 0x809   : > { %v2786_v5 = vmul.f32 1.0614054, %v6559_v61  ;;  %v2798_v35 = vadd.f32 -1.4531521, %v2782_v54  ;;  %v2730_v50 = vadd.f32 %v6492_v19, %v2729_v39  ;;  %v2744_v4 = vmul.f32 %v6524_v8, %v2743_v24 }
 0x80a   : > { %v2859_v9 = vadd.f32 -0.28449672, %v2843_v6  ;;  %v2735_v18 = vand.u32 2147483647, %v6426_v7  ;;  %v2780_v1 = vmul.f32 1.0614054, %v6562_v56  ;;  %v2685_v43 = vadd.f32 %v6371_v29, %v6452_v25 }
 0x80b   : > { %v2863_v52 = vadd.f32 -0.28449672, %v2847_v10  ;;  %v2802_v47 = vadd.f32 -1.4531521, %v2786_v5  ;;  %v2814_v26 = vmul.f32 %v2798_v35, %v6550_v53  ;;  %v2734_v55 = vsel %vm6571_vm1, %v6492_v19, %v2730_v50 }
 0x80c   : > { %v2875_v36 = vmul.f32 %v2859_v9, %v6485_v37  ;;  %vm2736_vm2 = vcmp.eq.f32.partialorder %v2735_v18, 8.507059e+37  ;;  %v2796_v15 = vadd.f32 -1.4531521, %v2780_v1  ;;  %v2690_v20 = vand.u32 2147483647, %v6305_v2 }
 0x80d   : > { %v2879_v17 = vmul.f32 %v2863_v52, %v6512_v21  ;;  %v2818_v7 = vmul.f32 %v2802_v47, %v6559_v61  ;;  %v2830_v39 = vadd.f32 1.4214138, %v2814_v26  ;;  %v6588_v48 = vsel %vm2736_vm2, %v6482_v44, %v2734_v55 }
 0x80e   : > { %v2891_v30 = vadd.f32 0.2548296, %v2875_v36  ;;  %v2784_v14 = vmul.f32 1.0614054, %v6588_v48  ;;  %v2812_v19 = vmul.f32 %v2796_v15, %v6562_v56  ;;  %vm3019_vm3 = vcmp.ge.f32.partialorder %v6156_v51, 0.0 }
 0x80f   : > { %v2895_v22 = vadd.f32 0.2548296, %v2879_v17  ;;  %v2834_v44 = vadd.f32 1.4214138, %v2818_v7  ;;  %v2846_v24 = vmul.f32 %v2830_v39, %v6550_v53  ;;  %v2745_v41 = vadd.f32 %v6524_v8, %v2744_v4 }
 0x810   : > { %vm3023_vm5 = vcmp.ge.f32.partialorder %v6281_v45, 0.0  ;;  %v2907_v62 = vmul.f32 %v2891_v30, %v6485_v37  ;;  %v2800_v59 = vadd.f32 -1.4531521, %v2784_v14  ;;  %v2828_v46 = vadd.f32 1.4214138, %v2812_v19 }
 0x811   : > { %v2689_v2 = vsel %vm6598_vm4, %v6371_v29, %v2685_v43  ;;  %v2911_v6 = vmul.f32 %v2895_v22, %v6512_v21  ;;  %v2850_v10 = vmul.f32 %v2834_v44, %v6559_v61  ;;  %v2862_v5 = vadd.f32 -0.28449672, %v2846_v24 }
 0x812   : > { %vm2691_vm7 = vcmp.eq.f32.partialorder %v2690_v20, 8.507059e+37  ;;  %v2987_v37 = vmul.f32 %v6349_v34, %v2907_v62  ;;  %v2816_v35 = vmul.f32 %v2800_v59, %v6588_v48  ;;  %v2844_v29 = vmul.f32 %v2828_v46, %v6562_v56 }
 0x813   : > { %v2749_v50 = vsel %vm6613_vm6, %v6524_v8, %v2745_v41  ;;  %v2991_v38 = vmul.f32 %v6469_v11, %v2911_v6  ;;  %v2866_v4 = vadd.f32 -0.28449672, %v2850_v10  ;;  %v2878_v9 = vmul.f32 %v2862_v5, %v6550_v53 }
 0x814   : > { %v2750_v21 = vand.u32 2147483647, %v6456_v63  ;;  %v3003_v18 = vsub.f32 1.0, %v2987_v37  ;;  %v2832_v1 = vadd.f32 1.4214138, %v2816_v35  ;;  %v6629_v34 = vsel %vm2691_vm7, %v6394_v23, %v2689_v2 }
 0x815   : > { %v2860_v52 = vadd.f32 -0.28449672, %v2844_v29  ;;  %v3007_v47 = vsub.f32 1.0, %v2991_v38  ;;  %v2882_v26 = vmul.f32 %v2866_v4, %v6559_v61  ;;  %v2894_v55 = vadd.f32 0.2548296, %v2878_v9 }
 0x816   : > { %vm2751_vm8 = vcmp.eq.f32.partialorder %v2750_v21, 8.507059e+37  ;;  %vm3022_vm9 = vcmp.ge.f32.partialorder %v6189_v0, 0.0  ;;  %v3035_v8 = vsub.f32 0.0, %v3003_v18  ;;  %v2848_v11 = vmul.f32 %v2832_v1, %v6588_v48 }
 0x817   : > { %v2876_v36 = vmul.f32 %v2860_v52, %v6562_v56  ;;  %v6636_v63 = vsel %vm2751_vm8, %v6510_v33, %v2749_v50  ;;  %v3039_v15 = vsub.f32 0.0, %v3007_v47  ;;  %v2898_v43 = vadd.f32 0.2548296, %v2882_v26 }
 0x818   : > { %v2910_v23 = vmul.f32 %v2894_v55, %v6550_v53  ;;  %v2781_v17 = vmul.f32 1.0614054, %v6629_v34  ;;  %v3051_v7 = vsel %vm3019_vm3, %v3003_v18, %v3035_v8  ;;  %v2864_v39 = vadd.f32 -0.28449672, %v2848_v11  ;;  %v6843_v55 = vld [vmem:[#allocation37_spill] sm:$0xff] }
 0x819   : > { %v2892_v30 = vadd.f32 0.2548296, %v2876_v36  ;;  %v2785_v14 = vmul.f32 1.0614054, %v6636_v63  ;;  %v3055_v19 = vsel %vm3023_vm5, %v3007_v47, %v3039_v15  ;;  %v3067_v20 = vadd.f32 1.0, %v3051_v7  ;;  %v6844_v36 = vld [vmem:[#allocation40_spill] sm:$0xff] }
 0x81a   : > { %v2914_v33 = vmul.f32 %v2898_v43, %v6559_v61  ;;  %v2990_v25 = vmul.f32 %v6413_v58, %v2910_v23  ;;  %v3071_v22 = vadd.f32 1.0, %v3055_v19  ;;  %v2880_v53 = vmul.f32 %v2864_v39, %v6588_v48 }
 0x81b   : > { %v2908_v44 = vmul.f32 %v2892_v30, %v6562_v56  ;;  %v2797_v24 = vadd.f32 -1.4531521, %v2781_v17  ;;  %v3083_v51 = vmul.f32 %v3067_v20, %v6268_v28  ;;  %v2801_v59 = vadd.f32 -1.4531521, %v2785_v14 }
 0x81c   : > { %v2994_v41 = vmul.f32 %v6520_v42, %v2914_v33  ;;  %v3006_v62 = vsub.f32 1.0, %v2990_v25  ;;  %v3087_v45 = vmul.f32 %v3071_v22, %v6364_v57  ;;  %v2896_v46 = vadd.f32 0.2548296, %v2880_v53 }
 0x81d   : > { %v2988_v2 = vmul.f32 %v6422_v60, %v2908_v44  ;;  %v2813_v61 = vmul.f32 %v2797_v24, %v6629_v34  ;;  %vm3026_vm10 = vcmp.ge.f32.partialorder %v6383_v12, 0.0  ;;  %v2817_v56 = vmul.f32 %v2801_v59, %v6636_v63  ;;  %v6845_v24 = vld [vmem:[#allocation39_spill] sm:$0xff]  ;;  %v6847_v59 = vld [vmem:[#allocation41_spill] sm:$0xff] }
 0x81e   : > { %v3010_v58 = vsub.f32 1.0, %v2994_v41  ;;  %v3038_v54 = vsub.f32 0.0, %v3006_v62  ;;  %v3095_v6 = vpack.c.bf16 %v3087_v45, %v3083_v51  ;;  %v2912_v28 = vmul.f32 %v2896_v46, %v6588_v48 }
 0x81f   : > { %v3004_v10 = vsub.f32 1.0, %v2988_v2  ;;  %v2829_v42 = vadd.f32 1.4214138, %v2813_v61  ;;  %v2975_v5 = vmul.f32 1.442695, %v6495_v49  ;;  %v2462_v4 = vmul.f32 0.5, %v6168_v32 }
 0x820   : > { %v3042_v37 = vsub.f32 0.0, %v3010_v58  ;;  %v3054_v57 = vsel %vm3022_vm9, %v3006_v62, %v3038_v54  ;;  %v2833_v60 = vadd.f32 1.4214138, %v2817_v56  ;;  %3372 = vmatmul.bf16.gmra.mxu1 %v3095_v6  ;;  %v2992_v29 = vmul.f32 %v6534_v27, %v2912_v28  ;;  %v6846_v62 = vld [vmem:[#allocation38_spill] sm:$0xff] }
 0x821   : > { %v3070_v35 = vadd.f32 1.0, %v3054_v57  ;;  %v3036_v50 = vsub.f32 0.0, %v3004_v10  ;;  %v2845_v38 = vmul.f32 %v2829_v42, %v6629_v34  ;;  %vm3020_vm11 = vcmp.ge.f32.partialorder %v6221_v13, 0.0  ;;  %v4533_v56 = vld [vmem:[%s902_s20] ss:$0 sm:$0xff] }
 0x822   : > { %v3058_v48 = vsel %vm3026_vm10, %v3010_v58, %v3042_v37  ;;  %v2849_v49 = vmul.f32 %v2833_v60, %v6636_v63  ;;  %v2466_v0 = vmul.f32 0.5, %v6357_v31  ;;  %v3008_v21 = vsub.f32 1.0, %v2992_v29 }
 0x823   : > { %v3074_v9 = vadd.f32 1.0, %v3058_v48  ;;  %v3052_v18 = vsel %vm3020_vm11, %v3004_v10, %v3036_v50  ;;  %4676 = vpow2.f32 %v6379_v3  ;;  %v2861_v27 = vadd.f32 -0.28449672, %v2845_v38 }
 0x824   : > { %v2865_v1 = vadd.f32 -0.28449672, %v2849_v49  ;;  %4678 = vpow2.f32 %v2975_v5  ;;  %v3086_v52 = vmul.f32 %v3070_v35, %v2462_v4  ;;  %v3040_v32 = vsub.f32 0.0, %v3008_v21  ;;  %v6849_v35 = vld [vmem:[#allocation33_spill] sm:$0xff] }
 0x825   : > { %v3090_v47 = vmul.f32 %v3074_v9, %v2466_v0  ;;  %vm3024_vm12 = vcmp.ge.f32.partialorder %v6386_v16, 0.0  ;;  %v3068_v13 = vadd.f32 1.0, %v3052_v18  ;;  %v2877_v12 = vmul.f32 %v2861_v27, %v6629_v34  ;;  %v6850_v9 = vld [vmem:[#allocation34_spill] sm:$0xff] }
 0x826   : > { %v2881_v26 = vmul.f32 %v2865_v1, %v6636_v63  ;;  %v2460_v31 = vmul.f32 0.5, %v6843_v55  ;;  %v3056_v11 = vsel %vm3024_vm12, %v3008_v21, %v3040_v32  ;;  %v2464_v15 = vmul.f32 0.5, %v6844_v36 }
 0x827   : > { %v3098_v8 = vpack.c.bf16 %v3090_v47, %v3086_v52  ;;  %v3072_v3 = vadd.f32 1.0, %v3056_v11  ;;  %v2893_v43 = vadd.f32 0.2548296, %v2877_v12  ;;  %vm3021_vm14 = vcmp.ge.f32.partialorder %v6845_v24, 0.0 }
 0x828   : > { %v2897_v23 = vadd.f32 0.2548296, %v2881_v26  ;;  %v3084_v7 = vmul.f32 %v3068_v13, %v2460_v31  ;;  %vm3025_vm13 = vcmp.ge.f32.partialorder %v6397_v40, 0.0 }
 0x829   : > { %3429 = vmatmul.bf16.gmra.mxu0 %v3098_v8  ;;  %v4677_v17 = vpop.eup %4676  ;;  %v3088_v39 = vmul.f32 %v3072_v3, %v2464_v15  ;;  %v2909_v16 = vmul.f32 %v2893_v43, %v6629_v34  ;;  %v2461_v34 = vmul.f32 0.5, %v6846_v62  ;;  %v6851_v8 = vld [vmem:[#allocation35_spill] sm:$0xff] }
 0x82a   : > { %v2913_v30 = vmul.f32 %v2897_v23, %v6636_v63  ;;  %v4679_v14 = vpop.eup %4678  ;;  %v2465_v63 = vmul.f32 0.5, %v6847_v59 }
 0x82b   : > { %v3096_v19 = vpack.c.bf16 %v3088_v39, %v3084_v7  ;;  %v2989_v20 = vmul.f32 %v4677_v17, %v2909_v16  ;;  %v6852_v17 = vld [vmem:[#allocation36_spill] sm:$0xff] }
 0x82c   : > { %v2993_v33 = vmul.f32 %v4679_v14, %v2913_v30 }
 0x82d   : > { %3391 = vmatmul.bf16.gmra.mxu2 %v3096_v19  ;;  %v3005_v25 = vsub.f32 1.0, %v2989_v20 }
 0x82e   : > { %v3009_v22 = vsub.f32 1.0, %v2993_v33 }
 0x82f   : > { %v3037_v53 = vsub.f32 0.0, %v3005_v25 }
 0x830   : > { %v3041_v44 = vsub.f32 0.0, %v3009_v22 }
 0x831   : > { %v3053_v51 = vsel %vm3021_vm14, %v3005_v25, %v3037_v53 }
 0x832   : > { %v3057_v41 = vsel %vm3025_vm13, %v3009_v22, %v3041_v44  ;;  %v3069_v45 = vadd.f32 1.0, %v3053_v51 }
 0x833   : > { %v3073_v46 = vadd.f32 1.0, %v3057_v41 }
 0x834   : > { %v3085_v2 = vmul.f32 %v3069_v45, %v2461_v34 }
 0x835   : > { %v3089_v61 = vmul.f32 %v3073_v46, %v2465_v63 }
 0x837   : > { %v3097_v58 = vpack.c.bf16 %v3089_v61, %v3085_v2 }
 0x839   : > { %3410 = vmatmul.bf16.gmra.mxu3 %v3097_v58 }
 0x876   : > { %v3368_v54 = vpop.f32.mrf.mxu1 }
 0x877   : > { %v3369_v6 = vadd.f32 %v4533_v56, %v3368_v54  ;;  %v3425_v42 = vpop.f32.mrf.mxu0 }
 0x87e   : > { %v3370_v37 = vpop.f32.mrf.mxu1 }
 0x87f   : > { %v3406_v10 = vpop.f32.mrf.mxu3  ;;  %v3371_v60 = vadd.f32 %v4533_v56, %v3370_v37  ;;  %v3427_v49 = vpop.f32.mrf.mxu0 }
 0x883   : > { %v3387_v40 = vpop.f32.mrf.mxu2 }
 0x884   : > { %v3388_v28 = vadd.f32 %v3387_v40, %v3369_v6 }
 0x886   : > { %v3407_v5 = vadd.f32 %v3406_v10, %v3388_v28 }
 0x887   : > { %v3408_v4 = vpop.f32.mrf.mxu3 }
 0x888   : > { %v3426_v57 = vadd.f32 %v3425_v42, %v3407_v5 }
 0x88a   : > { %v3435_v29 = vadd.f32 %v3426_v57, %v6849_v35 }
 0x88b   : > { %v3389_v50 = vpop.f32.mrf.mxu2 }
 0x88c   : > { %v3390_v38 = vadd.f32 %v3389_v50, %v3371_v60 }
 0x88e   : > { %v3409_v48 = vadd.f32 %v3408_v4, %v3390_v38 }
 0x890   : > { %v3428_v0 = vadd.f32 %v3427_v49, %v3409_v48 }
 0x892   : > { %v3436_v21 = vadd.f32 %v3428_v0, %v6850_v9 }
 0x89d   : > { %v3373_v18 = vpop.f32.mrf.mxu1 }
 0x89e   : > { %v3374_v1 = vadd.f32 %v4533_v56, %v3373_v18 }
 0x8a5   : > { %v3375_v32 = vpop.f32.mrf.mxu1 }
 0x8a6   : > { %v3430_v47 = vpop.f32.mrf.mxu0  ;;  %v3376_v55 = vadd.f32 %v4533_v56, %v3375_v32 }
 0x8ae   : > { %v3432_v43 = vpop.f32.mrf.mxu0 }
 0x8b0   : > { %v3392_v27 = vpop.f32.mrf.mxu2 }
 0x8b1   : > { %v3393_v52 = vadd.f32 %v3392_v27, %v3374_v1 }
 0x8b8   : > { %v3394_v26 = vpop.f32.mrf.mxu2 }
 0x8b9   : > { %v3395_v36 = vadd.f32 %v3394_v26, %v3376_v55 }
 0x8bc   : > { %v3411_v13 = vpop.f32.mrf.mxu3 }
 0x8bd   : > { %v3412_v12 = vadd.f32 %v3411_v13, %v3393_v52 }
 0x8bf   : > { %v3431_v31 = vadd.f32 %v3430_v47, %v3412_v12 }
 0x8c1   : > { %v3437_v11 = vadd.f32 %v3431_v31, %v6851_v8 }
 0x8c4   : > { %v3413_v15 = vpop.f32.mrf.mxu3 }
 0x8c5   : > { %v3414_v3 = vadd.f32 %v3413_v15, %v3395_v36  ;;  %3442 = sbr.rel (%p4255_p3) target bundleno = 2254 (0x8ce), region = 132 }
 0x8c7   : > { %v3433_v23 = vadd.f32 %v3432_v43, %v3414_v3 }
 0x8c9   : > { %v3438_v7 = vadd.f32 %v3433_v23, %v6852_v17 }
 0x8ca   : > { %3443 = vst [vmem:[#allocation20] sm:$0xff] %v3435_v29 }
 0x8cb   : > { %3444 = vst [vmem:[#allocation20 + $0x8] sm:$0xff] %v3436_v21 }
 0x8cc   : > { %3445 = vst [vmem:[#allocation20 + $0x10] sm:$0xff] %v3437_v11 }
 0x8cd   : > { %3446 = vst [vmem:[#allocation20 + $0x18] sm:$0xff] %v3438_v7 }
 0x8ce PF: > { %s6854_s2 = sld [smem:[#allocation29_spill]] }
 0x8d4   : > { %p4256_p4 = scmp.ne.s32.totalorder %s6854_s2, 1 }
 0x8d5   : > { %s6856_s14 = sld [smem:[#allocation50_spill]] (!%p4256_p4) }
 0x8d6   : > { %3450 = sbr.rel (%p4256_p4) target bundleno = 2543 (0x9ef), region = 136  ;;  %s6857_s8 = sld [smem:[#allocation51_spill]] (!%p4256_p4) }
 0x8db   : > { %3457 = vadd.xlane.f32.xlu1 %v3437_v11  ;;  %3453 = vadd.xlane.f32.xlu0 %v3435_v29  ;;  %v6855_v30 = vld [vmem:[#allocation32_spill] sm:$0xff] }
 0x8dc   : > { %v4685_v32 = vld [vmem:[%s6857_s8] ss:$0 sm:$0xff] }
 0x8e3   : > { %3459 = vadd.xlane.f32.xlu1 %v3438_v7  ;;  %3455 = vadd.xlane.f32.xlu0 %v3436_v21 }
 0x94e   : > { %v3458_v39 = vpop.xlane.xlu1 %3457  ;;  %v3454_v16 = vpop.xlane.xlu0 %3453 }
 0x94f   : > { %v3463_v14 = vmul.f32 %v3458_v39, %v6855_v30  ;;  %v3461_v19 = vmul.f32 %v3454_v16, %v6855_v30 }
 0x951   : > { %v3467_v20 = vsub.f32 %v3437_v11, %v3463_v14  ;;  %v3465_v33 = vsub.f32 %v3435_v29, %v3461_v19 }
 0x953   : > { %v3471_v25 = vmul.f32 %v3467_v20, %v3467_v20  ;;  %v3469_v22 = vmul.f32 %v3465_v33, %v3465_v33 }
 0x955   : > { %3477 = vadd.xlane.f32.xlu0 %v3471_v25  ;;  %3473 = vadd.xlane.f32.xlu2 %v3469_v22 }
 0x956   : > { %v3460_v53 = vpop.xlane.xlu1 %3459  ;;  %v3456_v44 = vpop.xlane.xlu0 %3455 }
 0x957   : > { %v3464_v24 = vmul.f32 %v3460_v53, %v6855_v30  ;;  %v3462_v51 = vmul.f32 %v3456_v44, %v6855_v30 }
 0x959   : > { %v6695_v41 = vsub.f32 %v3438_v7, %v3464_v24  ;;  %v6697_v62 = vsub.f32 %v3436_v21, %v3462_v51  ;;  %v4684_v21 = vld [vmem:[%s6856_s14] ss:$0 sm:$0xff] }
 0x95b   : > { %v3472_v34 = vmul.f32 %v6695_v41, %v6695_v41  ;;  %v3470_v59 = vmul.f32 %v6697_v62, %v6697_v62 }
 0x95d   : > { %3479 = vadd.xlane.f32.xlu1 %v3472_v34  ;;  %3475 = vadd.xlane.f32.xlu2 %v3470_v59 }
 0x9c8   : > { %v3474_v63 = vpop.xlane.xlu2 %3473  ;;  %v3478_v45 = vpop.xlane.xlu0 %3477 }
 0x9c9   : > { %v3481_v46 = vmul.f32 %v3474_v63, %v6855_v30  ;;  %v3483_v2 = vmul.f32 %v3478_v45, %v6855_v30 }
 0x9cb   : > { %v3485_v61 = vadd.f32 1e-05, %v3481_v46  ;;  %v3487_v58 = vadd.f32 1e-05, %v3483_v2 }
 0x9cd   : > { %4686 = vrsqrt.f32 %v3485_v61  ;;  %vm3495_vm1 = vweird.f32 %v3485_v61  ;;  %vm3515_vm3 = vweird.f32 %v3487_v58 }
 0x9ce   : > { %4688 = vrsqrt.f32 %v3487_v58 }
 0x9d0   : > { %v3480_v54 = vpop.xlane.xlu1 %3479  ;;  %v3476_v56 = vpop.xlane.xlu2 %3475 }
 0x9d1   : > { %v3484_v6 = vmul.f32 %v3480_v54, %v6855_v30  ;;  %v3482_v40 = vmul.f32 %v3476_v56, %v6855_v30 }
 0x9d3   : > { %v4687_v28 = vpop.eup %4686  ;;  %v3488_v10 = vadd.f32 1e-05, %v3484_v6  ;;  %v3486_v42 = vadd.f32 1e-05, %v3482_v40 }
 0x9d4   : > { %v4689_v5 = vpop.eup %4688  ;;  %v3490_v37 = vmul.f32 %v4687_v28, %v3485_v61  ;;  %vm3496_vm15 = vweird.f32 %v4687_v28 }
 0x9d5   : > { %v3510_v57 = vmul.f32 %v4689_v5, %v3487_v58  ;;  %4690 = vrsqrt.f32 %v3488_v10  ;;  %vm3516_vm0 = vweird.f32 %v4689_v5  ;;  %vm3497_vm2 = vmor %vm3495_vm1, %vm3496_vm15  ;;  %vm3525_vm7 = vweird.f32 %v3488_v10 }
 0x9d6   : > { %v3491_v60 = vmul.f32 %v4687_v28, %v3490_v37  ;;  %4692 = vrsqrt.f32 %v3486_v42  ;;  %vm3517_vm4 = vmor %vm3515_vm3, %vm3516_vm0  ;;  %vm3505_vm9 = vweird.f32 %v3486_v42 }
 0x9d7   : > { %v3511_v35 = vmul.f32 %v4689_v5, %v3510_v57 }
 0x9d8   : > { %v3492_v29 = vmul.f32 0.5, %v3491_v60 }
 0x9d9   : > { %v3512_v50 = vmul.f32 0.5, %v3511_v35 }
 0x9da   : > { %v3493_v38 = vsub.f32 1.5, %v3492_v29 }
 0x9db   : > { %v4691_v4 = vpop.eup %4690  ;;  %v3513_v48 = vsub.f32 1.5, %v3512_v50 }
 0x9dc   : > { %v4693_v49 = vpop.eup %4692  ;;  %v3494_v0 = vmul.f32 %v4687_v28, %v3493_v38  ;;  %v3520_v9 = vmul.f32 %v4691_v4, %v3488_v10  ;;  %vm3526_vm5 = vweird.f32 %v4691_v4 }
 0x9dd   : > { %v3514_v18 = vmul.f32 %v4689_v5, %v3513_v48  ;;  %v3500_v27 = vmul.f32 %v4693_v49, %v3486_v42  ;;  %vm3506_vm6 = vweird.f32 %v4693_v49  ;;  %vm3527_vm8 = vmor %vm3525_vm7, %vm3526_vm5 }
 0x9de   : > { %v3498_v1 = vsel %vm3497_vm2, %v4687_v28, %v3494_v0  ;;  %v3521_v52 = vmul.f32 %v4691_v4, %v3520_v9  ;;  %vm3507_vm10 = vmor %vm3505_vm9, %vm3506_vm6 }
 0x9df   : > { %v3529_v47 = vmul.f32 %v3498_v1, %v3465_v33  ;;  %v3518_v13 = vsel %vm3517_vm4, %v4689_v5, %v3514_v18  ;;  %v3501_v12 = vmul.f32 %v4693_v49, %v3500_v27 }
 0x9e0   : > { %v3531_v26 = vmul.f32 %v3518_v13, %v3467_v20  ;;  %v3522_v55 = vmul.f32 0.5, %v3521_v52 }
 0x9e1   : > { %v3536_v31 = vmul.f32 %v4684_v21, %v3529_v47  ;;  %v3502_v8 = vmul.f32 0.5, %v3501_v12 }
 0x9e2   : > { %v3538_v11 = vmul.f32 %v4684_v21, %v3531_v26  ;;  %v3523_v36 = vsub.f32 1.5, %v3522_v55 }
 0x9e3   : > { %v3543_v15 = vadd.f32 %v4685_v32, %v3536_v31  ;;  %v3503_v3 = vsub.f32 1.5, %v3502_v8 }
 0x9e4   : > { %v3545_v43 = vadd.f32 %v4685_v32, %v3538_v11  ;;  %v3524_v23 = vmul.f32 %v4691_v4, %v3523_v36 }
 0x9e5   : > { %3547 = vst [vmem:[#allocation20] sm:$0xff] %v3543_v15  ;;  %v3504_v17 = vmul.f32 %v4693_v49, %v3503_v3 }
 0x9e6   : > { %3549 = vst [vmem:[#allocation20 + $0x10] sm:$0xff] %v3545_v43  ;;  %v3528_v7 = vsel %vm3527_vm8, %v4691_v4, %v3524_v23 }
 0x9e7   : > { %v3532_v39 = vmul.f32 %v3528_v7, %v6695_v41  ;;  %v3508_v16 = vsel %vm3507_vm10, %v4693_v49, %v3504_v17 }
 0x9e8   : > { %v3530_v30 = vmul.f32 %v3508_v16, %v6697_v62 }
 0x9e9   : > { %v3539_v14 = vmul.f32 %v4684_v21, %v3532_v39 }
 0x9ea   : > { %v3537_v19 = vmul.f32 %v4684_v21, %v3530_v30 }
 0x9eb   : > { %v3546_v20 = vadd.f32 %v4685_v32, %v3539_v14 }
 0x9ec   : > { %v3544_v33 = vadd.f32 %v4685_v32, %v3537_v19 }
 0x9ed   : > { %3550 = vst [vmem:[#allocation20 + $0x18] sm:$0xff] %v3546_v20 }
 0x9ee   : > { %3548 = vst [vmem:[#allocation20 + $0x8] sm:$0xff] %v3544_v33 }
 0x9ef PF: > { %p4432_p5 = scmp.eq.s32.totalorder %s5344_s26, 1  ;;  %s6858_s20 = sld [smem:[#allocation52_spill]] }
 0x9f0   : > { %s5141_s15 = smov [#allocation20]   ;;  %s5142_s27 = smov 128  }
 0x9f1   : > { %s3560_s3 = sshll.u32 %s5141_s15, 4  ;;  %s5143_s1 = smov 8   ;;  %s3561_s3 = int_to_ptr.vmem [resolvable:$true] %s3560_s3 }
 0x9f5   : > { %s3562_s29 = sshll.u32 %s6858_s20, 4  ;;  %s3563_s29 = int_to_ptr.hbm [resolvable:$true] %s3562_s29 }
 0x9f6   : > { %4391 = dma.vmem_to_hbm [thread:$0]  (%p4432_p5), %s3561_s3, 512, %s3563_s29, [#allocation4], %s5142_s27, %s5142_s27, %s5143_s1  }
 0x9f7   : > { %5101 = dma.done.wait (%p4432_p5), [#allocation4], 512  }
 0x9f8   : > { %5103 = vsyncadd (%p4432_p5), [#allocation4], 4294966784 }
 0x9f9 PF: > { %s42_s23 = sadd.s32 1, %s5126_s23   ;;  %s6859_s10 = sld [smem:[#allocation28_spill]] }
 0x9fa   : > { %p39_p6 = scmp.ge.s32.totalorder %s42_s23, 4   ;;  %s6860_s20 = sld [smem:[#allocation31_spill]] }
 0x9fb   : > { %s6861_s26 = sld [smem:[#allocation30_spill]]  ;;  %s6862_s18 = smov %s5110_s19 }
 0x9fc   : > { %s6864_s21 = smov %s5122_s22 }
 0x9fd   :  { %41 = sbr.rel (!%p39_p6) target bundleno = 26 (0x1a), region = 249 }
 0x9ff   : > { %s6863_s19 = smov %s6859_s10 }
 0xa01   : > { %s6865_s22 = smov %s6861_s26 }
 0xa02   :  { %3579 = vsyncpa [#allocation3], 1 }
 0xa03   :  { %3581 = vsyncpa [#allocation3 + $0x1], 1 }
 0xa04   :  { %3582 = vsyncpa [#allocation6], 1 }
 0xa05   :  { %3584 = vsyncpa [#allocation6 + $0x1], 1 }
 0xa06   :  { %3585 = vsyncpa [#allocation9], 1 }
 0xa07   :  { %3587 = vsyncpa [#allocation9 + $0x1], 1 }
 0xa08   :  { %3588 = vsyncpa [#allocation12], 1 }
 0xa09   :  { %3590 = vsyncpa [#allocation12 + $0x1], 1 }
 0xa0a   :  { %3591 = vsyncpa [#allocation15], 1 }
 0xa0b   :  { %3593 = vsyncpa [#allocation15 + $0x1], 1 }
 0xa0c   :  { %3594 = vsyncpa [#allocation18], 1 }
 0xa0d   :  { %3596 = vsyncpa [#allocation18 + $0x1], 1 }
 0xa0e   :  { %3597 = vsyncpa [#allocation4], 1 }
 0xa0f   :  { %3599 = vsyncpa [#allocation4 + $0x1], 1 }

</bundles_post_ra>
